<compile_context>
chip_gen: v6e
topology: v6e:2x2x1
jax: 0.10.0
libtpu: 0.0.40
codegen_flags: <defaults>
</compile_context>

<pallas_src>
import functools

import numpy as np
import jax
import jax.numpy as jnp
from jax.experimental import pallas as pl
from jax.experimental.pallas import tpu as pltpu

NEG_INF = -1e30


# ----------------------------- in-kernel helpers -----------------------------

def _layernorm(y, g, b, eps):
    mu = jnp.mean(y, axis=-1, keepdims=True)
    var = jnp.mean((y - mu) ** 2, axis=-1, keepdims=True)
    return (y - mu) * jax.lax.rsqrt(var + eps) * g + b


def _attn_core(q_f32, kv_f32, qb, kb, wc, bc, g, b, heads_scr,
               *, H, scale, eps, causal):
    """One MHA block given projected q [T,E] (f32) and kv [S,2E] (f32).

    Residual is the projected q (reference quirk).  Per-head outputs are written
    into `heads_scr` (f32 VMEM [T,E]) and the output projection is a single
    full-K matmul.  Returns the layer-normed output in f32.
    """
    T, E = q_f32.shape
    S = kv_f32.shape[0]
    D = E // H

    bias = qb + kb                                             # [T,1]+[1,S]->[T,S]
    if causal:
        row = jax.lax.broadcasted_iota(jnp.int32, (T, S), 0)
        col = jax.lax.broadcasted_iota(jnp.int32, (T, S), 1)
        bias = bias + jnp.where(row >= col, 0.0, NEG_INF)

    q_bf = q_f32.astype(jnp.bfloat16)
    kv_bf = kv_f32.astype(jnp.bfloat16)

    # TODO(synk): for large H/T use lax.fori_loop(unroll=True) to bound live ranges.
    for h in range(H):                                         # static unroll
        qh = q_bf[:, h * D:(h + 1) * D]                        # [T, D]
        kh = kv_bf[:, h * D:(h + 1) * D]                       # [S, D]
        vh = kv_bf[:, E + h * D:E + (h + 1) * D]               # [S, D]
        s = jax.lax.dot_general(qh, kh, (((1,), (1,)), ((), ())),
                                preferred_element_type=jnp.float32) * scale
        s = s + bias
        s = s - jnp.max(s, axis=-1, keepdims=True)
        e = jnp.exp(s)
        p = e * pl.reciprocal(jnp.sum(e, axis=-1, keepdims=True), approx=True)
        o_h = jnp.dot(p.astype(jnp.bfloat16), vh,
                      preferred_element_type=jnp.float32)      # [T, D]
        heads_scr[:, h * D:(h + 1) * D] = o_h                  # lane offset h*D

    heads = heads_scr[...].astype(jnp.bfloat16)                # [T, E]
    proj = jnp.dot(heads, wc, preferred_element_type=jnp.float32)  # full-K matmul
    y = proj + bc + q_f32
    return _layernorm(y, g, b, eps)


def _ff_core(x_f32, w1, b1, w2, b2, g, b, eps):
    x_bf = x_f32.astype(jnp.bfloat16)
    h = jnp.dot(x_bf, w1, preferred_element_type=jnp.float32) + b1
    h = jnp.maximum(h, 0.0)
    y = (jnp.dot(h.astype(jnp.bfloat16), w2, preferred_element_type=jnp.float32)
         + b2 + x_f32)
    return _layernorm(y, g, b, eps)


# ----------------------------- Pallas kernels --------------------------------

def _enc_layer_kernel(x_ref, qb_ref, kb_ref,
                      wqkv_ref, wc_ref, bc_ref, g1_ref, b1_ref,
                      fw1_ref, fb1_ref, fw2_ref, fb2_ref, g2_ref, b2_ref,
                      o_ref, heads_scr, *, H, scale, eps):
    x = x_ref[...]                                             # bf16 [T, E]
    E = x.shape[1]
    qkv = jnp.dot(x, wqkv_ref[...], preferred_element_type=jnp.float32)  # [T,3E]
    y = _attn_core(qkv[:, :E], qkv[:, E:], qb_ref[...], kb_ref[...],
                   wc_ref[...], bc_ref[...], g1_ref[...], b1_ref[...],
                   heads_scr, H=H, scale=scale, eps=eps, causal=False)
    y = _ff_core(y, fw1_ref[...], fb1_ref[...], fw2_ref[...], fb2_ref[...],
                 g2_ref[...], b2_ref[...], eps)
    o_ref[...] = y.astype(o_ref.dtype)


def _dec_layer_kernel(y_ref, memo_ref, qb_ref, kb_ref,
                      s_wqkv_ref, s_wc_ref, s_bc_ref, s_g_ref, s_b_ref,
                      c_wq_ref, c_wkv_ref, c_wc_ref, c_bc_ref, c_g_ref, c_b_ref,
                      fcw_ref, fcb_ref,
                      o_ref, heads_scr, *, H, scale, eps):
    y = y_ref[...]                                             # bf16 [T, E]
    E = y.shape[1]
    # ---- decoder self-attention (causal + padding) ----
    qkv = jnp.dot(y, s_wqkv_ref[...], preferred_element_type=jnp.float32)
    y1 = _attn_core(qkv[:, :E], qkv[:, E:], qb_ref[...], kb_ref[...],
                    s_wc_ref[...], s_bc_ref[...], s_g_ref[...], s_b_ref[...],
                    heads_scr, H=H, scale=scale, eps=eps, causal=True)
    # ---- cross-attention (reference quirk: re-uses the self-attn mask) ----
    q2 = jnp.dot(y1.astype(jnp.bfloat16), c_wq_ref[...],
                 preferred_element_type=jnp.float32)
    kv2 = jnp.dot(memo_ref[...], c_wkv_ref[...],
                  preferred_element_type=jnp.float32)
    y2 = _attn_core(q2, kv2, qb_ref[...], kb_ref[...],
                    c_wc_ref[...], c_bc_ref[...], c_g_ref[...], c_b_ref[...],
                    heads_scr, H=H, scale=scale, eps=eps, causal=True)
    # ---- trailing per-layer fc (DecoderLayer.ff is never called) ----
    out = (jnp.dot(y2.astype(jnp.bfloat16), fcw_ref[...],
                   preferred_element_type=jnp.float32) + fcb_ref[...])
    o_ref[...] = out.astype(o_ref.dtype)


def _embed_ln_kernel(x_ref, pe_ref, g_ref, b_ref, o_ref, *, eps):
    y = x_ref[...].astype(jnp.float32) + pe_ref[...]
    o_ref[...] = _layernorm(y, g_ref[...], b_ref[...], eps).astype(o_ref.dtype)


def _head_kernel(x_ref, w_ref, b_ref, o_ref):
    # Shared embedding [V, E]; contract E on both operands (trans_b semantics)
    # so embed.T is never materialized.
    # TODO(synk): tile over (M, V) with lane-dense V tiles for production vocab.
    o_ref[...] = (jax.lax.dot_general(x_ref[...], w_ref[...],
                                      (((1,), (1,)), ((), ())),
                                      preferred_element_type=jnp.float32)
                  + b_ref[...])


# ----------------------------- kernel wrappers --------------------------------

def _w(shape):
    return pl.BlockSpec(shape, lambda b: (0, 0))


_CPARAMS = pltpu.CompilerParams(dimension_semantics=("parallel",),
                                vmem_limit_bytes=32 * 1024 * 1024)


def encoder_layer(lp, x, qb, kb, H, eps=1e-6):
    B, T, E = x.shape
    a, f = lp["attn"], lp["ff"]
    Hd = f["w1"].shape[1]
    kern = functools.partial(_enc_layer_kernel, H=H, scale=float(E) ** 0.5, eps=eps)
    return pl.pallas_call(
        kern,
        out_shape=jax.ShapeDtypeStruct((B, T, E), jnp.bfloat16),
        grid=(B,),
        in_specs=[
            pl.BlockSpec((None, T, E), lambda b: (b, 0, 0)),   # x
            pl.BlockSpec((None, T, 1), lambda b: (b, 0, 0)),   # q validity bias
            pl.BlockSpec((None, 1, T), lambda b: (b, 0, 0)),   # k validity bias
            _w((E, 3 * E)), _w((E, E)), _w((1, E)), _w((1, E)), _w((1, E)),
            _w((E, Hd)), _w((1, Hd)), _w((Hd, E)), _w((1, E)), _w((1, E)), _w((1, E)),
        ],
        out_specs=pl.BlockSpec((None, T, E), lambda b: (b, 0, 0)),
        scratch_shapes=[pltpu.VMEM((T, E), jnp.float32)],
        compiler_params=_CPARAMS,
    )(x, qb, kb,
      a["wqkv"], a["wc"], a["bc"], a["ln_g"], a["ln_b"],
      f["w1"], f["b1"], f["w2"], f["b2"], f["ln_g"], f["ln_b"])


def decoder_layer(lp, y, memo, qb, kb, H, eps=1e-6):
    B, T, E = y.shape
    S = memo.shape[1]
    sa, ca = lp["self_attn"], lp["cross_attn"]
    kern = functools.partial(_dec_layer_kernel, H=H, scale=float(E) ** 0.5, eps=eps)
    return pl.pallas_call(
        kern,
        out_shape=jax.ShapeDtypeStruct((B, T, E), jnp.bfloat16),
        grid=(B,),
        in_specs=[
            pl.BlockSpec((None, T, E), lambda b: (b, 0, 0)),   # tar activations
            pl.BlockSpec((None, S, E), lambda b: (b, 0, 0)),   # encoder memory
            pl.BlockSpec((None, T, 1), lambda b: (b, 0, 0)),   # q validity (tar)
            pl.BlockSpec((None, 1, T), lambda b: (b, 0, 0)),   # k validity (tar; quirk)
            _w((E, 3 * E)), _w((E, E)), _w((1, E)), _w((1, E)), _w((1, E)),   # self
            _w((E, E)), _w((E, 2 * E)), _w((E, E)), _w((1, E)), _w((1, E)), _w((1, E)),  # cross
            _w((E, E)), _w((1, E)),                                           # fc
        ],
        out_specs=pl.BlockSpec((None, T, E), lambda b: (b, 0, 0)),
        scratch_shapes=[pltpu.VMEM((T, E), jnp.float32)],
        compiler_params=_CPARAMS,
    )(y, memo, qb, kb,
      sa["wqkv"], sa["wc"], sa["bc"], sa["ln_g"], sa["ln_b"],
      ca["wq"], ca["wkv"], ca["wc"], ca["bc"], ca["ln_g"], ca["ln_b"],
      lp["fc_w"], lp["fc_b"])


def embed_pe_ln(x_emb, pe_slice, gamma, beta, eps=1e-6):
    B, T, E = x_emb.shape
    kern = functools.partial(_embed_ln_kernel, eps=eps)
    return pl.pallas_call(
        kern,
        out_shape=jax.ShapeDtypeStruct((B, T, E), jnp.bfloat16),
        grid=(B,),
        in_specs=[
            pl.BlockSpec((None, T, E), lambda b: (b, 0, 0)),
            _w((T, E)), _w((1, E)), _w((1, E)),
        ],
        out_specs=pl.BlockSpec((None, T, E), lambda b: (b, 0, 0)),
        compiler_params=_CPARAMS,
    )(x_emb, pe_slice, gamma, beta)


def vocab_head(dec2d, embed, bias):
    M, E = dec2d.shape
    V = embed.shape[0]
    return pl.pallas_call(
        _head_kernel,
        out_shape=jax.ShapeDtypeStruct((M, V), jnp.float32),
    )(dec2d, embed, bias)


# ----------------------------- model pieces ----------------------------------

def model_forward(params, src_seq, tar_seq, H, E, padding_idx=0):
    Ts = src_seq.shape[1]
    Tt = tar_seq.shape[1]
    # Per-batch validity biases (0 valid / -1e30 padded) — O(B*T), built in XLA.
    src_b = jnp.where(src_seq != padding_idx, 0.0, NEG_INF).astype(jnp.float32)
    tar_b = jnp.where(tar_seq != padding_idx, 0.0, NEG_INF).astype(jnp.float32)
    src_qb, src_kb = src_b[:, :, None], src_b[:, None, :]
    tar_qb, tar_kb = tar_b[:, :, None], tar_b[:, None, :]

    # ---- encoder ----
    x = params["embed"][src_seq]                               # XLA gather (bf16)
    x = embed_pe_ln(x, params["pe"][:Ts], params["enc_ln_g"], params["enc_ln_b"])
    for lp in params["enc_layers"]:
        x = encoder_layer(lp, x, src_qb, src_kb, H)
    memo = x

    # ---- decoder ----
    y = params["embed"][tar_seq]
    y = embed_pe_ln(y, params["pe"][:Tt], params["dec_ln_g"], params["dec_ln_b"])
    for lp in params["dec_layers"]:
        y = decoder_layer(lp, y, memo, tar_qb, tar_kb, H)

    logits = vocab_head(y.reshape(-1, E), params["embed"], params["head_b"])
    return logits                                              # [B*T_tar, num_words]


# ----------------------------- parameter init --------------------------------

def _xavier(key, shape, dtype=jnp.bfloat16):
    limit = float(np.sqrt(6.0 / (shape[0] + shape[1])))
    return jax.random.uniform(key, shape, jnp.float32, -limit, limit).astype(dtype)


def _init_self_attn(key, E):
    ks = jax.random.split(key, 4)
    return dict(
        wqkv=jnp.concatenate([_xavier(ks[0], (E, E)), _xavier(ks[1], (E, E)),
                              _xavier(ks[2], (E, E))], axis=1),   # fused q|k|v
        wc=_xavier(ks[3], (E, E)),
        bc=jnp.zeros((1, E), jnp.float32),
        ln_g=jnp.ones((1, E), jnp.float32), ln_b=jnp.zeros((1, E), jnp.float32),
    )


def _init_cross_attn(key, E):
    ks = jax.random.split(key, 4)
    return dict(
        wq=_xavier(ks[0], (E, E)),
        wkv=jnp.concatenate([_xavier(ks[1], (E, E)),
                             _xavier(ks[2], (E, E))], axis=1),    # fused k|v
        wc=_xavier(ks[3], (E, E)),
        bc=jnp.zeros((1, E), jnp.float32),
        ln_g=jnp.ones((1, E), jnp.float32), ln_b=jnp.zeros((1, E), jnp.float32),
    )


def _init_ff(key, E, Hd):
    ks = jax.random.split(key, 2)
    return dict(
        w1=_xavier(ks[0], (E, Hd)), b1=jnp.zeros((1, Hd), jnp.float32),
        w2=_xavier(ks[1], (Hd, E)), b2=jnp.zeros((1, E), jnp.float32),
        ln_g=jnp.ones((1, E), jnp.float32), ln_b=jnp.zeros((1, E), jnp.float32),
    )


def sinusoidal_pe_table(theta, n_position, E):
    # Reproduces the reference bug: the row is identical for every position.
    i = np.arange(E)
    row = E / np.power(theta, 2 * (i // 2) / E)
    tbl = np.tile(row[None, :].astype(np.float64), (n_position, 1))
    tbl[:, 0::2] = np.sin(tbl[:, 0::2])
    tbl[:, 1::2] = np.cos(tbl[:, 1::2])
    return jnp.asarray(tbl, jnp.float32)


def init_params(key, *, E, enc_depth, dec_depth, num_words, max_length):
    keys = jax.random.split(key, 2 + 2 * enc_depth + 3 * dec_depth)
    ki = iter(keys)
    params = dict(
        embed=_xavier(next(ki), (num_words, E)),   # shared: enc/dec embed + head
        head_b=jnp.zeros((1, num_words), jnp.float32),
        pe=sinusoidal_pe_table(10000, max_length, E),
        enc_ln_g=jnp.ones((1, E), jnp.float32), enc_ln_b=jnp.zeros((1, E), jnp.float32),
        dec_ln_g=jnp.ones((1, E), jnp.float32), dec_ln_b=jnp.zeros((1, E), jnp.float32),
    )
    params["enc_layers"] = [
        dict(attn=_init_self_attn(next(ki), E), ff=_init_ff(next(ki), E, 4 * E))
        for _ in range(enc_depth)
    ]
    dec_layers = []
    for _ in range(dec_depth):
        dec_layers.append(dict(
            self_attn=_init_self_attn(next(ki), E),
            cross_attn=_init_cross_attn(next(ki), E),
            fc_w=_xavier(next(ki), (E, E)),
            fc_b=jnp.zeros((1, E), jnp.float32),
        ))
    params["dec_layers"] = dec_layers
    return params


# ----------------------------------- main -------------------------------------

if __name__ == "__main__":
    B, T = 2, 8
    E, H = 32, 4
    NUM_WORDS = 64
    ENC_DEPTH, DEC_DEPTH = 2, 2
    MAX_LENGTH = 64

    root = jax.random.PRNGKey(0)
    k_param, k_src, k_tar = jax.random.split(root, 3)
    params = init_params(k_param, E=E, enc_depth=ENC_DEPTH, dec_depth=DEC_DEPTH,
                         num_words=NUM_WORDS, max_length=MAX_LENGTH)

    # tokens in [1, NUM_WORDS) so no padding rows (fully-valid batch)
    src_seq = jax.random.randint(k_src, (B, T), 1, NUM_WORDS, dtype=jnp.int32)
    tar_seq = jax.random.randint(k_tar, (B, T), 1, NUM_WORDS, dtype=jnp.int32)

    model_fn = jax.jit(functools.partial(model_forward, H=H, E=E, padding_idx=0))
    logits = model_fn(params, src_seq, tar_seq)
    logits = jax.block_until_ready(logits)

    assert logits.shape == (B * T, NUM_WORDS), logits.shape
    assert bool(jnp.all(jnp.isfinite(logits)))
    print("KERNEL_OK")
</pallas_src>

<mosaic_0001>
module attributes {stable_mosaic.version = 11 : i64} {
  func.func @_embed_ln_kernel(%arg0: i32, %arg1: memref<1x8x32xbf16, #tpu.memory_space<vmem>>, %arg2: memref<8x32xf32, #tpu.memory_space<vmem>>, %arg3: memref<1x32xf32, #tpu.memory_space<vmem>>, %arg4: memref<1x32xf32, #tpu.memory_space<vmem>>, %arg5: memref<1x8x32xbf16, #tpu.memory_space<vmem>>) attributes {dimension_semantics = [#tpu.dimension_semantics<parallel>], iteration_bounds = array<i64: 2>, scalar_prefetch = 0 : i64, scratch_operands = 0 : i64, tpu.core_type = #tpu.core_type<tc>, window_params = [{transform_indices = @transform_0, window_bounds = array<i64: 1, 8, 32>}, {pipeline_mode = #tpu.pipeline_mode<synchronous>, transform_indices = @transform_1, window_bounds = array<i64: 8, 32>}, {pipeline_mode = #tpu.pipeline_mode<synchronous>, transform_indices = @transform_2, window_bounds = array<i64: 1, 32>}, {pipeline_mode = #tpu.pipeline_mode<synchronous>, transform_indices = @transform_3, window_bounds = array<i64: 1, 32>}, {transform_indices = @transform_4, window_bounds = array<i64: 1, 8, 32>}]} {
    %c0 = arith.constant 0 : index
    %c0_0 = arith.constant 0 : index
    %c0_1 = arith.constant 0 : index
    %0 = vector.load %arg1[%c0, %c0_0, %c0_1] : memref<1x8x32xbf16, #tpu.memory_space<vmem>>, vector<1x8x32xbf16>
    %1 = vector.shape_cast %0 : vector<1x8x32xbf16> to vector<8x32xbf16>
    %2 = arith.extf %1 : vector<8x32xbf16> to vector<8x32xf32>
    %c0_2 = arith.constant 0 : index
    %c0_3 = arith.constant 0 : index
    %3 = vector.load %arg2[%c0_2, %c0_3] : memref<8x32xf32, #tpu.memory_space<vmem>>, vector<8x32xf32>
    %4 = arith.addf %2, %3 : vector<8x32xf32>
    %c0_4 = arith.constant 0 : index
    %c0_5 = arith.constant 0 : index
    %5 = vector.load %arg3[%c0_4, %c0_5] : memref<1x32xf32, #tpu.memory_space<vmem>>, vector<1x32xf32>
    %c0_6 = arith.constant 0 : index
    %c0_7 = arith.constant 0 : index
    %6 = vector.load %arg4[%c0_6, %c0_7] : memref<1x32xf32, #tpu.memory_space<vmem>>, vector<1x32xf32>
    %cst = arith.constant dense<0.000000e+00> : vector<8xf32>
    %7 = vector.multi_reduction <add>, %4, %cst [1] : vector<8x32xf32> to vector<8xf32>
    %8 = vector.shape_cast %7 : vector<8xf32> to vector<8x1xf32>
    %cst_8 = arith.constant 3.200000e+01 : f32
    %9 = vector.broadcast %cst_8 : f32 to vector<8x1xf32>
    %10 = arith.divf %8, %9 : vector<8x1xf32>
    %11 = vector.broadcast %10 : vector<8x1xf32> to vector<8x32xf32>
    %12 = arith.subf %4, %11 : vector<8x32xf32>
    %13 = arith.mulf %12, %12 : vector<8x32xf32>
    %cst_9 = arith.constant dense<0.000000e+00> : vector<8xf32>
    %14 = vector.multi_reduction <add>, %13, %cst_9 [1] : vector<8x32xf32> to vector<8xf32>
    %15 = vector.shape_cast %14 : vector<8xf32> to vector<8x1xf32>
    %cst_10 = arith.constant 3.200000e+01 : f32
    %16 = vector.broadcast %cst_10 : f32 to vector<8x1xf32>
    %17 = arith.divf %15, %16 : vector<8x1xf32>
    %18 = vector.broadcast %10 : vector<8x1xf32> to vector<8x32xf32>
    %19 = arith.subf %4, %18 : vector<8x32xf32>
    %cst_11 = arith.constant 9.99999997E-7 : f32
    %20 = vector.broadcast %cst_11 : f32 to vector<8x1xf32>
    %21 = arith.addf %17, %20 : vector<8x1xf32>
    %22 = math.rsqrt %21 : vector<8x1xf32>
    %23 = vector.broadcast %22 : vector<8x1xf32> to vector<8x32xf32>
    %24 = arith.mulf %19, %23 : vector<8x32xf32>
    %25 = vector.broadcast %5 : vector<1x32xf32> to vector<8x32xf32>
    %26 = arith.mulf %24, %25 : vector<8x32xf32>
    %27 = vector.broadcast %6 : vector<1x32xf32> to vector<8x32xf32>
    %28 = arith.addf %26, %27 : vector<8x32xf32>
    %29 = arith.truncf %28 : vector<8x32xf32> to vector<8x32xbf16>
    %c0_12 = arith.constant 0 : index
    %c0_13 = arith.constant 0 : index
    %c0_14 = arith.constant 0 : index
    %30 = vector.load %arg5[%c0_12, %c0_13, %c0_14] : memref<1x8x32xbf16, #tpu.memory_space<vmem>>, vector<1x8x32xbf16>
    %31 = vector.shape_cast %30 : vector<1x8x32xbf16> to vector<8x32xbf16>
    %32 = vector.shape_cast %29 : vector<8x32xbf16> to vector<1x8x32xbf16>
    tpu.vector_store %arg5[%c0_12, %c0_13, %c0_14], %32 {strides = array<i32>} : memref<1x8x32xbf16, #tpu.memory_space<vmem>>, vector<1x8x32xbf16>,
    return
  }
  func.func @transform_0(%arg0: i32) -> (i32, i32, i32) {
    %c0_i32 = arith.constant 0 : i32
    %c0_i32_0 = arith.constant 0 : i32
    %c0_i32_1 = arith.constant 0 : i32
    return %arg0, %c0_i32, %c0_i32_0 : i32, i32, i32
  }
  func.func @transform_1(%arg0: i32) -> (i32, i32) {
    %c0_i32 = arith.constant 0 : i32
    %c0_i32_0 = arith.constant 0 : i32
    %c0_i32_1 = arith.constant 0 : i32
    return %c0_i32, %c0_i32_0 : i32, i32
  }
  func.func @transform_2(%arg0: i32) -> (i32, i32) {
    %c0_i32 = arith.constant 0 : i32
    %c0_i32_0 = arith.constant 0 : i32
    %c0_i32_1 = arith.constant 0 : i32
    return %c0_i32, %c0_i32_0 : i32, i32
  }
  func.func @transform_3(%arg0: i32) -> (i32, i32) {
    %c0_i32 = arith.constant 0 : i32
    %c0_i32_0 = arith.constant 0 : i32
    %c0_i32_1 = arith.constant 0 : i32
    return %c0_i32, %c0_i32_0 : i32, i32
  }
  func.func @transform_4(%arg0: i32) -> (i32, i32, i32) {
    %c0_i32 = arith.constant 0 : i32
    %c0_i32_0 = arith.constant 0 : i32
    %c0_i32_1 = arith.constant 0 : i32
    return %arg0, %c0_i32, %c0_i32_0 : i32, i32, i32
  }
}

module attributes {stable_mosaic.version = 11 : i64} {
  func.func @_enc_layer_kernel(%arg0: i32, %arg1: memref<1x8x32xbf16, #tpu.memory_space<vmem>>, %arg2: memref<1x8x1xf32, #tpu.memory_space<vmem>>, %arg3: memref<1x1x8xf32, #tpu.memory_space<vmem>>, %arg4: memref<32x96xbf16, #tpu.memory_space<vmem>>, %arg5: memref<32x32xbf16, #tpu.memory_space<vmem>>, %arg6: memref<1x32xf32, #tpu.memory_space<vmem>>, %arg7: memref<1x32xf32, #tpu.memory_space<vmem>>, %arg8: memref<1x32xf32, #tpu.memory_space<vmem>>, %arg9: memref<32x128xbf16, #tpu.memory_space<vmem>>, %arg10: memref<1x128xf32, #tpu.memory_space<vmem>>, %arg11: memref<128x32xbf16, #tpu.memory_space<vmem>>, %arg12: memref<1x32xf32, #tpu.memory_space<vmem>>, %arg13: memref<1x32xf32, #tpu.memory_space<vmem>>, %arg14: memref<1x32xf32, #tpu.memory_space<vmem>>, %arg15: memref<1x8x32xbf16, #tpu.memory_space<vmem>>, %arg16: memref<8x32xf32, #tpu.memory_space<vmem>>) attributes {dimension_semantics = [#tpu.dimension_semantics<parallel>], iteration_bounds = array<i64: 2>, scalar_prefetch = 0 : i64, scratch_operands = 1 : i64, tpu.core_type = #tpu.core_type<tc>, window_params = [{transform_indices = @transform_0, window_bounds = array<i64: 1, 8, 32>}, {transform_indices = @transform_1, window_bounds = array<i64: 1, 8, 1>}, {transform_indices = @transform_2, window_bounds = array<i64: 1, 1, 8>}, {pipeline_mode = #tpu.pipeline_mode<synchronous>, transform_indices = @transform_3, window_bounds = array<i64: 32, 96>}, {pipeline_mode = #tpu.pipeline_mode<synchronous>, transform_indices = @transform_4, window_bounds = array<i64: 32, 32>}, {pipeline_mode = #tpu.pipeline_mode<synchronous>, transform_indices = @transform_5, window_bounds = array<i64: 1, 32>}, {pipeline_mode = #tpu.pipeline_mode<synchronous>, transform_indices = @transform_6, window_bounds = array<i64: 1, 32>}, {pipeline_mode = #tpu.pipeline_mode<synchronous>, transform_indices = @transform_7, window_bounds = array<i64: 1, 32>}, {pipeline_mode = #tpu.pipeline_mode<synchronous>, transform_indices = @transform_8, window_bounds = array<i64: 32, 128>}, {pipeline_mode = #tpu.pipeline_mode<synchronous>, transform_indices = @transform_9, window_bounds = array<i64: 1, 128>}, {pipeline_mode = #tpu.pipeline_mode<synchronous>, transform_indices = @transform_10, window_bounds = array<i64: 128, 32>}, {pipeline_mode = #tpu.pipeline_mode<synchronous>, transform_indices = @transform_11, window_bounds = array<i64: 1, 32>}, {pipeline_mode = #tpu.pipeline_mode<synchronous>, transform_indices = @transform_12, window_bounds = array<i64: 1, 32>}, {pipeline_mode = #tpu.pipeline_mode<synchronous>, transform_indices = @transform_13, window_bounds = array<i64: 1, 32>}, {transform_indices = @transform_14, window_bounds = array<i64: 1, 8, 32>}]} {
    %c0 = arith.constant 0 : index
    %c0_0 = arith.constant 0 : index
    %c0_1 = arith.constant 0 : index
    %0 = vector.load %arg1[%c0, %c0_0, %c0_1] : memref<1x8x32xbf16, #tpu.memory_space<vmem>>, vector<1x8x32xbf16>
    %1 = vector.shape_cast %0 : vector<1x8x32xbf16> to vector<8x32xbf16>
    %c0_2 = arith.constant 0 : index
    %c0_3 = arith.constant 0 : index
    %2 = vector.load %arg4[%c0_2, %c0_3] : memref<32x96xbf16, #tpu.memory_space<vmem>>, vector<32x96xbf16>
    %cst = arith.constant dense<0.000000e+00> : vector<8x96xf32>
    %3 = tpu.matmul %1, %2, %cst {dimension_numbers = #tpu.dot_dimension_numbers<[1], [0], [0], [1], [0, 0, 1, 1], [], []>} : vector<8x32xbf16>, vector<32x96xbf16>, vector<8x96xf32> -> vector<8x96xf32>
    %4 = vector.extract_strided_slice %3 {offsets = [0, 0], sizes = [8, 32], strides = [1, 1]} : vector<8x96xf32> to vector<8x32xf32>
    %5 = vector.extract_strided_slice %3 {offsets = [0, 32], sizes = [8, 64], strides = [1, 1]} : vector<8x96xf32> to vector<8x64xf32>
    %c0_4 = arith.constant 0 : index
    %c0_5 = arith.constant 0 : index
    %c0_6 = arith.constant 0 : index
    %6 = vector.load %arg2[%c0_4, %c0_5, %c0_6] : memref<1x8x1xf32, #tpu.memory_space<vmem>>, vector<1x8x1xf32>
    %7 = vector.shape_cast %6 : vector<1x8x1xf32> to vector<8x1xf32>
    %c0_7 = arith.constant 0 : index
    %c0_8 = arith.constant 0 : index
    %c0_9 = arith.constant 0 : index
    %8 = vector.load %arg3[%c0_7, %c0_8, %c0_9] : memref<1x1x8xf32, #tpu.memory_space<vmem>>, vector<1x1x8xf32>
    %9 = vector.shape_cast %8 : vector<1x1x8xf32> to vector<1x8xf32>
    %c0_10 = arith.constant 0 : index
    %c0_11 = arith.constant 0 : index
    %10 = vector.load %arg5[%c0_10, %c0_11] : memref<32x32xbf16, #tpu.memory_space<vmem>>, vector<32x32xbf16>
    %c0_12 = arith.constant 0 : index
    %c0_13 = arith.constant 0 : index
    %11 = vector.load %arg6[%c0_12, %c0_13] : memref<1x32xf32, #tpu.memory_space<vmem>>, vector<1x32xf32>
    %c0_14 = arith.constant 0 : index
    %c0_15 = arith.constant 0 : index
    %12 = vector.load %arg7[%c0_14, %c0_15] : memref<1x32xf32, #tpu.memory_space<vmem>>, vector<1x32xf32>
    %c0_16 = arith.constant 0 : index
    %c0_17 = arith.constant 0 : index
    %13 = vector.load %arg8[%c0_16, %c0_17] : memref<1x32xf32, #tpu.memory_space<vmem>>, vector<1x32xf32>
    %14 = vector.broadcast %7 : vector<8x1xf32> to vector<8x8xf32>
    %15 = vector.broadcast %9 : vector<1x8xf32> to vector<8x8xf32>
    %16 = arith.addf %14, %15 : vector<8x8xf32>
    %17 = arith.truncf %4 : vector<8x32xf32> to vector<8x32xbf16>
    %18 = arith.truncf %5 : vector<8x64xf32> to vector<8x64xbf16>
    %19 = vector.extract_strided_slice %17 {offsets = [0, 0], sizes = [8, 8], strides = [1, 1]} : vector<8x32xbf16> to vector<8x8xbf16>
    %20 = vector.extract_strided_slice %18 {offsets = [0, 0], sizes = [8, 8], strides = [1, 1]} : vector<8x64xbf16> to vector<8x8xbf16>
    %21 = vector.extract_strided_slice %18 {offsets = [0, 32], sizes = [8, 8], strides = [1, 1]} : vector<8x64xbf16> to vector<8x8xbf16>
    %cst_18 = arith.constant dense<0.000000e+00> : vector<8x8xf32>
    %22 = tpu.matmul %19, %20, %cst_18 {dimension_numbers = #tpu.dot_dimension_numbers<[1], [1], [0], [0], [0, 0, 1, 0], [], []>} : vector<8x8xbf16>, vector<8x8xbf16>, vector<8x8xf32> -> vector<8x8xf32>
    %cst_19 = arith.constant 5.65685415 : f32
    %23 = vector.broadcast %cst_19 : f32 to vector<8x8xf32>
    %24 = arith.mulf %22, %23 : vector<8x8xf32>
    %25 = arith.addf %24, %16 : vector<8x8xf32>
    %cst_20 = arith.constant dense<0xFF800000> : vector<8xf32>
    %26 = vector.multi_reduction <maximumf>, %25, %cst_20 [1] : vector<8x8xf32> to vector<8xf32>
    %27 = vector.shape_cast %26 : vector<8xf32> to vector<8x1xf32>
    %28 = vector.broadcast %27 : vector<8x1xf32> to vector<8x8xf32>
    %29 = arith.subf %25, %28 : vector<8x8xf32>
    %30 = math.exp %29 : vector<8x8xf32>
    %cst_21 = arith.constant dense<0.000000e+00> : vector<8xf32>
    %31 = vector.multi_reduction <add>, %30, %cst_21 [1] : vector<8x8xf32> to vector<8xf32>
    %32 = vector.shape_cast %31 : vector<8xf32> to vector<8x1xf32>
    %33 = tpu.reciprocal %32 {approx = true} : vector<8x1xf32> -> vector<8x1xf32>
    %34 = vector.broadcast %33 : vector<8x1xf32> to vector<8x8xf32>
    %35 = arith.mulf %30, %34 : vector<8x8xf32>
    %36 = arith.truncf %35 : vector<8x8xf32> to vector<8x8xbf16>
    %cst_22 = arith.constant dense<0.000000e+00> : vector<8x8xf32>
    %37 = tpu.matmul %36, %21, %cst_22 {dimension_numbers = #tpu.dot_dimension_numbers<[1], [0], [0], [1], [0, 0, 1, 1], [], []>} : vector<8x8xbf16>, vector<8x8xbf16>, vector<8x8xf32> -> vector<8x8xf32>
    %c0_23 = arith.constant 0 : index
    %c0_24 = arith.constant 0 : index
    %38 = vector.load %arg16[%c0_23, %c0_24] : memref<8x32xf32, #tpu.memory_space<vmem>>, vector<8x8xf32>
    tpu.vector_store %arg16[%c0_23, %c0_24], %37 {strides = array<i32>} : memref<8x32xf32, #tpu.memory_space<vmem>>, vector<8x8xf32>,
    %39 = vector.extract_strided_slice %17 {offsets = [0, 8], sizes = [8, 8], strides = [1, 1]} : vector<8x32xbf16> to vector<8x8xbf16>
    %40 = vector.extract_strided_slice %18 {offsets = [0, 8], sizes = [8, 8], strides = [1, 1]} : vector<8x64xbf16> to vector<8x8xbf16>
    %41 = vector.extract_strided_slice %18 {offsets = [0, 40], sizes = [8, 8], strides = [1, 1]} : vector<8x64xbf16> to vector<8x8xbf16>
    %cst_25 = arith.constant dense<0.000000e+00> : vector<8x8xf32>
    %42 = tpu.matmul %39, %40, %cst_25 {dimension_numbers = #tpu.dot_dimension_numbers<[1], [1], [0], [0], [0, 0, 1, 0], [], []>} : vector<8x8xbf16>, vector<8x8xbf16>, vector<8x8xf32> -> vector<8x8xf32>
    %cst_26 = arith.constant 5.65685415 : f32
    %43 = vector.broadcast %cst_26 : f32 to vector<8x8xf32>
    %44 = arith.mulf %42, %43 : vector<8x8xf32>
    %45 = arith.addf %44, %16 : vector<8x8xf32>
    %cst_27 = arith.constant dense<0xFF800000> : vector<8xf32>
    %46 = vector.multi_reduction <maximumf>, %45, %cst_27 [1] : vector<8x8xf32> to vector<8xf32>
    %47 = vector.shape_cast %46 : vector<8xf32> to vector<8x1xf32>
    %48 = vector.broadcast %47 : vector<8x1xf32> to vector<8x8xf32>
    %49 = arith.subf %45, %48 : vector<8x8xf32>
    %50 = math.exp %49 : vector<8x8xf32>
    %cst_28 = arith.constant dense<0.000000e+00> : vector<8xf32>
    %51 = vector.multi_reduction <add>, %50, %cst_28 [1] : vector<8x8xf32> to vector<8xf32>
    %52 = vector.shape_cast %51 : vector<8xf32> to vector<8x1xf32>
    %53 = tpu.reciprocal %52 {approx = true} : vector<8x1xf32> -> vector<8x1xf32>
    %54 = vector.broadcast %53 : vector<8x1xf32> to vector<8x8xf32>
    %55 = arith.mulf %50, %54 : vector<8x8xf32>
    %56 = arith.truncf %55 : vector<8x8xf32> to vector<8x8xbf16>
    %cst_29 = arith.constant dense<0.000000e+00> : vector<8x8xf32>
    %57 = tpu.matmul %56, %41, %cst_29 {dimension_numbers = #tpu.dot_dimension_numbers<[1], [0], [0], [1], [0, 0, 1, 1], [], []>} : vector<8x8xbf16>, vector<8x8xbf16>, vector<8x8xf32> -> vector<8x8xf32>
    %c0_30 = arith.constant 0 : index
    %c8 = arith.constant 8 : index
    %58 = vector.load %arg16[%c0_30, %c8] : memref<8x32xf32, #tpu.memory_space<vmem>>, vector<8x8xf32>
    tpu.vector_store %arg16[%c0_30, %c8], %57 {strides = array<i32>} : memref<8x32xf32, #tpu.memory_space<vmem>>, vector<8x8xf32>,
    %59 = vector.extract_strided_slice %17 {offsets = [0, 16], sizes = [8, 8], strides = [1, 1]} : vector<8x32xbf16> to vector<8x8xbf16>
    %60 = vector.extract_strided_slice %18 {offsets = [0, 16], sizes = [8, 8], strides = [1, 1]} : vector<8x64xbf16> to vector<8x8xbf16>
    %61 = vector.extract_strided_slice %18 {offsets = [0, 48], sizes = [8, 8], strides = [1, 1]} : vector<8x64xbf16> to vector<8x8xbf16>
    %cst_31 = arith.constant dense<0.000000e+00> : vector<8x8xf32>
    %62 = tpu.matmul %59, %60, %cst_31 {dimension_numbers = #tpu.dot_dimension_numbers<[1], [1], [0], [0], [0, 0, 1, 0], [], []>} : vector<8x8xbf16>, vector<8x8xbf16>, vector<8x8xf32> -> vector<8x8xf32>
    %cst_32 = arith.constant 5.65685415 : f32
    %63 = vector.broadcast %cst_32 : f32 to vector<8x8xf32>
    %64 = arith.mulf %62, %63 : vector<8x8xf32>
    %65 = arith.addf %64, %16 : vector<8x8xf32>
    %cst_33 = arith.constant dense<0xFF800000> : vector<8xf32>
    %66 = vector.multi_reduction <maximumf>, %65, %cst_33 [1] : vector<8x8xf32> to vector<8xf32>
    %67 = vector.shape_cast %66 : vector<8xf32> to vector<8x1xf32>
    %68 = vector.broadcast %67 : vector<8x1xf32> to vector<8x8xf32>
    %69 = arith.subf %65, %68 : vector<8x8xf32>
    %70 = math.exp %69 : vector<8x8xf32>
    %cst_34 = arith.constant dense<0.000000e+00> : vector<8xf32>
    %71 = vector.multi_reduction <add>, %70, %cst_34 [1] : vector<8x8xf32> to vector<8xf32>
    %72 = vector.shape_cast %71 : vector<8xf32> to vector<8x1xf32>
    %73 = tpu.reciprocal %72 {approx = true} : vector<8x1xf32> -> vector<8x1xf32>
    %74 = vector.broadcast %73 : vector<8x1xf32> to vector<8x8xf32>
    %75 = arith.mulf %70, %74 : vector<8x8xf32>
    %76 = arith.truncf %75 : vector<8x8xf32> to vector<8x8xbf16>
    %cst_35 = arith.constant dense<0.000000e+00> : vector<8x8xf32>
    %77 = tpu.matmul %76, %61, %cst_35 {dimension_numbers = #tpu.dot_dimension_numbers<[1], [0], [0], [1], [0, 0, 1, 1], [], []>} : vector<8x8xbf16>, vector<8x8xbf16>, vector<8x8xf32> -> vector<8x8xf32>
    %c0_36 = arith.constant 0 : index
    %c16 = arith.constant 16 : index
    %78 = vector.load %arg16[%c0_36, %c16] : memref<8x32xf32, #tpu.memory_space<vmem>>, vector<8x8xf32>
    tpu.vector_store %arg16[%c0_36, %c16], %77 {strides = array<i32>} : memref<8x32xf32, #tpu.memory_space<vmem>>, vector<8x8xf32>,
    %79 = vector.extract_strided_slice %17 {offsets = [0, 24], sizes = [8, 8], strides = [1, 1]} : vector<8x32xbf16> to vector<8x8xbf16>
    %80 = vector.extract_strided_slice %18 {offsets = [0, 24], sizes = [8, 8], strides = [1, 1]} : vector<8x64xbf16> to vector<8x8xbf16>
    %81 = vector.extract_strided_slice %18 {offsets = [0, 56], sizes = [8, 8], strides = [1, 1]} : vector<8x64xbf16> to vector<8x8xbf16>
    %cst_37 = arith.constant dense<0.000000e+00> : vector<8x8xf32>
    %82 = tpu.matmul %79, %80, %cst_37 {dimension_numbers = #tpu.dot_dimension_numbers<[1], [1], [0], [0], [0, 0, 1, 0], [], []>} : vector<8x8xbf16>, vector<8x8xbf16>, vector<8x8xf32> -> vector<8x8xf32>
    %cst_38 = arith.constant 5.65685415 : f32
    %83 = vector.broadcast %cst_38 : f32 to vector<8x8xf32>
    %84 = arith.mulf %82, %83 : vector<8x8xf32>
    %85 = arith.addf %84, %16 : vector<8x8xf32>
    %cst_39 = arith.constant dense<0xFF800000> : vector<8xf32>
    %86 = vector.multi_reduction <maximumf>, %85, %cst_39 [1] : vector<8x8xf32> to vector<8xf32>
    %87 = vector.shape_cast %86 : vector<8xf32> to vector<8x1xf32>
    %88 = vector.broadcast %87 : vector<8x1xf32> to vector<8x8xf32>
    %89 = arith.subf %85, %88 : vector<8x8xf32>
    %90 = math.exp %89 : vector<8x8xf32>
    %cst_40 = arith.constant dense<0.000000e+00> : vector<8xf32>
    %91 = vector.multi_reduction <add>, %90, %cst_40 [1] : vector<8x8xf32> to vector<8xf32>
    %92 = vector.shape_cast %91 : vector<8xf32> to vector<8x1xf32>
    %93 = tpu.reciprocal %92 {approx = true} : vector<8x1xf32> -> vector<8x1xf32>
    %94 = vector.broadcast %93 : vector<8x1xf32> to vector<8x8xf32>
    %95 = arith.mulf %90, %94 : vector<8x8xf32>
    %96 = arith.truncf %95 : vector<8x8xf32> to vector<8x8xbf16>
    %cst_41 = arith.constant dense<0.000000e+00> : vector<8x8xf32>
    %97 = tpu.matmul %96, %81, %cst_41 {dimension_numbers = #tpu.dot_dimension_numbers<[1], [0], [0], [1], [0, 0, 1, 1], [], []>} : vector<8x8xbf16>, vector<8x8xbf16>, vector<8x8xf32> -> vector<8x8xf32>
    %c0_42 = arith.constant 0 : index
    %c24 = arith.constant 24 : index
    %98 = vector.load %arg16[%c0_42, %c24] : memref<8x32xf32, #tpu.memory_space<vmem>>, vector<8x8xf32>
    tpu.vector_store %arg16[%c0_42, %c24], %97 {strides = array<i32>} : memref<8x32xf32, #tpu.memory_space<vmem>>, vector<8x8xf32>,
    %c0_43 = arith.constant 0 : index
    %c0_44 = arith.constant 0 : index
    %99 = vector.load %arg16[%c0_43, %c0_44] : memref<8x32xf32, #tpu.memory_space<vmem>>, vector<8x32xf32>
    %100 = arith.truncf %99 : vector<8x32xf32> to vector<8x32xbf16>
    %cst_45 = arith.constant dense<0.000000e+00> : vector<8x32xf32>
    %101 = tpu.matmul %100, %10, %cst_45 {dimension_numbers = #tpu.dot_dimension_numbers<[1], [0], [0], [1], [0, 0, 1, 1], [], []>} : vector<8x32xbf16>, vector<32x32xbf16>, vector<8x32xf32> -> vector<8x32xf32>
    %102 = vector.broadcast %11 : vector<1x32xf32> to vector<8x32xf32>
    %103 = arith.addf %101, %102 : vector<8x32xf32>
    %104 = arith.addf %103, %4 : vector<8x32xf32>
    %cst_46 = arith.constant dense<0.000000e+00> : vector<8xf32>
    %105 = vector.multi_reduction <add>, %104, %cst_46 [1] : vector<8x32xf32> to vector<8xf32>
    %106 = vector.shape_cast %105 : vector<8xf32> to vector<8x1xf32>
    %cst_47 = arith.constant 3.200000e+01 : f32
    %107 = vector.broadcast %cst_47 : f32 to vector<8x1xf32>
    %108 = arith.divf %106, %107 : vector<8x1xf32>
    %109 = vector.broadcast %108 : vector<8x1xf32> to vector<8x32xf32>
    %110 = arith.subf %104, %109 : vector<8x32xf32>
    %111 = arith.mulf %110, %110 : vector<8x32xf32>
    %cst_48 = arith.constant dense<0.000000e+00> : vector<8xf32>
    %112 = vector.multi_reduction <add>, %111, %cst_48 [1] : vector<8x32xf32> to vector<8xf32>
    %113 = vector.shape_cast %112 : vector<8xf32> to vector<8x1xf32>
    %cst_49 = arith.constant 3.200000e+01 : f32
    %114 = vector.broadcast %cst_49 : f32 to vector<8x1xf32>
    %115 = arith.divf %113, %114 : vector<8x1xf32>
    %116 = vector.broadcast %108 : vector<8x1xf32> to vector<8x32xf32>
    %117 = arith.subf %104, %116 : vector<8x32xf32>
    %cst_50 = arith.constant 9.99999997E-7 : f32
    %118 = vector.broadcast %cst_50 : f32 to vector<8x1xf32>
    %119 = arith.addf %115, %118 : vector<8x1xf32>
    %120 = math.rsqrt %119 : vector<8x1xf32>
    %121 = vector.broadcast %120 : vector<8x1xf32> to vector<8x32xf32>
    %122 = arith.mulf %117, %121 : vector<8x32xf32>
    %123 = vector.broadcast %12 : vector<1x32xf32> to vector<8x32xf32>
    %124 = arith.mulf %122, %123 : vector<8x32xf32>
    %125 = vector.broadcast %13 : vector<1x32xf32> to vector<8x32xf32>
    %126 = arith.addf %124, %125 : vector<8x32xf32>
    %c0_51 = arith.constant 0 : index
    %c0_52 = arith.constant 0 : index
    %127 = vector.load %arg9[%c0_51, %c0_52] : memref<32x128xbf16, #tpu.memory_space<vmem>>, vector<32x128xbf16>
    %c0_53 = arith.constant 0 : index
    %c0_54 = arith.constant 0 : index
    %128 = vector.load %arg10[%c0_53, %c0_54] : memref<1x128xf32, #tpu.memory_space<vmem>>, vector<1x128xf32>
    %c0_55 = arith.constant 0 : index
    %c0_56 = arith.constant 0 : index
    %129 = vector.load %arg11[%c0_55, %c0_56] : memref<128x32xbf16, #tpu.memory_space<vmem>>, vector<128x32xbf16>
    %c0_57 = arith.constant 0 : index
    %c0_58 = arith.constant 0 : index
    %130 = vector.load %arg12[%c0_57, %c0_58] : memref<1x32xf32, #tpu.memory_space<vmem>>, vector<1x32xf32>
    %c0_59 = arith.constant 0 : index
    %c0_60 = arith.constant 0 : index
    %131 = vector.load %arg13[%c0_59, %c0_60] : memref<1x32xf32, #tpu.memory_space<vmem>>, vector<1x32xf32>
    %c0_61 = arith.constant 0 : index
    %c0_62 = arith.constant 0 : index
    %132 = vector.load %arg14[%c0_61, %c0_62] : memref<1x32xf32, #tpu.memory_space<vmem>>, vector<1x32xf32>
    %133 = arith.truncf %126 : vector<8x32xf32> to vector<8x32xbf16>
    %cst_63 = arith.constant dense<0.000000e+00> : vector<8x128xf32>
    %134 = tpu.matmul %133, %127, %cst_63 {dimension_numbers = #tpu.dot_dimension_numbers<[1], [0], [0], [1], [0, 0, 1, 1], [], []>} : vector<8x32xbf16>, vector<32x128xbf16>, vector<8x128xf32> -> vector<8x128xf32>
    %135 = vector.broadcast %128 : vector<1x128xf32> to vector<8x128xf32>
    %136 = arith.addf %134, %135 : vector<8x128xf32>
    %cst_64 = arith.constant 0.000000e+00 : f32
    %137 = vector.broadcast %cst_64 : f32 to vector<8x128xf32>
    %138 = arith.maximumf %136, %137 : vector<8x128xf32>
    %139 = arith.truncf %138 : vector<8x128xf32> to vector<8x128xbf16>
    %cst_65 = arith.constant dense<0.000000e+00> : vector<8x32xf32>
    %140 = tpu.matmul %139, %129, %cst_65 {dimension_numbers = #tpu.dot_dimension_numbers<[1], [0], [0], [1], [0, 0, 1, 1], [], []>} : vector<8x128xbf16>, vector<128x32xbf16>, vector<8x32xf32> -> vector<8x32xf32>
    %141 = vector.broadcast %130 : vector<1x32xf32> to vector<8x32xf32>
    %142 = arith.addf %140, %141 : vector<8x32xf32>
    %143 = arith.addf %142, %126 : vector<8x32xf32>
    %cst_66 = arith.constant dense<0.000000e+00> : vector<8xf32>
    %144 = vector.multi_reduction <add>, %143, %cst_66 [1] : vector<8x32xf32> to vector<8xf32>
    %145 = vector.shape_cast %144 : vector<8xf32> to vector<8x1xf32>
    %cst_67 = arith.constant 3.200000e+01 : f32
    %146 = vector.broadcast %cst_67 : f32 to vector<8x1xf32>
    %147 = arith.divf %145, %146 : vector<8x1xf32>
    %148 = vector.broadcast %147 : vector<8x1xf32> to vector<8x32xf32>
    %149 = arith.subf %143, %148 : vector<8x32xf32>
    %150 = arith.mulf %149, %149 : vector<8x32xf32>
    %cst_68 = arith.constant dense<0.000000e+00> : vector<8xf32>
    %151 = vector.multi_reduction <add>, %150, %cst_68 [1] : vector<8x32xf32> to vector<8xf32>
    %152 = vector.shape_cast %151 : vector<8xf32> to vector<8x1xf32>
    %cst_69 = arith.constant 3.200000e+01 : f32
    %153 = vector.broadcast %cst_69 : f32 to vector<8x1xf32>
    %154 = arith.divf %152, %153 : vector<8x1xf32>
    %155 = vector.broadcast %147 : vector<8x1xf32> to vector<8x32xf32>
    %156 = arith.subf %143, %155 : vector<8x32xf32>
    %cst_70 = arith.constant 9.99999997E-7 : f32
    %157 = vector.broadcast %cst_70 : f32 to vector<8x1xf32>
    %158 = arith.addf %154, %157 : vector<8x1xf32>
    %159 = math.rsqrt %158 : vector<8x1xf32>
    %160 = vector.broadcast %159 : vector<8x1xf32> to vector<8x32xf32>
    %161 = arith.mulf %156, %160 : vector<8x32xf32>
    %162 = vector.broadcast %131 : vector<1x32xf32> to vector<8x32xf32>
    %163 = arith.mulf %161, %162 : vector<8x32xf32>
    %164 = vector.broadcast %132 : vector<1x32xf32> to vector<8x32xf32>
    %165 = arith.addf %163, %164 : vector<8x32xf32>
    %166 = arith.truncf %165 : vector<8x32xf32> to vector<8x32xbf16>
    %c0_71 = arith.constant 0 : index
    %c0_72 = arith.constant 0 : index
    %c0_73 = arith.constant 0 : index
    %167 = vector.load %arg15[%c0_71, %c0_72, %c0_73] : memref<1x8x32xbf16, #tpu.memory_space<vmem>>, vector<1x8x32xbf16>
    %168 = vector.shape_cast %167 : vector<1x8x32xbf16> to vector<8x32xbf16>
    %169 = vector.shape_cast %166 : vector<8x32xbf16> to vector<1x8x32xbf16>
    tpu.vector_store %arg15[%c0_71, %c0_72, %c0_73], %169 {strides = array<i32>} : memref<1x8x32xbf16, #tpu.memory_space<vmem>>, vector<1x8x32xbf16>,
    return
  }
  func.func @transform_0(%arg0: i32) -> (i32, i32, i32) {
    %c0_i32 = arith.constant 0 : i32
    %c0_i32_0 = arith.constant 0 : i32
    %c0_i32_1 = arith.constant 0 : i32
    return %arg0, %c0_i32, %c0_i32_0 : i32, i32, i32
  }
  func.func @transform_1(%arg0: i32) -> (i32, i32, i32) {
    %c0_i32 = arith.constant 0 : i32
    %c0_i32_0 = arith.constant 0 : i32
    %c0_i32_1 = arith.constant 0 : i32
    return %arg0, %c0_i32, %c0_i32_0 : i32, i32, i32
  }
  func.func @transform_2(%arg0: i32) -> (i32, i32, i32) {
    %c0_i32 = arith.constant 0 : i32
    %c0_i32_0 = arith.constant 0 : i32
    %c0_i32_1 = arith.constant 0 : i32
    return %arg0, %c0_i32, %c0_i32_0 : i32, i32, i32
  }
  func.func @transform_3(%arg0: i32) -> (i32, i32) {
    %c0_i32 = arith.constant 0 : i32
    %c0_i32_0 = arith.constant 0 : i32
    %c0_i32_1 = arith.constant 0 : i32
    return %c0_i32, %c0_i32_0 : i32, i32
  }
  func.func @transform_4(%arg0: i32) -> (i32, i32) {
    %c0_i32 = arith.constant 0 : i32
    %c0_i32_0 = arith.constant 0 : i32
    %c0_i32_1 = arith.constant 0 : i32
    return %c0_i32, %c0_i32_0 : i32, i32
  }
  func.func @transform_5(%arg0: i32) -> (i32, i32) {
    %c0_i32 = arith.constant 0 : i32
    %c0_i32_0 = arith.constant 0 : i32
    %c0_i32_1 = arith.constant 0 : i32
    return %c0_i32, %c0_i32_0 : i32, i32
  }
  func.func @transform_6(%arg0: i32) -> (i32, i32) {
    %c0_i32 = arith.constant 0 : i32
    %c0_i32_0 = arith.constant 0 : i32
    %c0_i32_1 = arith.constant 0 : i32
    return %c0_i32, %c0_i32_0 : i32, i32
  }
  func.func @transform_7(%arg0: i32) -> (i32, i32) {
    %c0_i32 = arith.constant 0 : i32
    %c0_i32_0 = arith.constant 0 : i32
    %c0_i32_1 = arith.constant 0 : i32
    return %c0_i32, %c0_i32_0 : i32, i32
  }
  func.func @transform_8(%arg0: i32) -> (i32, i32) {
    %c0_i32 = arith.constant 0 : i32
    %c0_i32_0 = arith.constant 0 : i32
    %c0_i32_1 = arith.constant 0 : i32
    return %c0_i32, %c0_i32_0 : i32, i32
  }
  func.func @transform_9(%arg0: i32) -> (i32, i32) {
    %c0_i32 = arith.constant 0 : i32
    %c0_i32_0 = arith.constant 0 : i32
    %c0_i32_1 = arith.constant 0 : i32
    return %c0_i32, %c0_i32_0 : i32, i32
  }
  func.func @transform_10(%arg0: i32) -> (i32, i32) {
    %c0_i32 = arith.constant 0 : i32
    %c0_i32_0 = arith.constant 0 : i32
    %c0_i32_1 = arith.constant 0 : i32
    return %c0_i32, %c0_i32_0 : i32, i32
  }
  func.func @transform_11(%arg0: i32) -> (i32, i32) {
    %c0_i32 = arith.constant 0 : i32
    %c0_i32_0 = arith.constant 0 : i32
    %c0_i32_1 = arith.constant 0 : i32
    return %c0_i32, %c0_i32_0 : i32, i32
  }
  func.func @transform_12(%arg0: i32) -> (i32, i32) {
    %c0_i32 = arith.constant 0 : i32
    %c0_i32_0 = arith.constant 0 : i32
    %c0_i32_1 = arith.constant 0 : i32
    return %c0_i32, %c0_i32_0 : i32, i32
  }
  func.func @transform_13(%arg0: i32) -> (i32, i32) {
    %c0_i32 = arith.constant 0 : i32
    %c0_i32_0 = arith.constant 0 : i32
    %c0_i32_1 = arith.constant 0 : i32
    return %c0_i32, %c0_i32_0 : i32, i32
  }
  func.func @transform_14(%arg0: i32) -> (i32, i32, i32) {
    %c0_i32 = arith.constant 0 : i32
    %c0_i32_0 = arith.constant 0 : i32
    %c0_i32_1 = arith.constant 0 : i32
    return %arg0, %c0_i32, %c0_i32_0 : i32, i32, i32
  }
}

module attributes {stable_mosaic.version = 11 : i64} {
  func.func @_head_kernel(%arg0: memref<16x32xbf16, #tpu.memory_space<vmem>>, %arg1: memref<64x32xbf16, #tpu.memory_space<vmem>>, %arg2: memref<1x64xf32, #tpu.memory_space<vmem>>, %arg3: memref<16x64xf32, #tpu.memory_space<vmem>>) attributes {dimension_semantics = [], scalar_prefetch = 0 : i64, scratch_operands = 0 : i64, tpu.core_type = #tpu.core_type<tc>} {
    %c0 = arith.constant 0 : index
    %c0_0 = arith.constant 0 : index
    %0 = vector.load %arg0[%c0, %c0_0] : memref<16x32xbf16, #tpu.memory_space<vmem>>, vector<16x32xbf16>
    %c0_1 = arith.constant 0 : index
    %c0_2 = arith.constant 0 : index
    %1 = vector.load %arg1[%c0_1, %c0_2] : memref<64x32xbf16, #tpu.memory_space<vmem>>, vector<64x32xbf16>
    %cst = arith.constant dense<0.000000e+00> : vector<16x64xf32>
    %2 = tpu.matmul %0, %1, %cst {dimension_numbers = #tpu.dot_dimension_numbers<[1], [1], [0], [0], [0, 0, 1, 0], [], []>} : vector<16x32xbf16>, vector<64x32xbf16>, vector<16x64xf32> -> vector<16x64xf32>
    %c0_3 = arith.constant 0 : index
    %c0_4 = arith.constant 0 : index
    %3 = vector.load %arg2[%c0_3, %c0_4] : memref<1x64xf32, #tpu.memory_space<vmem>>, vector<1x64xf32>
    %4 = vector.broadcast %3 : vector<1x64xf32> to vector<16x64xf32>
    %5 = arith.addf %2, %4 : vector<16x64xf32>
    %c0_5 = arith.constant 0 : index
    %c0_6 = arith.constant 0 : index
    %6 = vector.load %arg3[%c0_5, %c0_6] : memref<16x64xf32, #tpu.memory_space<vmem>>, vector<16x64xf32>
    tpu.vector_store %arg3[%c0_5, %c0_6], %5 {strides = array<i32>} : memref<16x64xf32, #tpu.memory_space<vmem>>, vector<16x64xf32>,
    return
  }
}

module attributes {stable_mosaic.version = 11 : i64} {
  func.func @_dec_layer_kernel(%arg0: i32, %arg1: memref<1x8x32xbf16, #tpu.memory_space<vmem>>, %arg2: memref<1x8x32xbf16, #tpu.memory_space<vmem>>, %arg3: memref<1x8x1xf32, #tpu.memory_space<vmem>>, %arg4: memref<1x1x8xf32, #tpu.memory_space<vmem>>, %arg5: memref<32x96xbf16, #tpu.memory_space<vmem>>, %arg6: memref<32x32xbf16, #tpu.memory_space<vmem>>, %arg7: memref<1x32xf32, #tpu.memory_space<vmem>>, %arg8: memref<1x32xf32, #tpu.memory_space<vmem>>, %arg9: memref<1x32xf32, #tpu.memory_space<vmem>>, %arg10: memref<32x32xbf16, #tpu.memory_space<vmem>>, %arg11: memref<32x64xbf16, #tpu.memory_space<vmem>>, %arg12: memref<32x32xbf16, #tpu.memory_space<vmem>>, %arg13: memref<1x32xf32, #tpu.memory_space<vmem>>, %arg14: memref<1x32xf32, #tpu.memory_space<vmem>>, %arg15: memref<1x32xf32, #tpu.memory_space<vmem>>, %arg16: memref<32x32xbf16, #tpu.memory_space<vmem>>, %arg17: memref<1x32xf32, #tpu.memory_space<vmem>>, %arg18: memref<1x8x32xbf16, #tpu.memory_space<vmem>>, %arg19: memref<8x32xf32, #tpu.memory_space<vmem>>) attributes {dimension_semantics = [#tpu.dimension_semantics<parallel>], iteration_bounds = array<i64: 2>, scalar_prefetch = 0 : i64, scratch_operands = 1 : i64, tpu.core_type = #tpu.core_type<tc>, window_params = [{transform_indices = @transform_0, window_bounds = array<i64: 1, 8, 32>}, {transform_indices = @transform_1, window_bounds = array<i64: 1, 8, 32>}, {transform_indices = @transform_2, window_bounds = array<i64: 1, 8, 1>}, {transform_indices = @transform_3, window_bounds = array<i64: 1, 1, 8>}, {pipeline_mode = #tpu.pipeline_mode<synchronous>, transform_indices = @transform_4, window_bounds = array<i64: 32, 96>}, {pipeline_mode = #tpu.pipeline_mode<synchronous>, transform_indices = @transform_5, window_bounds = array<i64: 32, 32>}, {pipeline_mode = #tpu.pipeline_mode<synchronous>, transform_indices = @transform_6, window_bounds = array<i64: 1, 32>}, {pipeline_mode = #tpu.pipeline_mode<synchronous>, transform_indices = @transform_7, window_bounds = array<i64: 1, 32>}, {pipeline_mode = #tpu.pipeline_mode<synchronous>, transform_indices = @transform_8, window_bounds = array<i64: 1, 32>}, {pipeline_mode = #tpu.pipeline_mode<synchronous>, transform_indices = @transform_9, window_bounds = array<i64: 32, 32>}, {pipeline_mode = #tpu.pipeline_mode<synchronous>, transform_indices = @transform_10, window_bounds = array<i64: 32, 64>}, {pipeline_mode = #tpu.pipeline_mode<synchronous>, transform_indices = @transform_11, window_bounds = array<i64: 32, 32>}, {pipeline_mode = #tpu.pipeline_mode<synchronous>, transform_indices = @transform_12, window_bounds = array<i64: 1, 32>}, {pipeline_mode = #tpu.pipeline_mode<synchronous>, transform_indices = @transform_13, window_bounds = array<i64: 1, 32>}, {pipeline_mode = #tpu.pipeline_mode<synchronous>, transform_indices = @transform_14, window_bounds = array<i64: 1, 32>}, {pipeline_mode = #tpu.pipeline_mode<synchronous>, transform_indices = @transform_15, window_bounds = array<i64: 32, 32>}, {pipeline_mode = #tpu.pipeline_mode<synchronous>, transform_indices = @transform_16, window_bounds = array<i64: 1, 32>}, {transform_indices = @transform_17, window_bounds = array<i64: 1, 8, 32>}]} {
    %c0 = arith.constant 0 : index
    %c0_0 = arith.constant 0 : index
    %c0_1 = arith.constant 0 : index
    %0 = vector.load %arg1[%c0, %c0_0, %c0_1] : memref<1x8x32xbf16, #tpu.memory_space<vmem>>, vector<1x8x32xbf16>
    %1 = vector.shape_cast %0 : vector<1x8x32xbf16> to vector<8x32xbf16>
    %c0_2 = arith.constant 0 : index
    %c0_3 = arith.constant 0 : index
    %2 = vector.load %arg5[%c0_2, %c0_3] : memref<32x96xbf16, #tpu.memory_space<vmem>>, vector<32x96xbf16>
    %cst = arith.constant dense<0.000000e+00> : vector<8x96xf32>
    %3 = tpu.matmul %1, %2, %cst {dimension_numbers = #tpu.dot_dimension_numbers<[1], [0], [0], [1], [0, 0, 1, 1], [], []>} : vector<8x32xbf16>, vector<32x96xbf16>, vector<8x96xf32> -> vector<8x96xf32>
    %4 = vector.extract_strided_slice %3 {offsets = [0, 0], sizes = [8, 32], strides = [1, 1]} : vector<8x96xf32> to vector<8x32xf32>
    %5 = vector.extract_strided_slice %3 {offsets = [0, 32], sizes = [8, 64], strides = [1, 1]} : vector<8x96xf32> to vector<8x64xf32>
    %c0_4 = arith.constant 0 : index
    %c0_5 = arith.constant 0 : index
    %c0_6 = arith.constant 0 : index
    %6 = vector.load %arg3[%c0_4, %c0_5, %c0_6] : memref<1x8x1xf32, #tpu.memory_space<vmem>>, vector<1x8x1xf32>
    %7 = vector.shape_cast %6 : vector<1x8x1xf32> to vector<8x1xf32>
    %c0_7 = arith.constant 0 : index
    %c0_8 = arith.constant 0 : index
    %c0_9 = arith.constant 0 : index
    %8 = vector.load %arg4[%c0_7, %c0_8, %c0_9] : memref<1x1x8xf32, #tpu.memory_space<vmem>>, vector<1x1x8xf32>
    %9 = vector.shape_cast %8 : vector<1x1x8xf32> to vector<1x8xf32>
    %c0_10 = arith.constant 0 : index
    %c0_11 = arith.constant 0 : index
    %10 = vector.load %arg6[%c0_10, %c0_11] : memref<32x32xbf16, #tpu.memory_space<vmem>>, vector<32x32xbf16>
    %c0_12 = arith.constant 0 : index
    %c0_13 = arith.constant 0 : index
    %11 = vector.load %arg7[%c0_12, %c0_13] : memref<1x32xf32, #tpu.memory_space<vmem>>, vector<1x32xf32>
    %c0_14 = arith.constant 0 : index
    %c0_15 = arith.constant 0 : index
    %12 = vector.load %arg8[%c0_14, %c0_15] : memref<1x32xf32, #tpu.memory_space<vmem>>, vector<1x32xf32>
    %c0_16 = arith.constant 0 : index
    %c0_17 = arith.constant 0 : index
    %13 = vector.load %arg9[%c0_16, %c0_17] : memref<1x32xf32, #tpu.memory_space<vmem>>, vector<1x32xf32>
    %14 = vector.broadcast %7 : vector<8x1xf32> to vector<8x8xf32>
    %15 = vector.broadcast %9 : vector<1x8xf32> to vector<8x8xf32>
    %16 = arith.addf %14, %15 : vector<8x8xf32>
    %17 = tpu.iota {dimensions = array<i32: 0>} : vector<8x8xi32>
    %18 = tpu.iota {dimensions = array<i32: 1>} : vector<8x8xi32>
    %19 = arith.cmpi sge, %17, %18 : vector<8x8xi32>
    %cst_18 = arith.constant 0.000000e+00 : f32
    %cst_19 = arith.constant -1.000000e+30 : f32
    %20 = vector.broadcast %cst_18 : f32 to vector<8x8xf32>
    %21 = vector.broadcast %cst_19 : f32 to vector<8x8xf32>
    %22 = arith.select %19, %20, %21 : vector<8x8xi1>, vector<8x8xf32>
    %23 = arith.addf %16, %22 : vector<8x8xf32>
    %24 = arith.truncf %4 : vector<8x32xf32> to vector<8x32xbf16>
    %25 = arith.truncf %5 : vector<8x64xf32> to vector<8x64xbf16>
    %26 = vector.extract_strided_slice %24 {offsets = [0, 0], sizes = [8, 8], strides = [1, 1]} : vector<8x32xbf16> to vector<8x8xbf16>
    %27 = vector.extract_strided_slice %25 {offsets = [0, 0], sizes = [8, 8], strides = [1, 1]} : vector<8x64xbf16> to vector<8x8xbf16>
    %28 = vector.extract_strided_slice %25 {offsets = [0, 32], sizes = [8, 8], strides = [1, 1]} : vector<8x64xbf16> to vector<8x8xbf16>
    %cst_20 = arith.constant dense<0.000000e+00> : vector<8x8xf32>
    %29 = tpu.matmul %26, %27, %cst_20 {dimension_numbers = #tpu.dot_dimension_numbers<[1], [1], [0], [0], [0, 0, 1, 0], [], []>} : vector<8x8xbf16>, vector<8x8xbf16>, vector<8x8xf32> -> vector<8x8xf32>
    %cst_21 = arith.constant 5.65685415 : f32
    %30 = vector.broadcast %cst_21 : f32 to vector<8x8xf32>
    %31 = arith.mulf %29, %30 : vector<8x8xf32>
    %32 = arith.addf %31, %23 : vector<8x8xf32>
    %cst_22 = arith.constant dense<0xFF800000> : vector<8xf32>
    %33 = vector.multi_reduction <maximumf>, %32, %cst_22 [1] : vector<8x8xf32> to vector<8xf32>
    %34 = vector.shape_cast %33 : vector<8xf32> to vector<8x1xf32>
    %35 = vector.broadcast %34 : vector<8x1xf32> to vector<8x8xf32>
    %36 = arith.subf %32, %35 : vector<8x8xf32>
    %37 = math.exp %36 : vector<8x8xf32>
    %cst_23 = arith.constant dense<0.000000e+00> : vector<8xf32>
    %38 = vector.multi_reduction <add>, %37, %cst_23 [1] : vector<8x8xf32> to vector<8xf32>
    %39 = vector.shape_cast %38 : vector<8xf32> to vector<8x1xf32>
    %40 = tpu.reciprocal %39 {approx = true} : vector<8x1xf32> -> vector<8x1xf32>
    %41 = vector.broadcast %40 : vector<8x1xf32> to vector<8x8xf32>
    %42 = arith.mulf %37, %41 : vector<8x8xf32>
    %43 = arith.truncf %42 : vector<8x8xf32> to vector<8x8xbf16>
    %cst_24 = arith.constant dense<0.000000e+00> : vector<8x8xf32>
    %44 = tpu.matmul %43, %28, %cst_24 {dimension_numbers = #tpu.dot_dimension_numbers<[1], [0], [0], [1], [0, 0, 1, 1], [], []>} : vector<8x8xbf16>, vector<8x8xbf16>, vector<8x8xf32> -> vector<8x8xf32>
    %c0_25 = arith.constant 0 : index
    %c0_26 = arith.constant 0 : index
    %45 = vector.load %arg19[%c0_25, %c0_26] : memref<8x32xf32, #tpu.memory_space<vmem>>, vector<8x8xf32>
    tpu.vector_store %arg19[%c0_25, %c0_26], %44 {strides = array<i32>} : memref<8x32xf32, #tpu.memory_space<vmem>>, vector<8x8xf32>,
    %46 = vector.extract_strided_slice %24 {offsets = [0, 8], sizes = [8, 8], strides = [1, 1]} : vector<8x32xbf16> to vector<8x8xbf16>
    %47 = vector.extract_strided_slice %25 {offsets = [0, 8], sizes = [8, 8], strides = [1, 1]} : vector<8x64xbf16> to vector<8x8xbf16>
    %48 = vector.extract_strided_slice %25 {offsets = [0, 40], sizes = [8, 8], strides = [1, 1]} : vector<8x64xbf16> to vector<8x8xbf16>
    %cst_27 = arith.constant dense<0.000000e+00> : vector<8x8xf32>
    %49 = tpu.matmul %46, %47, %cst_27 {dimension_numbers = #tpu.dot_dimension_numbers<[1], [1], [0], [0], [0, 0, 1, 0], [], []>} : vector<8x8xbf16>, vector<8x8xbf16>, vector<8x8xf32> -> vector<8x8xf32>
    %cst_28 = arith.constant 5.65685415 : f32
    %50 = vector.broadcast %cst_28 : f32 to vector<8x8xf32>
    %51 = arith.mulf %49, %50 : vector<8x8xf32>
    %52 = arith.addf %51, %23 : vector<8x8xf32>
    %cst_29 = arith.constant dense<0xFF800000> : vector<8xf32>
    %53 = vector.multi_reduction <maximumf>, %52, %cst_29 [1] : vector<8x8xf32> to vector<8xf32>
    %54 = vector.shape_cast %53 : vector<8xf32> to vector<8x1xf32>
    %55 = vector.broadcast %54 : vector<8x1xf32> to vector<8x8xf32>
    %56 = arith.subf %52, %55 : vector<8x8xf32>
    %57 = math.exp %56 : vector<8x8xf32>
    %cst_30 = arith.constant dense<0.000000e+00> : vector<8xf32>
    %58 = vector.multi_reduction <add>, %57, %cst_30 [1] : vector<8x8xf32> to vector<8xf32>
    %59 = vector.shape_cast %58 : vector<8xf32> to vector<8x1xf32>
    %60 = tpu.reciprocal %59 {approx = true} : vector<8x1xf32> -> vector<8x1xf32>
    %61 = vector.broadcast %60 : vector<8x1xf32> to vector<8x8xf32>
    %62 = arith.mulf %57, %61 : vector<8x8xf32>
    %63 = arith.truncf %62 : vector<8x8xf32> to vector<8x8xbf16>
    %cst_31 = arith.constant dense<0.000000e+00> : vector<8x8xf32>
    %64 = tpu.matmul %63, %48, %cst_31 {dimension_numbers = #tpu.dot_dimension_numbers<[1], [0], [0], [1], [0, 0, 1, 1], [], []>} : vector<8x8xbf16>, vector<8x8xbf16>, vector<8x8xf32> -> vector<8x8xf32>
    %c0_32 = arith.constant 0 : index
    %c8 = arith.constant 8 : index
    %65 = vector.load %arg19[%c0_32, %c8] : memref<8x32xf32, #tpu.memory_space<vmem>>, vector<8x8xf32>
    tpu.vector_store %arg19[%c0_32, %c8], %64 {strides = array<i32>} : memref<8x32xf32, #tpu.memory_space<vmem>>, vector<8x8xf32>,
    %66 = vector.extract_strided_slice %24 {offsets = [0, 16], sizes = [8, 8], strides = [1, 1]} : vector<8x32xbf16> to vector<8x8xbf16>
    %67 = vector.extract_strided_slice %25 {offsets = [0, 16], sizes = [8, 8], strides = [1, 1]} : vector<8x64xbf16> to vector<8x8xbf16>
    %68 = vector.extract_strided_slice %25 {offsets = [0, 48], sizes = [8, 8], strides = [1, 1]} : vector<8x64xbf16> to vector<8x8xbf16>
    %cst_33 = arith.constant dense<0.000000e+00> : vector<8x8xf32>
    %69 = tpu.matmul %66, %67, %cst_33 {dimension_numbers = #tpu.dot_dimension_numbers<[1], [1], [0], [0], [0, 0, 1, 0], [], []>} : vector<8x8xbf16>, vector<8x8xbf16>, vector<8x8xf32> -> vector<8x8xf32>
    %cst_34 = arith.constant 5.65685415 : f32
    %70 = vector.broadcast %cst_34 : f32 to vector<8x8xf32>
    %71 = arith.mulf %69, %70 : vector<8x8xf32>
    %72 = arith.addf %71, %23 : vector<8x8xf32>
    %cst_35 = arith.constant dense<0xFF800000> : vector<8xf32>
    %73 = vector.multi_reduction <maximumf>, %72, %cst_35 [1] : vector<8x8xf32> to vector<8xf32>
    %74 = vector.shape_cast %73 : vector<8xf32> to vector<8x1xf32>
    %75 = vector.broadcast %74 : vector<8x1xf32> to vector<8x8xf32>
    %76 = arith.subf %72, %75 : vector<8x8xf32>
    %77 = math.exp %76 : vector<8x8xf32>
    %cst_36 = arith.constant dense<0.000000e+00> : vector<8xf32>
    %78 = vector.multi_reduction <add>, %77, %cst_36 [1] : vector<8x8xf32> to vector<8xf32>
    %79 = vector.shape_cast %78 : vector<8xf32> to vector<8x1xf32>
    %80 = tpu.reciprocal %79 {approx = true} : vector<8x1xf32> -> vector<8x1xf32>
    %81 = vector.broadcast %80 : vector<8x1xf32> to vector<8x8xf32>
    %82 = arith.mulf %77, %81 : vector<8x8xf32>
    %83 = arith.truncf %82 : vector<8x8xf32> to vector<8x8xbf16>
    %cst_37 = arith.constant dense<0.000000e+00> : vector<8x8xf32>
    %84 = tpu.matmul %83, %68, %cst_37 {dimension_numbers = #tpu.dot_dimension_numbers<[1], [0], [0], [1], [0, 0, 1, 1], [], []>} : vector<8x8xbf16>, vector<8x8xbf16>, vector<8x8xf32> -> vector<8x8xf32>
    %c0_38 = arith.constant 0 : index
    %c16 = arith.constant 16 : index
    %85 = vector.load %arg19[%c0_38, %c16] : memref<8x32xf32, #tpu.memory_space<vmem>>, vector<8x8xf32>
    tpu.vector_store %arg19[%c0_38, %c16], %84 {strides = array<i32>} : memref<8x32xf32, #tpu.memory_space<vmem>>, vector<8x8xf32>,
    %86 = vector.extract_strided_slice %24 {offsets = [0, 24], sizes = [8, 8], strides = [1, 1]} : vector<8x32xbf16> to vector<8x8xbf16>
    %87 = vector.extract_strided_slice %25 {offsets = [0, 24], sizes = [8, 8], strides = [1, 1]} : vector<8x64xbf16> to vector<8x8xbf16>
    %88 = vector.extract_strided_slice %25 {offsets = [0, 56], sizes = [8, 8], strides = [1, 1]} : vector<8x64xbf16> to vector<8x8xbf16>
    %cst_39 = arith.constant dense<0.000000e+00> : vector<8x8xf32>
    %89 = tpu.matmul %86, %87, %cst_39 {dimension_numbers = #tpu.dot_dimension_numbers<[1], [1], [0], [0], [0, 0, 1, 0], [], []>} : vector<8x8xbf16>, vector<8x8xbf16>, vector<8x8xf32> -> vector<8x8xf32>
    %cst_40 = arith.constant 5.65685415 : f32
    %90 = vector.broadcast %cst_40 : f32 to vector<8x8xf32>
    %91 = arith.mulf %89, %90 : vector<8x8xf32>
    %92 = arith.addf %91, %23 : vector<8x8xf32>
    %cst_41 = arith.constant dense<0xFF800000> : vector<8xf32>
    %93 = vector.multi_reduction <maximumf>, %92, %cst_41 [1] : vector<8x8xf32> to vector<8xf32>
    %94 = vector.shape_cast %93 : vector<8xf32> to vector<8x1xf32>
    %95 = vector.broadcast %94 : vector<8x1xf32> to vector<8x8xf32>
    %96 = arith.subf %92, %95 : vector<8x8xf32>
    %97 = math.exp %96 : vector<8x8xf32>
    %cst_42 = arith.constant dense<0.000000e+00> : vector<8xf32>
    %98 = vector.multi_reduction <add>, %97, %cst_42 [1] : vector<8x8xf32> to vector<8xf32>
    %99 = vector.shape_cast %98 : vector<8xf32> to vector<8x1xf32>
    %100 = tpu.reciprocal %99 {approx = true} : vector<8x1xf32> -> vector<8x1xf32>
    %101 = vector.broadcast %100 : vector<8x1xf32> to vector<8x8xf32>
    %102 = arith.mulf %97, %101 : vector<8x8xf32>
    %103 = arith.truncf %102 : vector<8x8xf32> to vector<8x8xbf16>
    %cst_43 = arith.constant dense<0.000000e+00> : vector<8x8xf32>
    %104 = tpu.matmul %103, %88, %cst_43 {dimension_numbers = #tpu.dot_dimension_numbers<[1], [0], [0], [1], [0, 0, 1, 1], [], []>} : vector<8x8xbf16>, vector<8x8xbf16>, vector<8x8xf32> -> vector<8x8xf32>
    %c0_44 = arith.constant 0 : index
    %c24 = arith.constant 24 : index
    %105 = vector.load %arg19[%c0_44, %c24] : memref<8x32xf32, #tpu.memory_space<vmem>>, vector<8x8xf32>
    tpu.vector_store %arg19[%c0_44, %c24], %104 {strides = array<i32>} : memref<8x32xf32, #tpu.memory_space<vmem>>, vector<8x8xf32>,
    %c0_45 = arith.constant 0 : index
    %c0_46 = arith.constant 0 : index
    %106 = vector.load %arg19[%c0_45, %c0_46] : memref<8x32xf32, #tpu.memory_space<vmem>>, vector<8x32xf32>
    %107 = arith.truncf %106 : vector<8x32xf32> to vector<8x32xbf16>
    %cst_47 = arith.constant dense<0.000000e+00> : vector<8x32xf32>
    %108 = tpu.matmul %107, %10, %cst_47 {dimension_numbers = #tpu.dot_dimension_numbers<[1], [0], [0], [1], [0, 0, 1, 1], [], []>} : vector<8x32xbf16>, vector<32x32xbf16>, vector<8x32xf32> -> vector<8x32xf32>
    %109 = vector.broadcast %11 : vector<1x32xf32> to vector<8x32xf32>
    %110 = arith.addf %108, %109 : vector<8x32xf32>
    %111 = arith.addf %110, %4 : vector<8x32xf32>
    %cst_48 = arith.constant dense<0.000000e+00> : vector<8xf32>
    %112 = vector.multi_reduction <add>, %111, %cst_48 [1] : vector<8x32xf32> to vector<8xf32>
    %113 = vector.shape_cast %112 : vector<8xf32> to vector<8x1xf32>
    %cst_49 = arith.constant 3.200000e+01 : f32
    %114 = vector.broadcast %cst_49 : f32 to vector<8x1xf32>
    %115 = arith.divf %113, %114 : vector<8x1xf32>
    %116 = vector.broadcast %115 : vector<8x1xf32> to vector<8x32xf32>
    %117 = arith.subf %111, %116 : vector<8x32xf32>
    %118 = arith.mulf %117, %117 : vector<8x32xf32>
    %cst_50 = arith.constant dense<0.000000e+00> : vector<8xf32>
    %119 = vector.multi_reduction <add>, %118, %cst_50 [1] : vector<8x32xf32> to vector<8xf32>
    %120 = vector.shape_cast %119 : vector<8xf32> to vector<8x1xf32>
    %cst_51 = arith.constant 3.200000e+01 : f32
    %121 = vector.broadcast %cst_51 : f32 to vector<8x1xf32>
    %122 = arith.divf %120, %121 : vector<8x1xf32>
    %123 = vector.broadcast %115 : vector<8x1xf32> to vector<8x32xf32>
    %124 = arith.subf %111, %123 : vector<8x32xf32>
    %cst_52 = arith.constant 9.99999997E-7 : f32
    %125 = vector.broadcast %cst_52 : f32 to vector<8x1xf32>
    %126 = arith.addf %122, %125 : vector<8x1xf32>
    %127 = math.rsqrt %126 : vector<8x1xf32>
    %128 = vector.broadcast %127 : vector<8x1xf32> to vector<8x32xf32>
    %129 = arith.mulf %124, %128 : vector<8x32xf32>
    %130 = vector.broadcast %12 : vector<1x32xf32> to vector<8x32xf32>
    %131 = arith.mulf %129, %130 : vector<8x32xf32>
    %132 = vector.broadcast %13 : vector<1x32xf32> to vector<8x32xf32>
    %133 = arith.addf %131, %132 : vector<8x32xf32>
    %134 = arith.truncf %133 : vector<8x32xf32> to vector<8x32xbf16>
    %c0_53 = arith.constant 0 : index
    %c0_54 = arith.constant 0 : index
    %135 = vector.load %arg10[%c0_53, %c0_54] : memref<32x32xbf16, #tpu.memory_space<vmem>>, vector<32x32xbf16>
    %cst_55 = arith.constant dense<0.000000e+00> : vector<8x32xf32>
    %136 = tpu.matmul %134, %135, %cst_55 {dimension_numbers = #tpu.dot_dimension_numbers<[1], [0], [0], [1], [0, 0, 1, 1], [], []>} : vector<8x32xbf16>, vector<32x32xbf16>, vector<8x32xf32> -> vector<8x32xf32>
    %c0_56 = arith.constant 0 : index
    %c0_57 = arith.constant 0 : index
    %c0_58 = arith.constant 0 : index
    %137 = vector.load %arg2[%c0_56, %c0_57, %c0_58] : memref<1x8x32xbf16, #tpu.memory_space<vmem>>, vector<1x8x32xbf16>
    %138 = vector.shape_cast %137 : vector<1x8x32xbf16> to vector<8x32xbf16>
    %c0_59 = arith.constant 0 : index
    %c0_60 = arith.constant 0 : index
    %139 = vector.load %arg11[%c0_59, %c0_60] : memref<32x64xbf16, #tpu.memory_space<vmem>>, vector<32x64xbf16>
    %cst_61 = arith.constant dense<0.000000e+00> : vector<8x64xf32>
    %140 = tpu.matmul %138, %139, %cst_61 {dimension_numbers = #tpu.dot_dimension_numbers<[1], [0], [0], [1], [0, 0, 1, 1], [], []>} : vector<8x32xbf16>, vector<32x64xbf16>, vector<8x64xf32> -> vector<8x64xf32>
    %c0_62 = arith.constant 0 : index
    %c0_63 = arith.constant 0 : index
    %c0_64 = arith.constant 0 : index
    %141 = vector.load %arg3[%c0_62, %c0_63, %c0_64] : memref<1x8x1xf32, #tpu.memory_space<vmem>>, vector<1x8x1xf32>
    %142 = vector.shape_cast %141 : vector<1x8x1xf32> to vector<8x1xf32>
    %c0_65 = arith.constant 0 : index
    %c0_66 = arith.constant 0 : index
    %c0_67 = arith.constant 0 : index
    %143 = vector.load %arg4[%c0_65, %c0_66, %c0_67] : memref<1x1x8xf32, #tpu.memory_space<vmem>>, vector<1x1x8xf32>
    %144 = vector.shape_cast %143 : vector<1x1x8xf32> to vector<1x8xf32>
    %c0_68 = arith.constant 0 : index
    %c0_69 = arith.constant 0 : index
    %145 = vector.load %arg12[%c0_68, %c0_69] : memref<32x32xbf16, #tpu.memory_space<vmem>>, vector<32x32xbf16>
    %c0_70 = arith.constant 0 : index
    %c0_71 = arith.constant 0 : index
    %146 = vector.load %arg13[%c0_70, %c0_71] : memref<1x32xf32, #tpu.memory_space<vmem>>, vector<1x32xf32>
    %c0_72 = arith.constant 0 : index
    %c0_73 = arith.constant 0 : index
    %147 = vector.load %arg14[%c0_72, %c0_73] : memref<1x32xf32, #tpu.memory_space<vmem>>, vector<1x32xf32>
    %c0_74 = arith.constant 0 : index
    %c0_75 = arith.constant 0 : index
    %148 = vector.load %arg15[%c0_74, %c0_75] : memref<1x32xf32, #tpu.memory_space<vmem>>, vector<1x32xf32>
    %149 = vector.broadcast %142 : vector<8x1xf32> to vector<8x8xf32>
    %150 = vector.broadcast %144 : vector<1x8xf32> to vector<8x8xf32>
    %151 = arith.addf %149, %150 : vector<8x8xf32>
    %152 = tpu.iota {dimensions = array<i32: 0>} : vector<8x8xi32>
    %153 = tpu.iota {dimensions = array<i32: 1>} : vector<8x8xi32>
    %154 = arith.cmpi sge, %152, %153 : vector<8x8xi32>
    %cst_76 = arith.constant 0.000000e+00 : f32
    %cst_77 = arith.constant -1.000000e+30 : f32
    %155 = vector.broadcast %cst_76 : f32 to vector<8x8xf32>
    %156 = vector.broadcast %cst_77 : f32 to vector<8x8xf32>
    %157 = arith.select %154, %155, %156 : vector<8x8xi1>, vector<8x8xf32>
    %158 = arith.addf %151, %157 : vector<8x8xf32>
    %159 = arith.truncf %136 : vector<8x32xf32> to vector<8x32xbf16>
    %160 = arith.truncf %140 : vector<8x64xf32> to vector<8x64xbf16>
    %161 = vector.extract_strided_slice %159 {offsets = [0, 0], sizes = [8, 8], strides = [1, 1]} : vector<8x32xbf16> to vector<8x8xbf16>
    %162 = vector.extract_strided_slice %160 {offsets = [0, 0], sizes = [8, 8], strides = [1, 1]} : vector<8x64xbf16> to vector<8x8xbf16>
    %163 = vector.extract_strided_slice %160 {offsets = [0, 32], sizes = [8, 8], strides = [1, 1]} : vector<8x64xbf16> to vector<8x8xbf16>
    %cst_78 = arith.constant dense<0.000000e+00> : vector<8x8xf32>
    %164 = tpu.matmul %161, %162, %cst_78 {dimension_numbers = #tpu.dot_dimension_numbers<[1], [1], [0], [0], [0, 0, 1, 0], [], []>} : vector<8x8xbf16>, vector<8x8xbf16>, vector<8x8xf32> -> vector<8x8xf32>
    %cst_79 = arith.constant 5.65685415 : f32
    %165 = vector.broadcast %cst_79 : f32 to vector<8x8xf32>
    %166 = arith.mulf %164, %165 : vector<8x8xf32>
    %167 = arith.addf %166, %158 : vector<8x8xf32>
    %cst_80 = arith.constant dense<0xFF800000> : vector<8xf32>
    %168 = vector.multi_reduction <maximumf>, %167, %cst_80 [1] : vector<8x8xf32> to vector<8xf32>
    %169 = vector.shape_cast %168 : vector<8xf32> to vector<8x1xf32>
    %170 = vector.broadcast %169 : vector<8x1xf32> to vector<8x8xf32>
    %171 = arith.subf %167, %170 : vector<8x8xf32>
    %172 = math.exp %171 : vector<8x8xf32>
    %cst_81 = arith.constant dense<0.000000e+00> : vector<8xf32>
    %173 = vector.multi_reduction <add>, %172, %cst_81 [1] : vector<8x8xf32> to vector<8xf32>
    %174 = vector.shape_cast %173 : vector<8xf32> to vector<8x1xf32>
    %175 = tpu.reciprocal %174 {approx = true} : vector<8x1xf32> -> vector<8x1xf32>
    %176 = vector.broadcast %175 : vector<8x1xf32> to vector<8x8xf32>
    %177 = arith.mulf %172, %176 : vector<8x8xf32>
    %178 = arith.truncf %177 : vector<8x8xf32> to vector<8x8xbf16>
    %cst_82 = arith.constant dense<0.000000e+00> : vector<8x8xf32>
    %179 = tpu.matmul %178, %163, %cst_82 {dimension_numbers = #tpu.dot_dimension_numbers<[1], [0], [0], [1], [0, 0, 1, 1], [], []>} : vector<8x8xbf16>, vector<8x8xbf16>, vector<8x8xf32> -> vector<8x8xf32>
    %c0_83 = arith.constant 0 : index
    %c0_84 = arith.constant 0 : index
    %180 = vector.load %arg19[%c0_83, %c0_84] : memref<8x32xf32, #tpu.memory_space<vmem>>, vector<8x8xf32>
    tpu.vector_store %arg19[%c0_83, %c0_84], %179 {strides = array<i32>} : memref<8x32xf32, #tpu.memory_space<vmem>>, vector<8x8xf32>,
    %181 = vector.extract_strided_slice %159 {offsets = [0, 8], sizes = [8, 8], strides = [1, 1]} : vector<8x32xbf16> to vector<8x8xbf16>
    %182 = vector.extract_strided_slice %160 {offsets = [0, 8], sizes = [8, 8], strides = [1, 1]} : vector<8x64xbf16> to vector<8x8xbf16>
    %183 = vector.extract_strided_slice %160 {offsets = [0, 40], sizes = [8, 8], strides = [1, 1]} : vector<8x64xbf16> to vector<8x8xbf16>
    %cst_85 = arith.constant dense<0.000000e+00> : vector<8x8xf32>
    %184 = tpu.matmul %181, %182, %cst_85 {dimension_numbers = #tpu.dot_dimension_numbers<[1], [1], [0], [0], [0, 0, 1, 0], [], []>} : vector<8x8xbf16>, vector<8x8xbf16>, vector<8x8xf32> -> vector<8x8xf32>
    %cst_86 = arith.constant 5.65685415 : f32
    %185 = vector.broadcast %cst_86 : f32 to vector<8x8xf32>
    %186 = arith.mulf %184, %185 : vector<8x8xf32>
    %187 = arith.addf %186, %158 : vector<8x8xf32>
    %cst_87 = arith.constant dense<0xFF800000> : vector<8xf32>
    %188 = vector.multi_reduction <maximumf>, %187, %cst_87 [1] : vector<8x8xf32> to vector<8xf32>
    %189 = vector.shape_cast %188 : vector<8xf32> to vector<8x1xf32>
    %190 = vector.broadcast %189 : vector<8x1xf32> to vector<8x8xf32>
    %191 = arith.subf %187, %190 : vector<8x8xf32>
    %192 = math.exp %191 : vector<8x8xf32>
    %cst_88 = arith.constant dense<0.000000e+00> : vector<8xf32>
    %193 = vector.multi_reduction <add>, %192, %cst_88 [1] : vector<8x8xf32> to vector<8xf32>
    %194 = vector.shape_cast %193 : vector<8xf32> to vector<8x1xf32>
    %195 = tpu.reciprocal %194 {approx = true} : vector<8x1xf32> -> vector<8x1xf32>
    %196 = vector.broadcast %195 : vector<8x1xf32> to vector<8x8xf32>
    %197 = arith.mulf %192, %196 : vector<8x8xf32>
    %198 = arith.truncf %197 : vector<8x8xf32> to vector<8x8xbf16>
    %cst_89 = arith.constant dense<0.000000e+00> : vector<8x8xf32>
    %199 = tpu.matmul %198, %183, %cst_89 {dimension_numbers = #tpu.dot_dimension_numbers<[1], [0], [0], [1], [0, 0, 1, 1], [], []>} : vector<8x8xbf16>, vector<8x8xbf16>, vector<8x8xf32> -> vector<8x8xf32>
    %c0_90 = arith.constant 0 : index
    %c8_91 = arith.constant 8 : index
    %200 = vector.load %arg19[%c0_90, %c8_91] : memref<8x32xf32, #tpu.memory_space<vmem>>, vector<8x8xf32>
    tpu.vector_store %arg19[%c0_90, %c8_91], %199 {strides = array<i32>} : memref<8x32xf32, #tpu.memory_space<vmem>>, vector<8x8xf32>,
    %201 = vector.extract_strided_slice %159 {offsets = [0, 16], sizes = [8, 8], strides = [1, 1]} : vector<8x32xbf16> to vector<8x8xbf16>
    %202 = vector.extract_strided_slice %160 {offsets = [0, 16], sizes = [8, 8], strides = [1, 1]} : vector<8x64xbf16> to vector<8x8xbf16>
    %203 = vector.extract_strided_slice %160 {offsets = [0, 48], sizes = [8, 8], strides = [1, 1]} : vector<8x64xbf16> to vector<8x8xbf16>
    %cst_92 = arith.constant dense<0.000000e+00> : vector<8x8xf32>
    %204 = tpu.matmul %201, %202, %cst_92 {dimension_numbers = #tpu.dot_dimension_numbers<[1], [1], [0], [0], [0, 0, 1, 0], [], []>} : vector<8x8xbf16>, vector<8x8xbf16>, vector<8x8xf32> -> vector<8x8xf32>
    %cst_93 = arith.constant 5.65685415 : f32
    %205 = vector.broadcast %cst_93 : f32 to vector<8x8xf32>
    %206 = arith.mulf %204, %205 : vector<8x8xf32>
    %207 = arith.addf %206, %158 : vector<8x8xf32>
    %cst_94 = arith.constant dense<0xFF800000> : vector<8xf32>
    %208 = vector.multi_reduction <maximumf>, %207, %cst_94 [1] : vector<8x8xf32> to vector<8xf32>
    %209 = vector.shape_cast %208 : vector<8xf32> to vector<8x1xf32>
    %210 = vector.broadcast %209 : vector<8x1xf32> to vector<8x8xf32>
    %211 = arith.subf %207, %210 : vector<8x8xf32>
    %212 = math.exp %211 : vector<8x8xf32>
    %cst_95 = arith.constant dense<0.000000e+00> : vector<8xf32>
    %213 = vector.multi_reduction <add>, %212, %cst_95 [1] : vector<8x8xf32> to vector<8xf32>
    %214 = vector.shape_cast %213 : vector<8xf32> to vector<8x1xf32>
    %215 = tpu.reciprocal %214 {approx = true} : vector<8x1xf32> -> vector<8x1xf32>
    %216 = vector.broadcast %215 : vector<8x1xf32> to vector<8x8xf32>
    %217 = arith.mulf %212, %216 : vector<8x8xf32>
    %218 = arith.truncf %217 : vector<8x8xf32> to vector<8x8xbf16>
    %cst_96 = arith.constant dense<0.000000e+00> : vector<8x8xf32>
    %219 = tpu.matmul %218, %203, %cst_96 {dimension_numbers = #tpu.dot_dimension_numbers<[1], [0], [0], [1], [0, 0, 1, 1], [], []>} : vector<8x8xbf16>, vector<8x8xbf16>, vector<8x8xf32> -> vector<8x8xf32>
    %c0_97 = arith.constant 0 : index
    %c16_98 = arith.constant 16 : index
    %220 = vector.load %arg19[%c0_97, %c16_98] : memref<8x32xf32, #tpu.memory_space<vmem>>, vector<8x8xf32>
    tpu.vector_store %arg19[%c0_97, %c16_98], %219 {strides = array<i32>} : memref<8x32xf32, #tpu.memory_space<vmem>>, vector<8x8xf32>,
    %221 = vector.extract_strided_slice %159 {offsets = [0, 24], sizes = [8, 8], strides = [1, 1]} : vector<8x32xbf16> to vector<8x8xbf16>
    %222 = vector.extract_strided_slice %160 {offsets = [0, 24], sizes = [8, 8], strides = [1, 1]} : vector<8x64xbf16> to vector<8x8xbf16>
    %223 = vector.extract_strided_slice %160 {offsets = [0, 56], sizes = [8, 8], strides = [1, 1]} : vector<8x64xbf16> to vector<8x8xbf16>
    %cst_99 = arith.constant dense<0.000000e+00> : vector<8x8xf32>
    %224 = tpu.matmul %221, %222, %cst_99 {dimension_numbers = #tpu.dot_dimension_numbers<[1], [1], [0], [0], [0, 0, 1, 0], [], []>} : vector<8x8xbf16>, vector<8x8xbf16>, vector<8x8xf32> -> vector<8x8xf32>
    %cst_100 = arith.constant 5.65685415 : f32
    %225 = vector.broadcast %cst_100 : f32 to vector<8x8xf32>
    %226 = arith.mulf %224, %225 : vector<8x8xf32>
    %227 = arith.addf %226, %158 : vector<8x8xf32>
    %cst_101 = arith.constant dense<0xFF800000> : vector<8xf32>
    %228 = vector.multi_reduction <maximumf>, %227, %cst_101 [1] : vector<8x8xf32> to vector<8xf32>
    %229 = vector.shape_cast %228 : vector<8xf32> to vector<8x1xf32>
    %230 = vector.broadcast %229 : vector<8x1xf32> to vector<8x8xf32>
    %231 = arith.subf %227, %230 : vector<8x8xf32>
    %232 = math.exp %231 : vector<8x8xf32>
    %cst_102 = arith.constant dense<0.000000e+00> : vector<8xf32>
    %233 = vector.multi_reduction <add>, %232, %cst_102 [1] : vector<8x8xf32> to vector<8xf32>
    %234 = vector.shape_cast %233 : vector<8xf32> to vector<8x1xf32>
    %235 = tpu.reciprocal %234 {approx = true} : vector<8x1xf32> -> vector<8x1xf32>
    %236 = vector.broadcast %235 : vector<8x1xf32> to vector<8x8xf32>
    %237 = arith.mulf %232, %236 : vector<8x8xf32>
    %238 = arith.truncf %237 : vector<8x8xf32> to vector<8x8xbf16>
    %cst_103 = arith.constant dense<0.000000e+00> : vector<8x8xf32>
    %239 = tpu.matmul %238, %223, %cst_103 {dimension_numbers = #tpu.dot_dimension_numbers<[1], [0], [0], [1], [0, 0, 1, 1], [], []>} : vector<8x8xbf16>, vector<8x8xbf16>, vector<8x8xf32> -> vector<8x8xf32>
    %c0_104 = arith.constant 0 : index
    %c24_105 = arith.constant 24 : index
    %240 = vector.load %arg19[%c0_104, %c24_105] : memref<8x32xf32, #tpu.memory_space<vmem>>, vector<8x8xf32>
    tpu.vector_store %arg19[%c0_104, %c24_105], %239 {strides = array<i32>} : memref<8x32xf32, #tpu.memory_space<vmem>>, vector<8x8xf32>,
    %c0_106 = arith.constant 0 : index
    %c0_107 = arith.constant 0 : index
    %241 = vector.load %arg19[%c0_106, %c0_107] : memref<8x32xf32, #tpu.memory_space<vmem>>, vector<8x32xf32>
    %242 = arith.truncf %241 : vector<8x32xf32> to vector<8x32xbf16>
    %cst_108 = arith.constant dense<0.000000e+00> : vector<8x32xf32>
    %243 = tpu.matmul %242, %145, %cst_108 {dimension_numbers = #tpu.dot_dimension_numbers<[1], [0], [0], [1], [0, 0, 1, 1], [], []>} : vector<8x32xbf16>, vector<32x32xbf16>, vector<8x32xf32> -> vector<8x32xf32>
    %244 = vector.broadcast %146 : vector<1x32xf32> to vector<8x32xf32>
    %245 = arith.addf %243, %244 : vector<8x32xf32>
    %246 = arith.addf %245, %136 : vector<8x32xf32>
    %cst_109 = arith.constant dense<0.000000e+00> : vector<8xf32>
    %247 = vector.multi_reduction <add>, %246, %cst_109 [1] : vector<8x32xf32> to vector<8xf32>
    %248 = vector.shape_cast %247 : vector<8xf32> to vector<8x1xf32>
    %cst_110 = arith.constant 3.200000e+01 : f32
    %249 = vector.broadcast %cst_110 : f32 to vector<8x1xf32>
    %250 = arith.divf %248, %249 : vector<8x1xf32>
    %251 = vector.broadcast %250 : vector<8x1xf32> to vector<8x32xf32>
    %252 = arith.subf %246, %251 : vector<8x32xf32>
    %253 = arith.mulf %252, %252 : vector<8x32xf32>
    %cst_111 = arith.constant dense<0.000000e+00> : vector<8xf32>
    %254 = vector.multi_reduction <add>, %253, %cst_111 [1] : vector<8x32xf32> to vector<8xf32>
    %255 = vector.shape_cast %254 : vector<8xf32> to vector<8x1xf32>
    %cst_112 = arith.constant 3.200000e+01 : f32
    %256 = vector.broadcast %cst_112 : f32 to vector<8x1xf32>
    %257 = arith.divf %255, %256 : vector<8x1xf32>
    %258 = vector.broadcast %250 : vector<8x1xf32> to vector<8x32xf32>
    %259 = arith.subf %246, %258 : vector<8x32xf32>
    %cst_113 = arith.constant 9.99999997E-7 : f32
    %260 = vector.broadcast %cst_113 : f32 to vector<8x1xf32>
    %261 = arith.addf %257, %260 : vector<8x1xf32>
    %262 = math.rsqrt %261 : vector<8x1xf32>
    %263 = vector.broadcast %262 : vector<8x1xf32> to vector<8x32xf32>
    %264 = arith.mulf %259, %263 : vector<8x32xf32>
    %265 = vector.broadcast %147 : vector<1x32xf32> to vector<8x32xf32>
    %266 = arith.mulf %264, %265 : vector<8x32xf32>
    %267 = vector.broadcast %148 : vector<1x32xf32> to vector<8x32xf32>
    %268 = arith.addf %266, %267 : vector<8x32xf32>
    %269 = arith.truncf %268 : vector<8x32xf32> to vector<8x32xbf16>
    %c0_114 = arith.constant 0 : index
    %c0_115 = arith.constant 0 : index
    %270 = vector.load %arg16[%c0_114, %c0_115] : memref<32x32xbf16, #tpu.memory_space<vmem>>, vector<32x32xbf16>
    %cst_116 = arith.constant dense<0.000000e+00> : vector<8x32xf32>
    %271 = tpu.matmul %269, %270, %cst_116 {dimension_numbers = #tpu.dot_dimension_numbers<[1], [0], [0], [1], [0, 0, 1, 1], [], []>} : vector<8x32xbf16>, vector<32x32xbf16>, vector<8x32xf32> -> vector<8x32xf32>
    %c0_117 = arith.constant 0 : index
    %c0_118 = arith.constant 0 : index
    %272 = vector.load %arg17[%c0_117, %c0_118] : memref<1x32xf32, #tpu.memory_space<vmem>>, vector<1x32xf32>
    %273 = vector.broadcast %272 : vector<1x32xf32> to vector<8x32xf32>
    %274 = arith.addf %271, %273 : vector<8x32xf32>
    %275 = arith.truncf %274 : vector<8x32xf32> to vector<8x32xbf16>
    %c0_119 = arith.constant 0 : index
    %c0_120 = arith.constant 0 : index
    %c0_121 = arith.constant 0 : index
    %276 = vector.load %arg18[%c0_119, %c0_120, %c0_121] : memref<1x8x32xbf16, #tpu.memory_space<vmem>>, vector<1x8x32xbf16>
    %277 = vector.shape_cast %276 : vector<1x8x32xbf16> to vector<8x32xbf16>
    %278 = vector.shape_cast %275 : vector<8x32xbf16> to vector<1x8x32xbf16>
    tpu.vector_store %arg18[%c0_119, %c0_120, %c0_121], %278 {strides = array<i32>} : memref<1x8x32xbf16, #tpu.memory_space<vmem>>, vector<1x8x32xbf16>,
    return
  }
  func.func @transform_0(%arg0: i32) -> (i32, i32, i32) {
    %c0_i32 = arith.constant 0 : i32
    %c0_i32_0 = arith.constant 0 : i32
    %c0_i32_1 = arith.constant 0 : i32
    return %arg0, %c0_i32, %c0_i32_0 : i32, i32, i32
  }
  func.func @transform_1(%arg0: i32) -> (i32, i32, i32) {
    %c0_i32 = arith.constant 0 : i32
    %c0_i32_0 = arith.constant 0 : i32
    %c0_i32_1 = arith.constant 0 : i32
    return %arg0, %c0_i32, %c0_i32_0 : i32, i32, i32
  }
  func.func @transform_2(%arg0: i32) -> (i32, i32, i32) {
    %c0_i32 = arith.constant 0 : i32
    %c0_i32_0 = arith.constant 0 : i32
    %c0_i32_1 = arith.constant 0 : i32
    return %arg0, %c0_i32, %c0_i32_0 : i32, i32, i32
  }
  func.func @transform_3(%arg0: i32) -> (i32, i32, i32) {
    %c0_i32 = arith.constant 0 : i32
    %c0_i32_0 = arith.constant 0 : i32
    %c0_i32_1 = arith.constant 0 : i32
    return %arg0, %c0_i32, %c0_i32_0 : i32, i32, i32
  }
  func.func @transform_4(%arg0: i32) -> (i32, i32) {
    %c0_i32 = arith.constant 0 : i32
    %c0_i32_0 = arith.constant 0 : i32
    %c0_i32_1 = arith.constant 0 : i32
    return %c0_i32, %c0_i32_0 : i32, i32
  }
  func.func @transform_5(%arg0: i32) -> (i32, i32) {
    %c0_i32 = arith.constant 0 : i32
    %c0_i32_0 = arith.constant 0 : i32
    %c0_i32_1 = arith.constant 0 : i32
    return %c0_i32, %c0_i32_0 : i32, i32
  }
  func.func @transform_6(%arg0: i32) -> (i32, i32) {
    %c0_i32 = arith.constant 0 : i32
    %c0_i32_0 = arith.constant 0 : i32
    %c0_i32_1 = arith.constant 0 : i32
    return %c0_i32, %c0_i32_0 : i32, i32
  }
  func.func @transform_7(%arg0: i32) -> (i32, i32) {
    %c0_i32 = arith.constant 0 : i32
    %c0_i32_0 = arith.constant 0 : i32
    %c0_i32_1 = arith.constant 0 : i32
    return %c0_i32, %c0_i32_0 : i32, i32
  }
  func.func @transform_8(%arg0: i32) -> (i32, i32) {
    %c0_i32 = arith.constant 0 : i32
    %c0_i32_0 = arith.constant 0 : i32
    %c0_i32_1 = arith.constant 0 : i32
    return %c0_i32, %c0_i32_0 : i32, i32
  }
  func.func @transform_9(%arg0: i32) -> (i32, i32) {
    %c0_i32 = arith.constant 0 : i32
    %c0_i32_0 = arith.constant 0 : i32
    %c0_i32_1 = arith.constant 0 : i32
    return %c0_i32, %c0_i32_0 : i32, i32
  }
  func.func @transform_10(%arg0: i32) -> (i32, i32) {
    %c0_i32 = arith.constant 0 : i32
    %c0_i32_0 = arith.constant 0 : i32
    %c0_i32_1 = arith.constant 0 : i32
    return %c0_i32, %c0_i32_0 : i32, i32
  }
  func.func @transform_11(%arg0: i32) -> (i32, i32) {
    %c0_i32 = arith.constant 0 : i32
    %c0_i32_0 = arith.constant 0 : i32
    %c0_i32_1 = arith.constant 0 : i32
    return %c0_i32, %c0_i32_0 : i32, i32
  }
  func.func @transform_12(%arg0: i32) -> (i32, i32) {
    %c0_i32 = arith.constant 0 : i32
    %c0_i32_0 = arith.constant 0 : i32
    %c0_i32_1 = arith.constant 0 : i32
    return %c0_i32, %c0_i32_0 : i32, i32
  }
  func.func @transform_13(%arg0: i32) -> (i32, i32) {
    %c0_i32 = arith.constant 0 : i32
    %c0_i32_0 = arith.constant 0 : i32
    %c0_i32_1 = arith.constant 0 : i32
    return %c0_i32, %c0_i32_0 : i32, i32
  }
  func.func @transform_14(%arg0: i32) -> (i32, i32) {
    %c0_i32 = arith.constant 0 : i32
    %c0_i32_0 = arith.constant 0 : i32
    %c0_i32_1 = arith.constant 0 : i32
    return %c0_i32, %c0_i32_0 : i32, i32
  }
  func.func @transform_15(%arg0: i32) -> (i32, i32) {
    %c0_i32 = arith.constant 0 : i32
    %c0_i32_0 = arith.constant 0 : i32
    %c0_i32_1 = arith.constant 0 : i32
    return %c0_i32, %c0_i32_0 : i32, i32
  }
  func.func @transform_16(%arg0: i32) -> (i32, i32) {
    %c0_i32 = arith.constant 0 : i32
    %c0_i32_0 = arith.constant 0 : i32
    %c0_i32_1 = arith.constant 0 : i32
    return %c0_i32, %c0_i32_0 : i32, i32
  }
  func.func @transform_17(%arg0: i32) -> (i32, i32, i32) {
    %c0_i32 = arith.constant 0 : i32
    %c0_i32_0 = arith.constant 0 : i32
    %c0_i32_1 = arith.constant 0 : i32
    return %arg0, %c0_i32, %c0_i32_0 : i32, i32, i32
  }
}

</mosaic_0001>

<bundles_post_ra>
// kernel: model_forward.13
= control target key start
LH: loop header
LB: loop body
LE: loop exit
PB: predicated region body
PF: predicated region fallthrough
CT: control target
= control target key end

     0   :  { %v190_v1 = vmov 0.0   ;;  %vm58_vm0 = vcmask 261120   ;;  %vm191_vm1 = vmmov 0   ;;  %s241_s0 = inlined_call_operand.vmem [shape: bf16[16,32], index: 0, kind: input, shape index: {}]   ;;  %s242_s1 = inlined_call_operand.vmem [shape: bf16[64,32], index: 1, kind: input, shape index: {}]   ;;  %s243_s2 = inlined_call_operand.vmem [shape: f32[1,64], index: 2, kind: input, shape index: {}]   ;;  %s244_s3 = inlined_call_operand.hbm [shape: f32[16,64], index: 3, kind: output, shape index: {}]  }
   0x1   :  { %v163_v0 = vld [vmem:[%s242_s1 + $0x18] sm:$0xff]   ;;  %146 = vmatprep.subr.bf16.mxu0 %v190_v1  ;;  %v164_v3 = vld [vmem:[%s242_s1 + $0x10] sm:$0xff]   ;;  %154 = vmatprep.mubr.msk.bf16.mxu0 %vm191_vm1, %v190_v1 }
   0x2   :  { %v72_v2 = vsel %vm58_vm0, %v163_v0, 0 }
   0x3   :  { %147 = vmatpush3.bf16.xpose.msra.mxu0 %v72_v2 }
   0x4   :  { %148 = vmatprep.subr.bf16.mxu0 %v190_v1 }
   0x5   :  { %8 = vsyncpa [#allocation3], 0  ;;  %v69_v4 = vsel %vm58_vm0, %v164_v3, 0  ;;  %v165_v5 = vld [vmem:[%s242_s1 + $0x8] sm:$0xff]   ;;  %v166_v7 = vld [vmem:[%s242_s1] sm:$0xff]   ;;  %vm115_vm2 = vcmask 523264  }
   0x6   :  { %v66_v6 = vsel %vm58_vm0, %v165_v5, 0  ;;  %v63_v8 = vsel %vm58_vm0, %v166_v7, 0  ;;  %v167_v9 = vld [vmem:[%s241_s0] sm:$0xff]   ;;  %s192_s24 = smov [#allocation2]  }
   0x7   :  { %v134_v10 = vld [vmem:[%s243_s2] ss:$0 sm:$0xff]  ;;  %s123_s25 = sshll.u32 %s192_s24, 4  ;;  %s124_s25 = int_to_ptr.vmem [resolvable:$true] %s123_s25 }
   0x8   :  { %s168_s1 = scalar_lea.vmem %s124_s25, 256  ;;  %p173_p1 = scmp.lt.s32.totalorder %s124_s25, %s124_s25 }
   0x9   :  { %p169_p0 = scmp.ne.s32.totalorder %s124_s25, %s168_s1  ;;  %p174_p2 = scmp.lt.s32.totalorder %s168_s1, %s168_s1 }
   0xb   :  { %149 = vmatpush3.bf16.xpose.msra.mxu0 %v69_v4  ;;  %p175_p3 = por %p174_p2, %p173_p1 }
   0xc   :  { %150 = vmatprep.subr.bf16.mxu0 %v190_v1 }
   0xd   :  { %p176_p4 = pnand %p175_p3, %p169_p0 }
  0x13   :  { %151 = vmatpush3.bf16.xpose.msra.mxu0 %v66_v6 }
  0x14   :  { %152 = vmatprep.subr.bf16.mxu0 %v190_v1 }
  0x1b   :  { %153 = vmatpush3.bf16.xpose.msra.mxu0 %v63_v8 }
  0x22   :  { %155 = vmatmul.mubr.msk.bf16.vlgmr.msra.gmra.mxu0 %vm58_vm0, %v167_v9 }
  0xe2   :  { %v108_v11 = vpop.f32.mrf.mxu0 }
  0xe3   :  { %v109_v12 = vadd.f32 %v134_v10, %v108_v11 }
  0xe4   :  { %v156_v13 = vpop.f32.mrf.mxu0 }
  0xe5   :  { %116 = vst.msk [vmem:[#allocation2] sm:$0xff] %vm115_vm2, %v109_v12 }
  0xe6   :  { %v111_v14 = vpop.f32.mrf.mxu0 }
  0xe7   :  { %v112_v15 = vadd.f32 %v134_v10, %v111_v14 }
  0xe8   :  { %v157_v16 = vpop.f32.mrf.mxu0 }
  0xe9   :  { %117 = vst.msk [vmem:[#allocation2 + $0x8] sm:$0xff] %vm115_vm2, %v112_v15 }
  0xea   :  { %179 = shalt.err (!%p176_p4)
}
  0xeb   :  { %s193_s0 = smov 128   ;;  %s194_s2 = smov 8  }
  0xec   :  { %129 = dma.vmem_to_hbm [thread:$0]  %s124_s25, 256, %s244_s3, [#allocation3], %s193_s0, %s193_s0, %s194_s2  }
  0xed   :  { %188 = dma.done.wait [#allocation3], 256  }
  0xee   :  { %189 = vsyncadd [#allocation3], 4294967040 }
  0xef   :  { %133 = vsyncpa [#allocation3], 1 }

// kernel: model_forward.7
= control target key start
LH: loop header
LB: loop body
LE: loop exit
PB: predicated region body
PF: predicated region fallthrough
CT: control target
= control target key end

     0   :  { %s338_s15 = smov 0   ;;  %s364_s0 = inlined_call_operand.vmem [shape: bf16[2,8,32], index: 0, kind: input, shape index: {}]   ;;  %s365_s1 = inlined_call_operand.vmem [shape: f32[8,32], index: 1, kind: input, shape index: {}]   ;;  %s366_s2 = inlined_call_operand.vmem [shape: f32[1,32], index: 2, kind: input, shape index: {}]   ;;  %s367_s3 = inlined_call_operand.vmem [shape: f32[1,32], index: 3, kind: input, shape index: {}]   ;;  %s368_s4 = inlined_call_operand.vmem [shape: bf16[2,8,32], index: 4, kind: output, shape index: {}]  }
   0x1 LB: > { %s284_s16 = sadd.s32 4294967295, %s311_s15   ;;  %p288_p0 = scmp.ge.s32.totalorder %s311_s15, 1  ;;  %s311_s15 = sphi %s338_s15, %s14_s15  }
   0x2   : > { %p161_p1 = scmp.lt.s32.totalorder %s311_s15, 3 }
   0x4   : > { %p162_p2 = pnand %p288_p0, %p161_p1 }
   0x5   : > { %p185_p3 = scmp.lt.s32.totalorder (!%p162_p2), %s284_s16, 1 }
   0x6   : > { %165 = sbr.rel (%p162_p2) target bundleno = 330 (0x14a), region = 36 }
   0xb   : > { %s370_s16 = smov (!%p185_p3, %s284_s16), 1  ;;  %v195_v1 = vld [vmem:[%s365_s1] sm:$0xff]  ;;  %vm199_vm0 = vcmask 261120   ;;  %vm229_vm1 = vcmask 257024  }
   0xc   : > { %s289_s17 = sshll.u32 %s370_s16, 2  ;;  %v291_v14 = vld [vmem:[%s366_s2] ss:$0 sm:$0xff] }
   0xd   : > { %s188_s20 = scalar_lea.vmem %s364_s0, %s289_s17  ;;  %v292_v16 = vld [vmem:[%s367_s3] ss:$0 sm:$0xff]  ;;  %s192_s29 = scalar_lea.vmem %s368_s4, %s289_s17 }
   0xe   : > { %v193_v0 = vld [vmem:[%s188_s20] sm:$0xf] }
   0xf   : > { %v194_v2 = vunpack.c.l.bf16 %v193_v0 }
  0x11   : > { %v196_v3 = vadd.f32 %v195_v1, %v194_v2 }
  0x13   : > { %v200_v4 = vsel %vm199_vm0, %v196_v3, 0.0 }
  0x14   : > { %201 = vadd.xlane.f32.xlu0 %v200_v4 }
  0x9d   : > { %v202_v5 = vpop.xlane.xlu0 %201 }
  0x9e   : > { %v204_v6 = vmul.f32 0.03125, %v202_v5 }
  0xa0   : > { %v205_v7 = vsub.f32 %v196_v3, %v204_v6 }
  0xa2   : > { %v206_v8 = vmul.f32 %v205_v7, %v205_v7 }
  0xa4   : > { %v207_v9 = vsel %vm199_vm0, %v206_v8, 0.0 }
  0xa5   : > { %208 = vadd.xlane.f32.xlu0 %v207_v9 }
 0x12e   : > { %v209_v10 = vpop.xlane.xlu0 %208 }
 0x12f   : > { %v210_v11 = vmul.f32 0.03125, %v209_v10 }
 0x131   : > { %v211_v12 = vadd.f32 1e-06, %v210_v11 }
 0x133   : > { %303 = vrsqrt.f32 %v211_v12 }
 0x140   : > { %v304_v13 = vpop.eup %303 }
 0x141   : > { %v213_v15 = vmul.f32 %v304_v13, %v205_v7 }
 0x143   : > { %v220_v17 = vmul.f32 %v291_v14, %v213_v15 }
 0x145   : > { %v227_v18 = vadd.f32 %v292_v16, %v220_v17 }
 0x147   : > { %v228_v19 = vpack.c.bf16 %v227_v18, %v227_v18 }
 0x149   : > { %230 = vst.msk [vmem:[%s192_s29] sm:$0xf] %vm229_vm1, %v228_v19 }
 0x14a PF: > { %s14_s15 = sadd.s32 1, %s311_s15  }
 0x14b   : > { %p11_p4 = scmp.ge.s32.totalorder %s14_s15, 4  }
 0x14d   :  { %13 = sbr.rel (!%p11_p4) target bundleno = 1 (0x1), region = 66 }

// kernel: model_forward.8
= control target key start
LH: loop header
LB: loop body
LE: loop exit
PB: predicated region body
PF: predicated region fallthrough
CT: control target
= control target key end

     0   :  { %s1755_s29 = smov 0   ;;  %s1947_s0 = inlined_call_operand.vmem [shape: bf16[2,8,32], index: 0, kind: input, shape index: {}]   ;;  %s1948_s1 = inlined_call_operand.vmem [shape: f32[2,8,1], index: 1, kind: input, shape index: {}]   ;;  %s1949_s2 = inlined_call_operand.vmem [shape: f32[2,1,8], index: 2, kind: input, shape index: {}]   ;;  %s1950_s3 = inlined_call_operand.vmem [shape: bf16[32,96], index: 3, kind: input, shape index: {}]   ;;  %s1951_s4 = inlined_call_operand.vmem [shape: bf16[32,32], index: 4, kind: input, shape index: {}]   ;;  %s1952_s5 = inlined_call_operand.vmem [shape: f32[1,32], index: 5, kind: input, shape index: {}]   ;;  %s1953_s6 = inlined_call_operand.vmem [shape: f32[1,32], index: 6, kind: input, shape index: {}]   ;;  %s1954_s7 = inlined_call_operand.vmem [shape: f32[1,32], index: 7, kind: input, shape index: {}]   ;;  %s1955_s8 = inlined_call_operand.vmem [shape: bf16[32,128], index: 8, kind: input, shape index: {}]   ;;  %s1956_s9 = inlined_call_operand.vmem [shape: f32[1,128], index: 9, kind: input, shape index: {}]   ;;  %s1957_s10 = inlined_call_operand.vmem [shape: bf16[128,32], index: 10, kind: input, shape index: {}]   ;;  %s1958_s11 = inlined_call_operand.vmem [shape: f32[1,32], index: 11, kind: input, shape index: {}]   ;;  %s1959_s12 = inlined_call_operand.vmem [shape: f32[1,32], index: 12, kind: input, shape index: {}]   ;;  %s1960_s13 = inlined_call_operand.vmem [shape: f32[1,32], index: 13, kind: input, shape index: {}]   ;;  %s1961_s14 = inlined_call_operand.vmem [shape: bf16[2,8,32], index: 14, kind: output, shape index: {}]  }
   0x1 LB: > { %s1425_s30 = sadd.s32 4294967295, %s1661_s29   ;;  %p1429_p0 = scmp.ge.s32.totalorder %s1661_s29, 1  ;;  %s1661_s29 = sphi %s1755_s29, %s24_s29  }
   0x2   : > { %p428_p1 = scmp.lt.s32.totalorder %s1661_s29, 3 }
   0x4   : > { %p429_p2 = pnand %p1429_p0, %p428_p1 }
   0x5   : > { %p479_p3 = scmp.lt.s32.totalorder (!%p429_p2), %s1425_s30, 1  ;;  %s1665_s23 = smov (!%p429_p2), 120  }
   0x6   : > { %432 = sbr.rel (%p429_p2) target bundleno = 2442 (0x98a), region = 76  ;;  %s1666_s24 = smov (!%p429_p2), 96  }
   0x7   : > { %s1667_s25 = smov (!%p429_p2), 80   ;;  %s1668_s26 = smov (!%p429_p2), 88  }
   0x8   : > { %s1669_s27 = smov (!%p429_p2), 72   ;;  %s1670_s28 = smov (!%p429_p2), 112  }
   0x9   : > { %s1671_s15 = smov (!%p429_p2), 104   ;;  %s1679_s21 = smov (!%p429_p2), 24  }
   0xb   : > { %v1621_v0 = vld [vmem:[%s1950_s3 + $0x8] sm:$0xff]   ;;  %v1663_v1 = vmov 0.0   ;;  %v1622_v2 = vld [vmem:[%s1950_s3] sm:$0xff]   ;;  %vm1664_vm0 = vmmov 0   ;;  %s1963_s30 = smov (!%p479_p3, %s1425_s30), 1  ;;  %vm512_vm1 = vcmask 261120  }
   0xc   : > { %1502 = vmatprep.subr.bf16.mxu0 %v1663_v1  ;;  %1522 = vmatprep.subr.bf16.mxu1 %v1663_v1  ;;  %s1430_s19 = sshll.u32 %s1963_s30, 2  ;;  %s1431_s16 = sshll.u32 %s1963_s30, 3  ;;  %v1672_v9 = vmov 0   ;;  %vm581_vm2 = vcmask 64512   ;;  %vm647_vm3 = vcmask 1043456   ;;  %vm808_vm4 = vcmask 130112  }
   0xd   : > { %1503 = vmatpush3.bf16.msra.mxu0 %v1621_v0  ;;  %1506 = vmatprep.mubr.msk.bf16.mxu0 %vm1664_vm0, %v1663_v1  ;;  %s482_s22 = scalar_lea.vmem %s1947_s0, %s1430_s19  ;;  %s486_s20 = scalar_lea.vmem %s1948_s1, %s1431_s16  ;;  %vm926_vm5 = vcmask 195712   ;;  %vm1044_vm6 = vcmask 261312   ;;  %vm1349_vm7 = vcmask 257024  }
   0xe   : > { %1504 = vmatprep.subr.bf16.mxu0 %v1663_v1  ;;  %1524 = vmatprep.mubr.msk.bf16.mxu1 %vm1664_vm0, %v1663_v1  ;;  %v495_v3 = vld [vmem:[%s482_s22] sm:$0xf]  ;;  %s493_s18 = scalar_lea.vmem %s1961_s14, %s1430_s19 }
   0xf   : > { %1619 = vset.pattern.permute.xlu1 %v1672_v9  ;;  %1620 = vset.pattern.permute.xlu0 %v1672_v9  ;;  %v556_v10 = vld [vmem:[%s486_s20] sm:$0xff]  ;;  %s1678_s20 = smov 16  }
  0x11   : > { %1505 = vmatpush3.bf16.msra.mxu0 %v1622_v2 }
  0x12   : > { %1510 = vmatprep.subr.bf16.mxu0 %v1663_v1 }
  0x14   : > { %1507 = vmatmul.mubr.msk.bf16.vlgmr.msra.gmra.mxu0 %vm512_vm1, %v495_v3 }
  0x15   : > { %1512 = vmatprep.mubr.msk.bf16.mxu0 %vm1664_vm0, %v1663_v1 }
  0xd4   : > { %v1788_v4 = vpop.f32.mrf.mxu0 }
  0xd5   : > { %v1792_v5 = vpack.c.bf16 %v1788_v4, %v1788_v4 }
  0xd6   : > { %v1508_v6 = vpop.f32.mrf.mxu0 }
  0xd7   : > { %692 = vrot.lane.b32.xlu1 %v1792_v5, %s1665_s23  ;;  %579 = vrot.lane.b32.xlu0 %v1792_v5, %s1666_s24  ;;  %s489_s23 = scalar_lea.vmem %s1949_s2, %s1963_s30  ;;  %s1673_s24 = smov 64  }
  0xd8   : > { %v553_v7 = vpop.f32.mrf.mxu0  ;;  %v1436_v22 = vld [vmem:[%s489_s23] ss:$0 sm:$0xff] }
  0xda   : > { %v1509_v8 = vpop.f32.mrf.mxu0 }
  0xdb   : > { %812 = vrot.lane.b32.xlu1 %v1792_v5, %s1667_s25  ;;  %694 = vrot.lane.b32.xlu0 %v1792_v5, %s1668_s26  ;;  %s1674_s25 = smov 56   ;;  %s1675_s26 = smov 48  }
  0xdf   : > { %930 = vrot.lane.b32.xlu1 %v1792_v5, %s1669_s27  ;;  %810 = vrot.lane.b32.xlu0 %v1792_v5, %s1670_s28  ;;  %s1676_s27 = smov 40   ;;  %s1677_s28 = smov 8  }
  0xe3   : > { %928 = vrot.lane.b32.xlu0 %v1792_v5, %s1671_s15  ;;  %567 = vperm.xlu1 %1619, %v556_v10  }
 0x149   : > { %v580_v11 = vpop.permute.xlu0 %579  ;;  %v693_v13 = vpop.permute.xlu1 %692 }
 0x14a   : > { %v586_v12 = vsel %vm581_vm2, %v580_v11, 0 }
 0x14b   : > { %1511 = vmatpush3.bf16.xpose.msra.mxu0 %v586_v12 }
 0x14c   : > { %1516 = vmatprep.subr.bf16.mxu0 %v1663_v1 }
 0x14d   : > { %v695_v14 = vpop.permute.xlu0 %694  ;;  %v813_v16 = vpop.permute.xlu1 %812 }
 0x14e   : > { %v700_v15 = vsel %vm581_vm2, %v695_v14, 0  ;;  %v818_v17 = vsel %vm581_vm2, %v813_v16, 0 }
 0x14f   : > { %1523 = vmatpush3.bf16.xpose.msra.mxu1 %v700_v15 }
 0x150   : > { %1534 = vmatprep.subr.bf16.mxu1 %v1663_v1 }
 0x151   : > { %v931_v18 = vpop.permute.xlu1 %930  ;;  %v811_v19 = vpop.permute.xlu0 %810 }
 0x152   : > { %1513 = vmatmul.mubr.msk.bf16.vlgmr.msra.gmra.mxu0 %vm581_vm2, %v1792_v5  ;;  %v936_v20 = vsel %vm581_vm2, %v931_v18, 0 }
 0x153   : > { %1518 = vmatprep.mubr.msk.bf16.mxu0 %vm1664_vm0, %v1663_v1 }
 0x155   : > { %v929_v21 = vpop.permute.xlu0 %928 }
 0x156   : > { %1525 = vmatmul.mubr.msk.bf16.vlgmr.msra.gmra.mxu1 %vm581_vm2, %v693_v13 }
 0x157   : > { %1535 = vmatpush3.bf16.xpose.msra.mxu1 %v818_v17  ;;  %1536 = vmatprep.mubr.msk.bf16.mxu1 %vm1664_vm0, %v1663_v1 }
 0x158   : > { %1546 = vmatprep.subr.bf16.mxu1 %v1663_v1 }
 0x15e   : > { %1537 = vmatmul.mubr.msk.bf16.vlgmr.msra.gmra.mxu1 %vm581_vm2, %v811_v19  ;;  %v568_v23 = vpop.permute.xlu1 %567 }
 0x15f   : > { %1547 = vmatpush3.bf16.xpose.msra.mxu1 %v936_v20  ;;  %1548 = vmatprep.mubr.msk.bf16.mxu1 %vm1664_vm0, %v1663_v1  ;;  %v576_v24 = vadd.f32 %v1436_v22, %v568_v23 }
 0x160   : > { %1558 = vmatprep.subr.bf16.mxu1 %v1663_v1 }
 0x166   : > { %1549 = vmatmul.mubr.msk.bf16.vlgmr.msra.gmra.mxu1 %vm581_vm2, %v929_v21 }
 0x167   : > { %1562 = vmatprep.mubr.msk.bf16.mxu1 %vm1664_vm0, %v1663_v1 }
 0x212   : > { %v622_v25 = vpop.f32.mrf.mxu0 }
 0x213   : > { %v628_v26 = vmul.f32 5.656854, %v622_v25 }
 0x214   : > { %v1514_v27 = vpop.f32.mrf.mxu0 }
 0x215   : > { %v629_v28 = vadd.f32 %v628_v26, %v576_v24 }
 0x216   : > { %v625_v29 = vpop.f32.mrf.mxu0  ;;  %v736_v30 = vpop.f32.mrf.mxu1 }
 0x217   : > { %v742_v31 = vmul.f32 5.656854, %v736_v30  ;;  %v630_v32 = vsel %vm581_vm2, %v629_v28, -inf }
 0x218   : > { %v1526_v33 = vpop.f32.mrf.mxu1  ;;  %631 = vmax.xlane.f32.xlu0 %v630_v32  ;;  %v1515_v34 = vpop.f32.mrf.mxu0 }
 0x219   : > { %v743_v35 = vadd.f32 %v742_v31, %v576_v24 }
 0x21a   : > { %v739_v36 = vpop.f32.mrf.mxu1 }
 0x21b   : > { %v744_v37 = vsel %vm581_vm2, %v743_v35, -inf }
 0x21c   : > { %745 = vmax.xlane.f32.xlu1 %v744_v37  ;;  %v1527_v38 = vpop.f32.mrf.mxu1 }
 0x21e   : > { %v854_v39 = vpop.f32.mrf.mxu1 }
 0x21f   : > { %v860_v40 = vmul.f32 5.656854, %v854_v39 }
 0x220   : > { %v1538_v41 = vpop.f32.mrf.mxu1 }
 0x221   : > { %v861_v42 = vadd.f32 %v860_v40, %v576_v24 }
 0x222   : > { %v857_v43 = vpop.f32.mrf.mxu1 }
 0x223   : > { %v862_v44 = vsel %vm581_vm2, %v861_v42, -inf  ;;  %v1623_v43 = vld [vmem:[%s1951_s4 + $0x8] sm:$0xff]  }
 0x224   : > { %v1539_v45 = vpop.f32.mrf.mxu1  ;;  %863 = vmax.xlane.f32.xlu0 %v862_v44  ;;  %1559 = vmatpush3.bf16.msra.mxu1 %v1623_v43  ;;  %v1624_v44 = vld [vmem:[%s1951_s4] sm:$0xff]  }
 0x225   : > { %1560 = vmatprep.subr.bf16.mxu1 %v1663_v1 }
 0x226   : > { %v972_v46 = vpop.f32.mrf.mxu1 }
 0x227   : > { %v978_v47 = vmul.f32 5.656854, %v972_v46 }
 0x228   : > { %v1550_v48 = vpop.f32.mrf.mxu1  ;;  %1561 = vmatpush3.bf16.msra.mxu1 %v1624_v44 }
 0x229   : > { %v979_v49 = vadd.f32 %v978_v47, %v576_v24  ;;  %1574 = vmatprep.subr.bf16.mxu1 %v1663_v1 }
 0x22a   : > { %v975_v50 = vpop.f32.mrf.mxu1 }
 0x22b   : > { %v980_v51 = vsel %vm581_vm2, %v979_v49, -inf }
 0x22c   : > { %v1551_v52 = vpop.f32.mrf.mxu1  ;;  %981 = vmax.xlane.f32.xlu0 %v980_v51 }
 0x2a1   : > { %v632_v53 = vpop.xlane.xlu0 %631 }
 0x2a2   : > { %v633_v54 = vsub.f32 %v629_v28, %v632_v53 }
 0x2a4   : > { %v634_v55 = vmul.f32 1.442695, %v633_v54 }
 0x2a5   : > { %v746_v56 = vpop.xlane.xlu1 %745 }
 0x2a6   : > { %1635 = vpow2.f32 %v634_v55  ;;  %v747_v57 = vsub.f32 %v743_v35, %v746_v56 }
 0x2a8   : > { %v748_v58 = vmul.f32 1.442695, %v747_v57 }
 0x2aa   : > { %1637 = vpow2.f32 %v748_v58  ;;  %v1445_v58 = vld [vmem:[%s1952_s5] ss:$0 sm:$0xff] }
 0x2ad   : > { %v864_v59 = vpop.xlane.xlu0 %863 }
 0x2ae   : > { %v865_v8 = vsub.f32 %v861_v42, %v864_v59 }
 0x2b0   : > { %v866_v9 = vmul.f32 1.442695, %v865_v8 }
 0x2b3   : > { %v1636_v60 = vpop.eup %1635 }
 0x2b4   : > { %v636_v61 = vsel %vm581_vm2, %v1636_v60, 0.0 }
 0x2b5   : > { %637 = vadd.xlane.f32.xlu1 %v636_v61  ;;  %v982_v62 = vpop.xlane.xlu0 %981 }
 0x2b6   : > { %v983_v63 = vsub.f32 %v979_v49, %v982_v62 }
 0x2b7   : > { %v1638_v0 = vpop.eup %1637 }
 0x2b8   : > { %v984_v2 = vmul.f32 1.442695, %v983_v63  ;;  %v750_v3 = vsel %vm581_vm2, %v1638_v0, 0.0 }
 0x2b9   : > { %751 = vadd.xlane.f32.xlu0 %v750_v3 }
 0x2ba   : > { %1639 = vpow2.f32 %v984_v2 }
 0x2bb   : > { %1641 = vpow2.f32 %v866_v9 }
 0x2c6   : > { %642 = vrot.lane.b32.xlu1 %v1792_v5, %s1673_s24 }
 0x2c7   : > { %v1640_v6 = vpop.eup %1639 }
 0x2c8   : > { %v986_v7 = vsel %vm581_vm2, %v1640_v6, 0.0  ;;  %v1642_v10 = vpop.eup %1641 }
 0x2c9   : > { %987 = vadd.xlane.f32.xlu0 %v986_v7  ;;  %v868_v11 = vsel %vm581_vm2, %v1642_v10, 0.0 }
 0x2df   : > { %756 = vrot.lane.b32.xlu0 %v1792_v5, %s1674_s25 }
 0x2ea   : > { %869 = vadd.xlane.f32.xlu1 %v868_v11  ;;  %v1627_v11 = vld [vmem:[%s1957_s10 + $0x38] sm:$0xff]  }
 0x2fb   : > { %874 = vrot.lane.b32.xlu1 %v1792_v5, %s1675_s26 }
 0x2ff   : > { %992 = vrot.lane.b32.xlu1 %v1792_v5, %s1676_s27 }
 0x33e   : > { %v638_v12 = vpop.xlane.xlu1 %637 }
 0x33f   : > { %1643 = vrcp.f32 %v638_v12  ;;  %v1628_v12 = vld [vmem:[%s1957_s10 + $0x30] sm:$0xff]  }
 0x342   : > { %v643_v13 = vpop.permute.xlu1 %642  ;;  %v752_v14 = vpop.xlane.xlu0 %751 }
 0x343   : > { %v649_v15 = vsel %vm647_vm3, %v643_v13, 0  ;;  %1645 = vrcp.f32 %v752_v14  ;;  %v1629_v13 = vld [vmem:[%s1957_s10 + $0x28] sm:$0xff]   ;;  %v1630_v14 = vld [vmem:[%s1957_s10 + $0x20] sm:$0xff]  }
 0x344   : > { %1517 = vmatpush3.bf16.msra.mxu0 %v649_v15  ;;  %v1631_v15 = vld [vmem:[%s1957_s10 + $0x18] sm:$0xff]  }
 0x345   : > { %1528 = vmatprep.subr.bf16.mxu0 %v1663_v1 }
 0x34c   : > { %v1644_v16 = vpop.eup %1643 }
 0x34d   : > { %v640_v17 = vmul.f32 %v1644_v16, %v1636_v60  ;;  %v1632_v16 = vld [vmem:[%s1957_s10 + $0x10] sm:$0xff]  }
 0x34f   : > { %v641_v18 = vpack.c.bf16 %v640_v17, %v640_v17 }
 0x350   : > { %v1646_v19 = vpop.eup %1645 }
 0x351   : > { %1519 = vmatmul.mubr.msk.bf16.vlgmr.msra.gmra.mxu0 %vm581_vm2, %v641_v18  ;;  %v754_v5 = vmul.f32 %v1646_v19, %v1638_v0 }
 0x352   : > { %v988_v20 = vpop.xlane.xlu0 %987  ;;  %1530 = vmatprep.mubr.msk.bf16.mxu0 %vm1664_vm0, %v1663_v1 }
 0x353   : > { %v755_v23 = vpack.c.bf16 %v754_v5, %v754_v5  ;;  %v1449_v5 = vld [vmem:[%s1953_s6] ss:$0 sm:$0xff] }
 0x356   : > { %v757_v21 = vpop.permute.xlu0 %756 }
 0x357   : > { %v762_v22 = vsel %vm647_vm3, %v757_v21, 0 }
 0x358   : > { %1529 = vmatpush3.bf16.msra.mxu0 %v762_v22  ;;  %v1450_v22 = vld [vmem:[%s1954_s7] ss:$0 sm:$0xff] }
 0x359   : > { %1540 = vmatprep.subr.bf16.mxu0 %v1663_v1 }
 0x35b   : > { %1531 = vmatmul.mubr.msk.bf16.vlgmr.msra.gmra.mxu0 %vm581_vm2, %v755_v23 }
 0x35c   : > { %1542 = vmatprep.mubr.msk.bf16.mxu0 %vm1664_vm0, %v1663_v1 }
 0x373   : > { %v870_v24 = vpop.xlane.xlu1 %869 }
 0x374   : > { %1647 = vrcp.f32 %v870_v24 }
 0x375   : > { %1649 = vrcp.f32 %v988_v20 }
 0x377   : > { %v875_v25 = vpop.permute.xlu1 %874 }
 0x378   : > { %v880_v26 = vsel %vm647_vm3, %v875_v25, 0 }
 0x379   : > { %1541 = vmatpush3.bf16.msra.mxu0 %v880_v26  ;;  %v1633_v26 = vld [vmem:[%s1957_s10 + $0x8] sm:$0xff]  }
 0x37a   : > { %1552 = vmatprep.subr.bf16.mxu0 %v1663_v1 }
 0x37b   : > { %v993_v29 = vpop.permute.xlu1 %992 }
 0x37c   : > { %v998_v32 = vsel %vm647_vm3, %v993_v29, 0 }
 0x381   : > { %v1648_v27 = vpop.eup %1647 }
 0x382   : > { %v872_v28 = vmul.f32 %v1648_v27, %v1642_v10  ;;  %v1650_v31 = vpop.eup %1649  ;;  %v1625_v10 = vld [vmem:[%s1955_s8 + $0x8] sm:$0xff]   ;;  %v1634_v27 = vld [vmem:[%s1957_s10] sm:$0xff]  }
 0x383   : > { %v990_v33 = vmul.f32 %v1650_v31, %v1640_v6 }
 0x384   : > { %v873_v30 = vpack.c.bf16 %v872_v28, %v872_v28  ;;  %v1451_v28 = vld [vmem:[%s1956_s9] ss:$0 sm:$0xff] }
 0x385   : > { %v991_v34 = vpack.c.bf16 %v990_v33, %v990_v33 }
 0x386   : > { %1543 = vmatmul.mubr.msk.bf16.vlgmr.msra.gmra.mxu0 %vm581_vm2, %v873_v30 }
 0x387   : > { %1553 = vmatpush3.bf16.msra.mxu0 %v998_v32  ;;  %1554 = vmatprep.mubr.msk.bf16.mxu0 %vm1664_vm0, %v1663_v1 }
 0x388   : > { %1566 = vmatprep.subr.bf16.mxu0 %v1663_v1 }
 0x38e   : > { %1555 = vmatmul.mubr.msk.bf16.vlgmr.msra.gmra.mxu0 %vm581_vm2, %v991_v34 }
 0x38f   : > { %1570 = vmatprep.mubr.msk.bf16.mxu0 %vm1664_vm0, %v1663_v1  ;;  %1567 = vmatpush3.bf16.msra.mxu0 %v1625_v10 }
 0x390   : > { %1568 = vmatprep.subr.bf16.mxu0 %v1663_v1 }
 0x411   : > { %v685_v35 = vpop.f32.mrf.mxu0 }
 0x412   : > { %691 = vst.msk [vmem:[#allocation2] sm:$0xff] %vm581_vm2, %v685_v35 }
 0x413   : > { %v1520_v36 = vpop.f32.mrf.mxu0 }
 0x415   : > { %v688_v37 = vpop.f32.mrf.mxu0 }
 0x417   : > { %v1521_v38 = vpop.f32.mrf.mxu0 }
 0x41b   : > { %v798_v39 = vpop.f32.mrf.mxu0 }
 0x41c   : > { %805 = vrot.lane.b32.xlu0 %v798_v39, %s1677_s28 }
 0x41d   : > { %v1532_v40 = vpop.f32.mrf.mxu0 }
 0x41f   : > { %v801_v41 = vpop.f32.mrf.mxu0 }
 0x421   : > { %v1533_v42 = vpop.f32.mrf.mxu0 }
 0x446   : > { %v916_v45 = vpop.f32.mrf.mxu0 }
 0x447   : > { %923 = vrot.lane.b32.xlu1 %v916_v45, %s1678_s20 }
 0x448   : > { %v1544_v46 = vpop.f32.mrf.mxu0 }
 0x44a   : > { %v919_v47 = vpop.f32.mrf.mxu0 }
 0x44c   : > { %v1545_v48 = vpop.f32.mrf.mxu0 }
 0x44e   : > { %v1034_v49 = vpop.f32.mrf.mxu0 }
 0x44f   : > { %1041 = vrot.lane.b32.xlu0 %v1034_v49, %s1679_s21 }
 0x450   : > { %v1556_v50 = vpop.f32.mrf.mxu0 }
 0x452   : > { %v1037_v51 = vpop.f32.mrf.mxu0 }
 0x454   : > { %v1557_v52 = vpop.f32.mrf.mxu0 }
 0x455   : > { %v1464_v52 = vld [vmem:[%s1959_s12] ss:$0 sm:$0xff] }
 0x48e   : > { %v806_v53 = vpop.permute.xlu0 %805 }
 0x48f   : > { %809 = vst.msk [vmem:[#allocation2] sm:$0xff] %vm808_vm4, %v806_v53 }
 0x4b9   : > { %v924_v54 = vpop.permute.xlu1 %923 }
 0x4ba   : > { %927 = vst.msk [vmem:[#allocation2] sm:$0xff] %vm926_vm5, %v924_v54  ;;  %v1465_v54 = vld [vmem:[%s1960_s13] ss:$0 sm:$0xff] }
 0x4c1   : > { %v1042_v55 = vpop.permute.xlu0 %1041 }
 0x4c2   : > { %1045 = vst.msk [vmem:[#allocation2] sm:$0xff] %vm1044_vm6, %v1042_v55 }
 0x4c9   : > { %v1046_v56 = vld [vmem:[#allocation2] sm:$0xff] }
 0x4ca   : > { %v1047_v57 = vpack.c.bf16 %v1046_v56, %v1046_v56 }
 0x4cc   : > { %1563 = vmatmul.mubr.msk.bf16.vlgmr.msra.gmra.mxu1 %vm512_vm1, %v1047_v57 }
 0x4cd   : > { %1590 = vmatprep.mubr.msk.bf16.mxu1 %vm1664_vm0, %v1663_v1  ;;  %1575 = vmatpush3.bf16.msra.mxu1 %v1627_v11 }
 0x4ce   : > { %1576 = vmatprep.subr.bf16.mxu1 %v1663_v1 }
 0x4d1   : > { %1577 = vmatpush3.bf16.msra.mxu1 %v1628_v12 }
 0x4d2   : > { %1578 = vmatprep.subr.bf16.mxu1 %v1663_v1 }
 0x4d5   : > { %1579 = vmatpush3.bf16.msra.mxu1 %v1629_v13 }
 0x4d6   : > { %1580 = vmatprep.subr.bf16.mxu1 %v1663_v1 }
 0x4d9   : > { %1581 = vmatpush3.bf16.msra.mxu1 %v1630_v14 }
 0x4da   : > { %1582 = vmatprep.subr.bf16.mxu1 %v1663_v1 }
 0x4dd   : > { %1583 = vmatpush3.bf16.msra.mxu1 %v1631_v15 }
 0x4de   : > { %1584 = vmatprep.subr.bf16.mxu1 %v1663_v1 }
 0x4e1   : > { %1585 = vmatpush3.bf16.msra.mxu1 %v1632_v16 }
 0x4e2   : > { %1586 = vmatprep.subr.bf16.mxu1 %v1663_v1 }
 0x4e5   : > { %1587 = vmatpush3.bf16.msra.mxu1 %v1633_v26 }
 0x4e6   : > { %1588 = vmatprep.subr.bf16.mxu1 %v1663_v1  ;;  %v1455_v1 = vld [vmem:[%s1958_s11] ss:$0 sm:$0xff] }
 0x4e9   : > { %1589 = vmatpush3.bf16.msra.mxu1 %v1634_v27 }
 0x58c   : > { %v1103_v59 = vpop.f32.mrf.mxu1 }
 0x58d   : > { %v1104_v60 = vadd.f32 %v1445_v58, %v1103_v59 }
 0x58e   : > { %v1564_v61 = vpop.f32.mrf.mxu1 }
 0x58f   : > { %v1109_v62 = vadd.f32 %v1104_v60, %v1788_v4  ;;  %v1626_v4 = vld [vmem:[%s1955_s8] sm:$0xff]  }
 0x590   : > { %v1106_v63 = vpop.f32.mrf.mxu1  ;;  %1569 = vmatpush3.bf16.msra.mxu0 %v1626_v4 }
 0x591   : > { %v1110_v0 = vsel %vm512_vm1, %v1109_v62, 0.0 }
 0x592   : > { %1111 = vadd.xlane.f32.xlu1 %v1110_v0  ;;  %v1565_v2 = vpop.f32.mrf.mxu1 }
 0x61b   : > { %v1112_v3 = vpop.xlane.xlu1 %1111 }
 0x61c   : > { %v1114_v6 = vmul.f32 0.03125, %v1112_v3 }
 0x61e   : > { %v1115_v7 = vsub.f32 %v1109_v62, %v1114_v6 }
 0x620   : > { %v1116_v8 = vmul.f32 %v1115_v7, %v1115_v7 }
 0x622   : > { %v1117_v9 = vsel %vm512_vm1, %v1116_v8, 0.0 }
 0x623   : > { %1118 = vadd.xlane.f32.xlu0 %v1117_v9 }
 0x6ac   : > { %v1119_v17 = vpop.xlane.xlu0 %1118 }
 0x6ad   : > { %v1120_v18 = vmul.f32 0.03125, %v1119_v17 }
 0x6af   : > { %v1121_v19 = vadd.f32 1e-06, %v1120_v18 }
 0x6b1   : > { %1651 = vrsqrt.f32 %v1121_v19 }
 0x6be   : > { %v1652_v20 = vpop.eup %1651 }
 0x6bf   : > { %v1123_v21 = vmul.f32 %v1652_v20, %v1115_v7 }
 0x6c1   : > { %v1130_v23 = vmul.f32 %v1449_v5, %v1123_v21 }
 0x6c3   : > { %v1137_v24 = vadd.f32 %v1450_v22, %v1130_v23 }
 0x6c5   : > { %v1162_v25 = vpack.c.bf16 %v1137_v24, %v1137_v24 }
 0x6c7   : > { %1571 = vmatmul.mubr.msk.bf16.vlgmr.msra.gmra.mxu0 %vm512_vm1, %v1162_v25 }
 0x787   : > { %v1218_v29 = vpop.f32.mrf.mxu0 }
 0x788   : > { %v1219_v30 = vadd.f32 %v1451_v28, %v1218_v29 }
 0x789   : > { %v1572_v31 = vpop.f32.mrf.mxu0 }
 0x78a   : > { %v1224_v32 = vmax.f32 %v1219_v30, 0.0 }
 0x78b   : > { %v1221_v33 = vpop.f32.mrf.mxu0 }
 0x78c   : > { %v1225_v34 = vpack.c.bf16 %v1224_v32, %v1224_v32 }
 0x78d   : > { %v1573_v35 = vpop.f32.mrf.mxu0 }
 0x78e   : > { %1591 = vmatmul.mubr.bf16.vlgmr.msra.gmra.mxu1 %v1225_v34 }
 0x84e   : > { %v1314_v36 = vpop.f32.mrf.mxu1 }
 0x84f   : > { %v1315_v37 = vadd.f32 %v1455_v1, %v1314_v36 }
 0x850   : > { %v1592_v38 = vpop.f32.mrf.mxu1 }
 0x851   : > { %v1320_v39 = vadd.f32 %v1315_v37, %v1137_v24 }
 0x852   : > { %v1317_v40 = vpop.f32.mrf.mxu1 }
 0x853   : > { %v1321_v41 = vsel %vm512_vm1, %v1320_v39, 0.0 }
 0x854   : > { %1322 = vadd.xlane.f32.xlu0 %v1321_v41  ;;  %v1593_v42 = vpop.f32.mrf.mxu1 }
 0x8dd   : > { %v1323_v43 = vpop.xlane.xlu0 %1322 }
 0x8de   : > { %v1324_v44 = vmul.f32 0.03125, %v1323_v43 }
 0x8e0   : > { %v1325_v45 = vsub.f32 %v1320_v39, %v1324_v44 }
 0x8e2   : > { %v1326_v46 = vmul.f32 %v1325_v45, %v1325_v45 }
 0x8e4   : > { %v1327_v47 = vsel %vm512_vm1, %v1326_v46, 0.0 }
 0x8e5   : > { %1328 = vadd.xlane.f32.xlu1 %v1327_v47 }
 0x96e   : > { %v1329_v48 = vpop.xlane.xlu1 %1328 }
 0x96f   : > { %v1330_v49 = vmul.f32 0.03125, %v1329_v48 }
 0x971   : > { %v1331_v50 = vadd.f32 1e-06, %v1330_v49 }
 0x973   : > { %1653 = vrsqrt.f32 %v1331_v50 }
 0x980   : > { %v1654_v51 = vpop.eup %1653 }
 0x981   : > { %v1333_v53 = vmul.f32 %v1654_v51, %v1325_v45 }
 0x983   : > { %v1340_v55 = vmul.f32 %v1464_v52, %v1333_v53 }
 0x985   : > { %v1347_v56 = vadd.f32 %v1465_v54, %v1340_v55 }
 0x987   : > { %v1348_v57 = vpack.c.bf16 %v1347_v56, %v1347_v56 }
 0x989   : > { %1350 = vst.msk [vmem:[%s493_s18] sm:$0xf] %vm1349_vm7, %v1348_v57 }
 0x98a PF: > { %s24_s29 = sadd.s32 1, %s1661_s29  }
 0x98b   : > { %p21_p4 = scmp.ge.s32.totalorder %s24_s29, 4  }
 0x98d   :  { %23 = sbr.rel (!%p21_p4) target bundleno = 1 (0x1), region = 112 }

// kernel: model_forward.11
= control target key start
LH: loop header
LB: loop body
LE: loop exit
PB: predicated region body
PF: predicated region fallthrough
CT: control target
= control target key end

     0   :  { %s2536_s24 = smov 0   ;;  %s2836_s0 = inlined_call_operand.vmem [shape: bf16[2,8,32], index: 0, kind: input, shape index: {}]   ;;  %s2837_s1 = inlined_call_operand.vmem [shape: bf16[2,8,32], index: 1, kind: input, shape index: {}]   ;;  %s2838_s2 = inlined_call_operand.vmem [shape: f32[2,8,1], index: 2, kind: input, shape index: {}]   ;;  %s2839_s3 = inlined_call_operand.vmem [shape: f32[2,1,8], index: 3, kind: input, shape index: {}]   ;;  %s2840_s4 = inlined_call_operand.vmem [shape: bf16[32,96], index: 4, kind: input, shape index: {}]   ;;  %s2841_s5 = inlined_call_operand.vmem [shape: bf16[32,32], index: 5, kind: input, shape index: {}]   ;;  %s2842_s6 = inlined_call_operand.vmem [shape: f32[1,32], index: 6, kind: input, shape index: {}]   ;;  %s2843_s7 = inlined_call_operand.vmem [shape: f32[1,32], index: 7, kind: input, shape index: {}]   ;;  %s2844_s8 = inlined_call_operand.vmem [shape: f32[1,32], index: 8, kind: input, shape index: {}]   ;;  %s2845_s9 = inlined_call_operand.vmem [shape: bf16[32,32], index: 9, kind: input, shape index: {}]   ;;  %s2846_s10 = inlined_call_operand.vmem [shape: bf16[32,64], index: 10, kind: input, shape index: {}]   ;;  %s2847_s11 = inlined_call_operand.vmem [shape: bf16[32,32], index: 11, kind: input, shape index: {}]   ;;  %s2848_s12 = inlined_call_operand.vmem [shape: f32[1,32], index: 12, kind: input, shape index: {}]   ;;  %s2849_s13 = inlined_call_operand.vmem [shape: f32[1,32], index: 13, kind: input, shape index: {}]   ;;  %s2850_s14 = inlined_call_operand.vmem [shape: f32[1,32], index: 14, kind: input, shape index: {}]   ;;  %s2851_s15 = inlined_call_operand.vmem [shape: bf16[32,32], index: 15, kind: input, shape index: {}]   ;;  %s2852_s16 = inlined_call_operand.vmem [shape: f32[1,32], index: 16, kind: input, shape index: {}]   ;;  %s2853_s17 = inlined_call_operand.vmem [shape: bf16[2,8,32], index: 17, kind: output, shape index: {}]  }
   0x1   :  { %2860 = sst [smem:[#allocation3_spill]] %s2836_s0 }
   0x2   :  { %2861 = sst [smem:[#allocation4_spill]] %s2837_s1 }
   0x3 LB: > { %s2096_s25 = sadd.s32 4294967295, %s2426_s24   ;;  %p2100_p0 = scmp.ge.s32.totalorder %s2426_s24, 1  ;;  %s2426_s24 = sphi %s2536_s24, %s27_s24  }
   0x4   : > { %p512_p1 = scmp.lt.s32.totalorder %s2426_s24, 3 }
   0x6   : > { %p513_p2 = pnand %p2100_p0, %p512_p1 }
   0x7   : > { %p573_p3 = scmp.lt.s32.totalorder (!%p513_p2), %s2096_s25, 1  ;;  %s2862_s19 = sld [smem:[#allocation3_spill]] (!%p513_p2) }
   0x8   : > { %516 = sbr.rel (%p513_p2) target bundleno = 3608 (0xe18), region = 88  ;;  %s2430_s20 = smov (!%p513_p2), 120  }
   0x9   : > { %s2431_s21 = smov (!%p513_p2), 96   ;;  %s2859_s22 = smov (!%p513_p2), 80  }
   0xa   : > { %s2857_s23 = smov (!%p513_p2), 88   ;;  %s2858_s26 = smov (!%p513_p2), 72  }
   0xb   : > { %s2435_s27 = smov (!%p513_p2), 112   ;;  %s2436_s28 = smov (!%p513_p2), 104  }
   0xc   : > { %s2440_s18 = smov (!%p513_p2), 56  }
   0xd   : > { %v2372_v0 = vld [vmem:[%s2840_s4 + $0x8] sm:$0xff]   ;;  %v2428_v1 = vmov 0.0   ;;  %v2373_v2 = vld [vmem:[%s2840_s4] sm:$0xff]   ;;  %vm2429_vm0 = vmmov 0   ;;  %s2871_s25 = smov (!%p573_p3, %s2096_s25), 1  ;;  %vm610_vm1 = vcmask 261120   ;;  %v675_v22 = vlaneseq }
   0xe   : > { %2200 = vmatprep.subr.bf16.mxu0 %v2428_v1  ;;  %2208 = vmatprep.subr.bf16.mxu1 %v2428_v1  ;;  %s2560_s0 = sshll.u32 %s2871_s25, 2  ;;  %s2103_s29 = sshll.u32 %s2871_s25, 3  ;;  %v2437_v9 = vmov 0   ;;  %vm686_vm2 = vcmask 64512   ;;  %v2438_v28 = vmov -1e+30  }
   0xf   : > { %2201 = vmatpush3.bf16.msra.mxu0 %v2372_v0  ;;  %2204 = vmatprep.mubr.msk.bf16.mxu0 %vm2429_vm0, %v2428_v1  ;;  %s576_s1 = scalar_lea.vmem %s2862_s19, %s2560_s0  ;;  %s584_s19 = scalar_lea.vmem %s2838_s2, %s2103_s29  ;;  %v676_v23 = vshrl.u32 %v675_v22, 7  ;;  %v678_v24 = vand.u32 127, %v675_v22  ;;  %vm752_vm4 = vcmask 1043456   ;;  %vm913_vm5 = vcmask 130112  }
  0x10   : > { %2202 = vmatprep.subr.bf16.mxu0 %v2428_v1  ;;  %2210 = vmatprep.mubr.msk.bf16.mxu1 %vm2429_vm0, %v2428_v1  ;;  %v593_v3 = vld [vmem:[%s576_s1] sm:$0xf]  ;;  %s587_s30 = scalar_lea.vmem %s2839_s3, %s2871_s25  ;;  %s2439_s25 = smov 64   ;;  %vm1031_vm6 = vcmask 195712   ;;  %vm1149_vm7 = vcmask 261312   ;;  %vm2008_vm8 = vcmask 257024  }
  0x11   : > { %2370 = vset.pattern.permute.xlu1 %v2437_v9  ;;  %2371 = vset.pattern.permute.xlu0 %v2437_v9  ;;  %v2594_v10 = vld [vmem:[%s584_s19] sm:$0xff]  ;;  %vm679_vm3 = vcmp.ge.s32.totalorder %v676_v23, %v678_v24  ;;  %s2441_s19 = smov 48   ;;  %s2442_s1 = smov 40  }
  0x12   : > { %v2622_v25 = vld [vmem:[%s587_s30] ss:$0 sm:$0xff]  ;;  %v2625_v29 = vsel %vm679_vm3, 0.0, %v2438_v28  ;;  %s2856_s29 = smov 8   ;;  %s2854_s30 = smov 24  }
  0x13   : > { %2203 = vmatpush3.bf16.msra.mxu0 %v2373_v2 }
  0x14   : > { %2214 = vmatprep.subr.bf16.mxu0 %v2428_v1 }
  0x16   : > { %2205 = vmatmul.mubr.msk.bf16.vlgmr.msra.gmra.mxu0 %vm610_vm1, %v593_v3 }
  0x17   : > { %2216 = vmatprep.mubr.msk.bf16.mxu0 %vm2429_vm0, %v2428_v1 }
  0xd6   : > { %v2570_v4 = vpop.f32.mrf.mxu0 }
  0xd7   : > { %v2574_v5 = vpack.c.bf16 %v2570_v4, %v2570_v4 }
  0xd8   : > { %v2206_v6 = vpop.f32.mrf.mxu0 }
  0xd9   : > { %797 = vrot.lane.b32.xlu1 %v2574_v5, %s2430_s20  ;;  %684 = vrot.lane.b32.xlu0 %v2574_v5, %s2431_s21 }
  0xda   : > { %v651_v7 = vpop.f32.mrf.mxu0 }
  0xdc   : > { %v2207_v8 = vpop.f32.mrf.mxu0 }
  0xdd   : > { %917 = vrot.lane.b32.xlu1 %v2574_v5, %s2859_s22  ;;  %799 = vrot.lane.b32.xlu0 %v2574_v5, %s2857_s23  ;;  %s2863_s23 = sld [smem:[#allocation4_spill]]  ;;  %s2869_s22 = smov 24  }
  0xe1   : > { %1035 = vrot.lane.b32.xlu1 %v2574_v5, %s2858_s26  ;;  %915 = vrot.lane.b32.xlu0 %v2574_v5, %s2435_s27 }
  0xe3   : > { %s580_s26 = scalar_lea.vmem %s2863_s23, %s2560_s0 }
  0xe5   : > { %1033 = vrot.lane.b32.xlu0 %v2574_v5, %s2436_s28  ;;  %665 = vperm.xlu1 %2370, %v2594_v10  }
 0x14b   : > { %v685_v11 = vpop.permute.xlu0 %684  ;;  %v798_v14 = vpop.permute.xlu1 %797 }
 0x14c   : > { %v691_v12 = vsel %vm686_vm2, %v685_v11, 0 }
 0x14d   : > { %2209 = vmatpush3.bf16.xpose.msra.mxu1 %v691_v12 }
 0x14e   : > { %2220 = vmatprep.subr.bf16.mxu1 %v2428_v1 }
 0x14f   : > { %v800_v13 = vpop.permute.xlu0 %799  ;;  %v918_v16 = vpop.permute.xlu1 %917 }
 0x150   : > { %v805_v15 = vsel %vm686_vm2, %v800_v13, 0  ;;  %v923_v17 = vsel %vm686_vm2, %v918_v16, 0 }
 0x153   : > { %v1036_v18 = vpop.permute.xlu1 %1035  ;;  %v916_v19 = vpop.permute.xlu0 %915 }
 0x154   : > { %2211 = vmatmul.mubr.msk.bf16.vlgmr.msra.gmra.mxu1 %vm686_vm2, %v2574_v5  ;;  %v1041_v20 = vsel %vm686_vm2, %v1036_v18, 0 }
 0x155   : > { %2221 = vmatpush3.bf16.xpose.msra.mxu1 %v805_v15  ;;  %2222 = vmatprep.mubr.msk.bf16.mxu1 %vm2429_vm0, %v2428_v1 }
 0x156   : > { %2232 = vmatprep.subr.bf16.mxu1 %v2428_v1 }
 0x157   : > { %v1034_v21 = vpop.permute.xlu0 %1033 }
 0x15c   : > { %2223 = vmatmul.mubr.msk.bf16.vlgmr.msra.gmra.mxu1 %vm686_vm2, %v798_v14 }
 0x15d   : > { %2233 = vmatpush3.bf16.xpose.msra.mxu1 %v923_v17  ;;  %2234 = vmatprep.mubr.msk.bf16.mxu1 %vm2429_vm0, %v2428_v1 }
 0x15e   : > { %2244 = vmatprep.subr.bf16.mxu1 %v2428_v1 }
 0x160   : > { %v666_v26 = vpop.permute.xlu1 %665 }
 0x161   : > { %v674_v27 = vadd.f32 %v2622_v25, %v666_v26 }
 0x163   : > { %v681_v30 = vadd.f32 %v2625_v29, %v674_v27 }
 0x164   : > { %2235 = vmatmul.mubr.msk.bf16.vlgmr.msra.gmra.mxu1 %vm686_vm2, %v916_v19 }
 0x165   : > { %2245 = vmatpush3.bf16.xpose.msra.mxu1 %v1041_v20  ;;  %2246 = vmatprep.mubr.msk.bf16.mxu1 %vm2429_vm0, %v2428_v1 }
 0x166   : > { %2256 = vmatprep.subr.bf16.mxu1 %v2428_v1 }
 0x16c   : > { %2247 = vmatmul.mubr.msk.bf16.vlgmr.msra.gmra.mxu1 %vm686_vm2, %v1034_v21 }
 0x16d   : > { %2260 = vmatprep.mubr.msk.bf16.mxu1 %vm2429_vm0, %v2428_v1 }
 0x214   : > { %v727_v31 = vpop.f32.mrf.mxu1 }
 0x215   : > { %v733_v32 = vmul.f32 5.656854, %v727_v31 }
 0x216   : > { %v2212_v33 = vpop.f32.mrf.mxu1 }
 0x217   : > { %v734_v34 = vadd.f32 %v733_v32, %v681_v30 }
 0x218   : > { %v730_v35 = vpop.f32.mrf.mxu1 }
 0x219   : > { %v735_v36 = vsel %vm686_vm2, %v734_v34, -inf }
 0x21a   : > { %736 = vmax.xlane.f32.xlu0 %v735_v36  ;;  %v2213_v37 = vpop.f32.mrf.mxu1 }
 0x21c   : > { %v841_v38 = vpop.f32.mrf.mxu1 }
 0x21d   : > { %v847_v39 = vmul.f32 5.656854, %v841_v38 }
 0x21e   : > { %v2224_v40 = vpop.f32.mrf.mxu1 }
 0x21f   : > { %v848_v41 = vadd.f32 %v847_v39, %v681_v30 }
 0x220   : > { %v844_v42 = vpop.f32.mrf.mxu1 }
 0x221   : > { %v849_v43 = vsel %vm686_vm2, %v848_v41, -inf }
 0x222   : > { %850 = vmax.xlane.f32.xlu1 %v849_v43  ;;  %v2225_v44 = vpop.f32.mrf.mxu1 }
 0x224   : > { %v959_v45 = vpop.f32.mrf.mxu1 }
 0x225   : > { %v965_v46 = vmul.f32 5.656854, %v959_v45 }
 0x226   : > { %v2236_v47 = vpop.f32.mrf.mxu1 }
 0x227   : > { %v966_v48 = vadd.f32 %v965_v46, %v681_v30 }
 0x228   : > { %v962_v49 = vpop.f32.mrf.mxu1 }
 0x229   : > { %v967_v50 = vsel %vm686_vm2, %v966_v48, -inf }
 0x22a   : > { %968 = vmax.xlane.f32.xlu0 %v967_v50  ;;  %v2237_v51 = vpop.f32.mrf.mxu1 }
 0x22c   : > { %v1077_v52 = vpop.f32.mrf.mxu1 }
 0x22d   : > { %v1083_v53 = vmul.f32 5.656854, %v1077_v52  ;;  %v2374_v52 = vld [vmem:[%s2841_s5 + $0x8] sm:$0xff]  }
 0x22e   : > { %v2248_v54 = vpop.f32.mrf.mxu1  ;;  %2257 = vmatpush3.bf16.msra.mxu1 %v2374_v52 }
 0x22f   : > { %v1084_v55 = vadd.f32 %v1083_v53, %v681_v30  ;;  %v2375_v53 = vld [vmem:[%s2841_s5] sm:$0xff]   ;;  %2258 = vmatprep.subr.bf16.mxu1 %v2428_v1 }
 0x230   : > { %v1080_v56 = vpop.f32.mrf.mxu1 }
 0x231   : > { %v1085_v57 = vsel %vm686_vm2, %v1084_v55, -inf }
 0x232   : > { %1086 = vmax.xlane.f32.xlu0 %v1085_v57  ;;  %v2249_v58 = vpop.f32.mrf.mxu1  ;;  %2259 = vmatpush3.bf16.msra.mxu1 %v2375_v53 }
 0x233   : > { %2272 = vmatprep.subr.bf16.mxu1 %v2428_v1 }
 0x2a3   : > { %v737_v59 = vpop.xlane.xlu0 %736 }
 0x2a4   : > { %v738_v60 = vsub.f32 %v734_v34, %v737_v59 }
 0x2a6   : > { %v739_v61 = vmul.f32 1.442695, %v738_v60 }
 0x2a8   : > { %2384 = vpow2.f32 %v739_v61 }
 0x2ab   : > { %v851_v62 = vpop.xlane.xlu1 %850 }
 0x2ac   : > { %v852_v63 = vsub.f32 %v848_v41, %v851_v62 }
 0x2ae   : > { %v853_v0 = vmul.f32 1.442695, %v852_v63 }
 0x2b0   : > { %2386 = vpow2.f32 %v853_v0 }
 0x2b3   : > { %v969_v6 = vpop.xlane.xlu0 %968 }
 0x2b4   : > { %v970_v15 = vsub.f32 %v966_v48, %v969_v6  ;;  %v2117_v6 = vld [vmem:[%s2842_s6] ss:$0 sm:$0xff] }
 0x2b5   : > { %v2385_v2 = vpop.eup %2384 }
 0x2b6   : > { %v741_v3 = vsel %vm686_vm2, %v2385_v2, 0.0  ;;  %v971_v16 = vmul.f32 1.442695, %v970_v15 }
 0x2b7   : > { %742 = vadd.xlane.f32.xlu1 %v741_v3 }
 0x2bb   : > { %v1087_v7 = vpop.xlane.xlu0 %1086 }
 0x2bc   : > { %v1088_v8 = vsub.f32 %v1084_v55, %v1087_v7 }
 0x2bd   : > { %v2387_v9 = vpop.eup %2386 }
 0x2be   : > { %v1089_v11 = vmul.f32 1.442695, %v1088_v8  ;;  %v855_v12 = vsel %vm686_vm2, %v2387_v9, 0.0 }
 0x2bf   : > { %856 = vadd.xlane.f32.xlu0 %v855_v12 }
 0x2c0   : > { %2388 = vpow2.f32 %v1089_v11 }
 0x2c1   : > { %2390 = vpow2.f32 %v971_v16 }
 0x2c8   : > { %747 = vrot.lane.b32.xlu1 %v2574_v5, %s2439_s25  ;;  %s2868_s25 = smov 16  }
 0x2cd   : > { %v2389_v13 = vpop.eup %2388 }
 0x2ce   : > { %v1091_v14 = vsel %vm686_vm2, %v2389_v13, 0.0  ;;  %v2391_v17 = vpop.eup %2390 }
 0x2cf   : > { %1092 = vadd.xlane.f32.xlu0 %v1091_v14  ;;  %v973_v18 = vsel %vm686_vm2, %v2391_v17, 0.0 }
 0x2e5   : > { %861 = vrot.lane.b32.xlu0 %v2574_v5, %s2440_s18 }
 0x2ec   : > { %974 = vadd.xlane.f32.xlu1 %v973_v18 }
 0x2fd   : > { %979 = vrot.lane.b32.xlu1 %v2574_v5, %s2441_s19 }
 0x301   : > { %1097 = vrot.lane.b32.xlu1 %v2574_v5, %s2442_s1  ;;  %s2855_s1 = smov 16  }
 0x340   : > { %v743_v19 = vpop.xlane.xlu1 %742 }
 0x341   : > { %2392 = vrcp.f32 %v743_v19 }
 0x344   : > { %v748_v20 = vpop.permute.xlu1 %747 }
 0x345   : > { %v754_v21 = vsel %vm752_vm4, %v748_v20, 0  ;;  %v2376_v20 = vld [vmem:[%s2846_s10 + $0x8] sm:$0xff]  }
 0x346   : > { %2215 = vmatpush3.bf16.msra.mxu0 %v754_v21  ;;  %v1303_v21 = vld [vmem:[%s580_s26] sm:$0xf]  ;;  %s591_s26 = scalar_lea.vmem %s2853_s17, %s2560_s0 }
 0x347   : > { %2226 = vmatprep.subr.bf16.mxu0 %v2428_v1 }
 0x348   : > { %v857_v22 = vpop.xlane.xlu0 %856 }
 0x349   : > { %2394 = vrcp.f32 %v857_v22  ;;  %v2378_v22 = vld [vmem:[%s2845_s9 + $0x8] sm:$0xff]  }
 0x34e   : > { %v2393_v23 = vpop.eup %2392 }
 0x34f   : > { %v745_v24 = vmul.f32 %v2393_v23, %v2385_v2  ;;  %v2379_v23 = vld [vmem:[%s2845_s9] sm:$0xff]  }
 0x351   : > { %v746_v26 = vpack.c.bf16 %v745_v24, %v745_v24 }
 0x353   : > { %2217 = vmatmul.mubr.msk.bf16.vlgmr.msra.gmra.mxu0 %vm686_vm2, %v746_v26 }
 0x354   : > { %2228 = vmatprep.mubr.msk.bf16.mxu0 %vm2429_vm0, %v2428_v1 }
 0x356   : > { %v2395_v5 = vpop.eup %2394 }
 0x357   : > { %v859_v28 = vmul.f32 %v2395_v5, %v2387_v9 }
 0x358   : > { %v1093_v27 = vpop.xlane.xlu0 %1092 }
 0x359   : > { %v860_v32 = vpack.c.bf16 %v859_v28, %v859_v28  ;;  %v2121_v28 = vld [vmem:[%s2843_s7] ss:$0 sm:$0xff] }
 0x35c   : > { %v862_v30 = vpop.permute.xlu0 %861 }
 0x35d   : > { %v867_v31 = vsel %vm752_vm4, %v862_v30, 0 }
 0x35e   : > { %2227 = vmatpush3.bf16.msra.mxu0 %v867_v31  ;;  %v2122_v31 = vld [vmem:[%s2844_s8] ss:$0 sm:$0xff] }
 0x35f   : > { %2238 = vmatprep.subr.bf16.mxu0 %v2428_v1 }
 0x361   : > { %2229 = vmatmul.mubr.msk.bf16.vlgmr.msra.gmra.mxu0 %vm686_vm2, %v860_v32 }
 0x362   : > { %2240 = vmatprep.mubr.msk.bf16.mxu0 %vm2429_vm0, %v2428_v1 }
 0x375   : > { %v975_v33 = vpop.xlane.xlu1 %974 }
 0x376   : > { %2396 = vrcp.f32 %v975_v33 }
 0x377   : > { %2398 = vrcp.f32 %v1093_v27 }
 0x379   : > { %v980_v34 = vpop.permute.xlu1 %979 }
 0x37a   : > { %v985_v35 = vsel %vm752_vm4, %v980_v34, 0 }
 0x37b   : > { %2239 = vmatpush3.bf16.msra.mxu0 %v985_v35 }
 0x37c   : > { %2250 = vmatprep.subr.bf16.mxu0 %v2428_v1 }
 0x37d   : > { %v1098_v38 = vpop.permute.xlu1 %1097 }
 0x37e   : > { %v1103_v41 = vsel %vm752_vm4, %v1098_v38, 0 }
 0x383   : > { %v2397_v36 = vpop.eup %2396 }
 0x384   : > { %v977_v37 = vmul.f32 %v2397_v36, %v2391_v17  ;;  %v2399_v40 = vpop.eup %2398 }
 0x385   : > { %v1095_v42 = vmul.f32 %v2399_v40, %v2389_v13 }
 0x386   : > { %v978_v39 = vpack.c.bf16 %v977_v37, %v977_v37 }
 0x387   : > { %v1096_v43 = vpack.c.bf16 %v1095_v42, %v1095_v42 }
 0x388   : > { %2241 = vmatmul.mubr.msk.bf16.vlgmr.msra.gmra.mxu0 %vm686_vm2, %v978_v39 }
 0x389   : > { %2251 = vmatpush3.bf16.msra.mxu0 %v1103_v41  ;;  %2252 = vmatprep.mubr.msk.bf16.mxu0 %vm2429_vm0, %v2428_v1 }
 0x38a   : > { %2264 = vmatprep.subr.bf16.mxu0 %v2428_v1 }
 0x390   : > { %2253 = vmatmul.mubr.msk.bf16.vlgmr.msra.gmra.mxu0 %vm686_vm2, %v1096_v43 }
 0x391   : > { %2268 = vmatprep.mubr.msk.bf16.mxu0 %vm2429_vm0, %v2428_v1  ;;  %2265 = vmatpush3.bf16.msra.mxu0 %v2378_v22 }
 0x392   : > { %2266 = vmatprep.subr.bf16.mxu0 %v2428_v1 }
 0x395   : > { %2267 = vmatpush3.bf16.msra.mxu0 %v2379_v23 }
 0x396   : > { %2280 = vmatprep.subr.bf16.mxu0 %v2428_v1 }
 0x413   : > { %v790_v44 = vpop.f32.mrf.mxu0 }
 0x414   : > { %796 = vst.msk [vmem:[#allocation2] sm:$0xff] %vm686_vm2, %v790_v44 }
 0x415   : > { %v2218_v45 = vpop.f32.mrf.mxu0 }
 0x417   : > { %v793_v46 = vpop.f32.mrf.mxu0 }
 0x419   : > { %v2219_v47 = vpop.f32.mrf.mxu0 }
 0x421   : > { %v903_v48 = vpop.f32.mrf.mxu0 }
 0x422   : > { %910 = vrot.lane.b32.xlu0 %v903_v48, %s2856_s29 }
 0x423   : > { %v2230_v49 = vpop.f32.mrf.mxu0 }
 0x425   : > { %v906_v50 = vpop.f32.mrf.mxu0 }
 0x427   : > { %v2231_v51 = vpop.f32.mrf.mxu0 }
 0x448   : > { %v1021_v54 = vpop.f32.mrf.mxu0 }
 0x449   : > { %1028 = vrot.lane.b32.xlu1 %v1021_v54, %s2855_s1 }
 0x44a   : > { %v2242_v55 = vpop.f32.mrf.mxu0 }
 0x44c   : > { %v1024_v56 = vpop.f32.mrf.mxu0 }
 0x44e   : > { %v2243_v57 = vpop.f32.mrf.mxu0 }
 0x450   : > { %v1139_v58 = vpop.f32.mrf.mxu0 }
 0x451   : > { %1146 = vrot.lane.b32.xlu0 %v1139_v58, %s2854_s30 }
 0x452   : > { %v2254_v59 = vpop.f32.mrf.mxu0 }
 0x454   : > { %v1142_v60 = vpop.f32.mrf.mxu0 }
 0x456   : > { %v2255_v61 = vpop.f32.mrf.mxu0 }
 0x494   : > { %v911_v62 = vpop.permute.xlu0 %910 }
 0x495   : > { %914 = vst.msk [vmem:[#allocation2] sm:$0xff] %vm913_vm5, %v911_v62 }
 0x4bb   : > { %v1029_v63 = vpop.permute.xlu1 %1028 }
 0x4bc   : > { %1032 = vst.msk [vmem:[#allocation2] sm:$0xff] %vm1031_vm6, %v1029_v63 }
 0x4c3   : > { %v1147_v0 = vpop.permute.xlu0 %1146 }
 0x4c4   : > { %1150 = vst.msk [vmem:[#allocation2] sm:$0xff] %vm1149_vm7, %v1147_v0 }
 0x4cb   : > { %v1151_v2 = vld [vmem:[#allocation2] sm:$0xff] }
 0x4cc   : > { %v1152_v3 = vpack.c.bf16 %v1151_v2, %v1151_v2 }
 0x4ce   : > { %2261 = vmatmul.mubr.msk.bf16.vlgmr.msra.gmra.mxu1 %vm610_vm1, %v1152_v3 }
 0x4cf   : > { %2276 = vmatprep.mubr.msk.bf16.mxu1 %vm2429_vm0, %v2428_v1  ;;  %2273 = vmatpush3.bf16.msra.mxu1 %v2376_v20 }
 0x4d0   : > { %2274 = vmatprep.subr.bf16.mxu1 %v2428_v1 }
 0x58e   : > { %v1208_v7 = vpop.f32.mrf.mxu1 }
 0x58f   : > { %v1209_v8 = vadd.f32 %v2117_v6, %v1208_v7 }
 0x590   : > { %v2262_v9 = vpop.f32.mrf.mxu1 }
 0x591   : > { %v1214_v11 = vadd.f32 %v1209_v8, %v2570_v4  ;;  %v2377_v4 = vld [vmem:[%s2846_s10] sm:$0xff]  }
 0x592   : > { %v1211_v12 = vpop.f32.mrf.mxu1  ;;  %2275 = vmatpush3.bf16.msra.mxu1 %v2377_v4 }
 0x593   : > { %v1215_v13 = vsel %vm610_vm1, %v1214_v11, 0.0  ;;  %2286 = vmatprep.subr.bf16.mxu1 %v2428_v1 }
 0x594   : > { %1216 = vadd.xlane.f32.xlu1 %v1215_v13  ;;  %v2263_v14 = vpop.f32.mrf.mxu1 }
 0x595   : > { %2277 = vmatmul.mubr.msk.bf16.vlgmr.msra.gmra.mxu1 %vm610_vm1, %v1303_v21 }
 0x596   : > { %2288 = vmatprep.mubr.msk.bf16.mxu1 %vm2429_vm0, %v2428_v1 }
 0x61d   : > { %v1217_v15 = vpop.xlane.xlu1 %1216 }
 0x61e   : > { %v1219_v16 = vmul.f32 0.03125, %v1217_v15 }
 0x620   : > { %v1220_v17 = vsub.f32 %v1214_v11, %v1219_v16 }
 0x622   : > { %v1221_v18 = vmul.f32 %v1220_v17, %v1220_v17 }
 0x624   : > { %v1222_v19 = vsel %vm610_vm1, %v1221_v18, 0.0 }
 0x625   : > { %1223 = vadd.xlane.f32.xlu0 %v1222_v19 }
 0x655   : > { %v1357_v35 = vpop.f32.mrf.mxu1 }
 0x656   : > { %v2716_v36 = vpack.c.bf16 %v1357_v35, %v1357_v35 }
 0x657   : > { %v2278_v37 = vpop.f32.mrf.mxu1 }
 0x658   : > { %1500 = vrot.lane.b32.xlu0 %v2716_v36, %s2430_s20  ;;  %v1391_v38 = vsel %vm686_vm2, %v2716_v36, 0 }
 0x659   : > { %v1360_v39 = vpop.f32.mrf.mxu1 }
 0x65b   : > { %v2279_v40 = vpop.f32.mrf.mxu1 }
 0x6ae   : > { %v1224_v24 = vpop.xlane.xlu0 %1223 }
 0x6af   : > { %v1225_v26 = vmul.f32 0.03125, %v1224_v24 }
 0x6b1   : > { %v1226_v5 = vadd.f32 1e-06, %v1225_v26 }
 0x6b3   : > { %2400 = vrsqrt.f32 %v1226_v5 }
 0x6c0   : > { %v2401_v27 = vpop.eup %2400 }
 0x6c1   : > { %v1228_v30 = vmul.f32 %v2401_v27, %v1220_v17 }
 0x6c3   : > { %v1235_v32 = vmul.f32 %v2121_v28, %v1228_v30 }
 0x6c5   : > { %v1242_v33 = vadd.f32 %v2122_v31, %v1235_v32 }
 0x6c7   : > { %v1243_v34 = vpack.c.bf16 %v1242_v33, %v1242_v33 }
 0x6c9   : > { %2269 = vmatmul.mubr.msk.bf16.vlgmr.msra.gmra.mxu0 %vm610_vm1, %v1243_v34 }
 0x6ca   : > { %2282 = vmatprep.mubr.msk.bf16.mxu0 %vm2429_vm0, %v2428_v1  ;;  %2281 = vmatpush3.bf16.xpose.msra.mxu0 %v1391_v38  ;;  %v1501_v41 = vpop.permute.xlu0 %1500 }
 0x6cb   : > { %2292 = vmatprep.subr.bf16.mxu0 %v2428_v1  ;;  %v1506_v45 = vsel %vm686_vm2, %v1501_v41, 0 }
 0x789   : > { %v2723_v42 = vpop.f32.mrf.mxu0 }
 0x78a   : > { %v1385_v43 = vpack.c.bf16 %v2723_v42, %v2723_v42 }
 0x78b   : > { %v2270_v44 = vpop.f32.mrf.mxu0 }
 0x78c   : > { %1615 = vrot.lane.b32.xlu0 %v1385_v43, %s2435_s27  ;;  %1498 = vrot.lane.b32.xlu1 %v1385_v43, %s2430_s20  ;;  %s2864_s20 = smov 80  }
 0x78d   : > { %2283 = vmatmul.mubr.msk.bf16.vlgmr.msra.gmra.mxu0 %vm686_vm2, %v1385_v43  ;;  %v1300_v46 = vpop.f32.mrf.mxu0 }
 0x78e   : > { %2293 = vmatpush3.bf16.xpose.msra.mxu0 %v1506_v45  ;;  %2294 = vmatprep.mubr.msk.bf16.mxu0 %vm2429_vm0, %v2428_v1 }
 0x78f   : > { %v2271_v47 = vpop.f32.mrf.mxu0  ;;  %2304 = vmatprep.subr.bf16.mxu0 %v2428_v1 }
 0x790   : > { %1732 = vrot.lane.b32.xlu0 %v1385_v43, %s2436_s28  ;;  %1617 = vrot.lane.b32.xlu1 %v2716_v36, %s2435_s27  ;;  %s2866_s27 = smov 88  }
 0x794   : > { %1734 = vrot.lane.b32.xlu1 %v2716_v36, %s2436_s28  ;;  %s2867_s28 = smov 8  }
 0x798   : > { %1374 = vperm.xlu1 %2370, %v2594_v10  }
 0x7fe   : > { %v1499_v48 = vpop.permute.xlu1 %1498  ;;  %v1616_v52 = vpop.permute.xlu0 %1615 }
 0x7ff   : > { %2295 = vmatmul.mubr.msk.bf16.vlgmr.msra.gmra.mxu0 %vm686_vm2, %v1499_v48 }
 0x800   : > { %2306 = vmatprep.mubr.msk.bf16.mxu0 %vm2429_vm0, %v2428_v1 }
 0x802   : > { %v1618_v49 = vpop.permute.xlu1 %1617  ;;  %v1733_v10 = vpop.permute.xlu0 %1732 }
 0x803   : > { %v1623_v50 = vsel %vm686_vm2, %v1618_v49, 0 }
 0x804   : > { %2305 = vmatpush3.bf16.xpose.msra.mxu0 %v1623_v50 }
 0x805   : > { %2316 = vmatprep.subr.bf16.mxu0 %v2428_v1 }
 0x806   : > { %v1735_v51 = vpop.permute.xlu1 %1734 }
 0x807   : > { %v1740_v53 = vsel %vm686_vm2, %v1735_v51, 0 }
 0x80b   : > { %2307 = vmatmul.mubr.msk.bf16.vlgmr.msra.gmra.mxu0 %vm686_vm2, %v1616_v52 }
 0x80c   : > { %2317 = vmatpush3.bf16.xpose.msra.mxu0 %v1740_v53  ;;  %2318 = vmatprep.mubr.msk.bf16.mxu0 %vm2429_vm0, %v2428_v1 }
 0x80d   : > { %2328 = vmatprep.subr.bf16.mxu0 %v2428_v1 }
 0x813   : > { %2319 = vmatmul.mubr.msk.bf16.vlgmr.msra.gmra.mxu0 %vm686_vm2, %v1733_v10  ;;  %v1375_v54 = vpop.permute.xlu1 %1374 }
 0x814   : > { %2332 = vmatprep.mubr.msk.bf16.mxu0 %vm2429_vm0, %v2428_v1  ;;  %v1383_v55 = vadd.f32 %v2622_v25, %v1375_v54 }
 0x816   : > { %v1384_v57 = vadd.f32 %v1383_v55, %v2625_v29 }
 0x84d   : > { %v1427_v56 = vpop.f32.mrf.mxu0 }
 0x84e   : > { %v1433_v58 = vmul.f32 5.656854, %v1427_v56 }
 0x84f   : > { %v2284_v59 = vpop.f32.mrf.mxu0 }
 0x850   : > { %v1434_v60 = vadd.f32 %v1433_v58, %v1384_v57 }
 0x851   : > { %v1430_v61 = vpop.f32.mrf.mxu0 }
 0x852   : > { %v1435_v62 = vsel %vm686_vm2, %v1434_v60, -inf }
 0x853   : > { %1436 = vmax.xlane.f32.xlu0 %v1435_v62  ;;  %v2285_v63 = vpop.f32.mrf.mxu0 }
 0x8bf   : > { %v1542_v0 = vpop.f32.mrf.mxu0 }
 0x8c0   : > { %v1548_v2 = vmul.f32 5.656854, %v1542_v0 }
 0x8c1   : > { %v2296_v3 = vpop.f32.mrf.mxu0 }
 0x8c2   : > { %v1549_v6 = vadd.f32 %v1548_v2, %v1384_v57 }
 0x8c3   : > { %v1545_v7 = vpop.f32.mrf.mxu0 }
 0x8c4   : > { %v1550_v8 = vsel %vm686_vm2, %v1549_v6, -inf }
 0x8c5   : > { %1551 = vmax.xlane.f32.xlu1 %v1550_v8  ;;  %v2297_v25 = vpop.f32.mrf.mxu0 }
 0x8cb   : > { %v1659_v9 = vpop.f32.mrf.mxu0 }
 0x8cc   : > { %v1665_v11 = vmul.f32 5.656854, %v1659_v9 }
 0x8cd   : > { %v2308_v29 = vpop.f32.mrf.mxu0 }
 0x8ce   : > { %v1666_v12 = vadd.f32 %v1665_v11, %v1384_v57 }
 0x8cf   : > { %v1662_v13 = vpop.f32.mrf.mxu0 }
 0x8d0   : > { %v1667_v14 = vsel %vm686_vm2, %v1666_v12, -inf }
 0x8d1   : > { %1668 = vmax.xlane.f32.xlu0 %v1667_v14  ;;  %v2309_v15 = vpop.f32.mrf.mxu0  ;;  %v2381_v14 = vld [vmem:[%s2847_s11] sm:$0xff]  }
 0x8d3   : > { %v1776_v16 = vpop.f32.mrf.mxu0 }
 0x8d4   : > { %v1782_v17 = vmul.f32 5.656854, %v1776_v16 }
 0x8d5   : > { %v2320_v18 = vpop.f32.mrf.mxu0 }
 0x8d6   : > { %v1783_v19 = vadd.f32 %v1782_v17, %v1384_v57 }
 0x8d7   : > { %v1779_v20 = vpop.f32.mrf.mxu0 }
 0x8d8   : > { %v1784_v4 = vsel %vm686_vm2, %v1783_v19, -inf }
 0x8d9   : > { %1785 = vmax.xlane.f32.xlu0 %v1784_v4  ;;  %v2321_v21 = vpop.f32.mrf.mxu0 }
 0x8dc   : > { %v1437_v22 = vpop.xlane.xlu0 %1436 }
 0x8dd   : > { %v1438_v23 = vsub.f32 %v1434_v60, %v1437_v22 }
 0x8df   : > { %v1439_v24 = vmul.f32 1.442695, %v1438_v23 }
 0x8e1   : > { %2402 = vpow2.f32 %v1439_v24 }
 0x8ee   : > { %v2403_v26 = vpop.eup %2402 }
 0x8ef   : > { %v1441_v5 = vsel %vm686_vm2, %v2403_v26, 0.0 }
 0x8f0   : > { %1442 = vadd.xlane.f32.xlu1 %v1441_v5 }
 0x901   : > { %1448 = vrot.lane.b32.xlu1 %v2716_v36, %s2431_s21  ;;  %s2865_s21 = smov 72  }
 0x94e   : > { %v1552_v27 = vpop.xlane.xlu1 %1551 }
 0x94f   : > { %v1553_v28 = vsub.f32 %v1549_v6, %v1552_v27  ;;  %v2138_v27 = vld [vmem:[%s2848_s12] ss:$0 sm:$0xff] }
 0x951   : > { %v1554_v30 = vmul.f32 1.442695, %v1553_v28 }
 0x953   : > { %2404 = vpow2.f32 %v1554_v30 }
 0x95a   : > { %v1669_v31 = vpop.xlane.xlu0 %1668 }
 0x95b   : > { %v1670_v32 = vsub.f32 %v1666_v12, %v1669_v31  ;;  %v2380_v12 = vld [vmem:[%s2847_s11 + $0x8] sm:$0xff]  }
 0x95c   : > { %2329 = vmatpush3.bf16.msra.mxu0 %v2380_v12 }
 0x95d   : > { %v1671_v33 = vmul.f32 1.442695, %v1670_v32  ;;  %2330 = vmatprep.subr.bf16.mxu0 %v2428_v1 }
 0x95f   : > { %2406 = vpow2.f32 %v1671_v33 }
 0x960   : > { %v2405_v34 = vpop.eup %2404  ;;  %2331 = vmatpush3.bf16.msra.mxu0 %v2381_v14 }
 0x961   : > { %v1556_v35 = vsel %vm686_vm2, %v2405_v34, 0.0 }
 0x962   : > { %1557 = vadd.xlane.f32.xlu0 %v1556_v35  ;;  %v1786_v37 = vpop.xlane.xlu0 %1785 }
 0x963   : > { %v1787_v38 = vsub.f32 %v1783_v19, %v1786_v37 }
 0x965   : > { %v1788_v39 = vmul.f32 1.442695, %v1787_v38 }
 0x967   : > { %2408 = vpow2.f32 %v1788_v39 }
 0x96c   : > { %v2407_v40 = vpop.eup %2406 }
 0x96d   : > { %v1673_v41 = vsel %vm686_vm2, %v2407_v40, 0.0 }
 0x96e   : > { %1674 = vadd.xlane.f32.xlu1 %v1673_v41 }
 0x974   : > { %v2409_v43 = vpop.eup %2408 }
 0x975   : > { %v1790_v44 = vsel %vm686_vm2, %v2409_v43, 0.0 }
 0x976   : > { %1791 = vadd.xlane.f32.xlu0 %v1790_v44 }
 0x979   : > { %v1443_v45 = vpop.xlane.xlu1 %1442 }
 0x97a   : > { %2410 = vrcp.f32 %v1443_v45 }
 0x97d   : > { %v1449_v46 = vpop.permute.xlu1 %1448 }
 0x97e   : > { %v1454_v47 = vsel %vm752_vm4, %v1449_v46, 0 }
 0x97f   : > { %2287 = vmatpush3.bf16.msra.mxu1 %v1454_v47  ;;  %1679 = vrot.lane.b32.xlu1 %v2716_v36, %s2864_s20 }
 0x980   : > { %2298 = vmatprep.subr.bf16.mxu1 %v2428_v1 }
 0x983   : > { %1796 = vrot.lane.b32.xlu1 %v2716_v36, %s2865_s21 }
 0x987   : > { %v2411_v48 = vpop.eup %2410 }
 0x988   : > { %v1445_v49 = vmul.f32 %v2411_v48, %v2403_v26  ;;  %v2142_v48 = vld [vmem:[%s2849_s13] ss:$0 sm:$0xff] }
 0x98a   : > { %v1446_v50 = vpack.c.bf16 %v1445_v49, %v1445_v49 }
 0x98c   : > { %2289 = vmatmul.mubr.msk.bf16.vlgmr.msra.gmra.mxu1 %vm686_vm2, %v1446_v50  ;;  %1562 = vrot.lane.b32.xlu0 %v2716_v36, %s2866_s27  ;;  %v2143_v50 = vld [vmem:[%s2850_s14] ss:$0 sm:$0xff] }
 0x98d   : > { %2300 = vmatprep.mubr.msk.bf16.mxu1 %vm2429_vm0, %v2428_v1 }
 0x9eb   : > { %v1558_v51 = vpop.xlane.xlu0 %1557 }
 0x9ec   : > { %2412 = vrcp.f32 %v1558_v51 }
 0x9f7   : > { %v1675_v52 = vpop.xlane.xlu1 %1674 }
 0x9f8   : > { %2414 = vrcp.f32 %v1675_v52 }
 0x9f9   : > { %v2413_v53 = vpop.eup %2412 }
 0x9fa   : > { %v1560_v54 = vmul.f32 %v2413_v53, %v2405_v34 }
 0x9fb   : > { %v1680_v57 = vpop.permute.xlu1 %1679 }
 0x9fc   : > { %v1561_v58 = vpack.c.bf16 %v1560_v54, %v1560_v54  ;;  %v1685_v59 = vsel %vm752_vm4, %v1680_v57, 0 }
 0x9ff   : > { %v1792_v10 = vpop.xlane.xlu0 %1791  ;;  %v1797_v61 = vpop.permute.xlu1 %1796 }
 0xa00   : > { %2416 = vrcp.f32 %v1792_v10  ;;  %v1802_v0 = vsel %vm752_vm4, %v1797_v61, 0 }
 0xa03   : > { %v1563_v55 = vpop.permute.xlu0 %1562 }
 0xa04   : > { %v1568_v56 = vsel %vm752_vm4, %v1563_v55, 0 }
 0xa05   : > { %2299 = vmatpush3.bf16.msra.mxu1 %v1568_v56  ;;  %v2415_v36 = vpop.eup %2414 }
 0xa06   : > { %2310 = vmatprep.subr.bf16.mxu1 %v2428_v1  ;;  %v1677_v60 = vmul.f32 %v2415_v36, %v2407_v40 }
 0xa08   : > { %2301 = vmatmul.mubr.msk.bf16.vlgmr.msra.gmra.mxu1 %vm686_vm2, %v1561_v58  ;;  %v1678_v62 = vpack.c.bf16 %v1677_v60, %v1677_v60 }
 0xa09   : > { %2311 = vmatpush3.bf16.msra.mxu1 %v1685_v59  ;;  %2312 = vmatprep.mubr.msk.bf16.mxu1 %vm2429_vm0, %v2428_v1 }
 0xa0a   : > { %2322 = vmatprep.subr.bf16.mxu1 %v2428_v1 }
 0xa0d   : > { %v2417_v63 = vpop.eup %2416 }
 0xa0e   : > { %v1794_v2 = vmul.f32 %v2417_v63, %v2409_v43  ;;  %v2382_v43 = vld [vmem:[%s2851_s15 + $0x8] sm:$0xff]  }
 0xa10   : > { %2313 = vmatmul.mubr.msk.bf16.vlgmr.msra.gmra.mxu1 %vm686_vm2, %v1678_v62  ;;  %v1795_v3 = vpack.c.bf16 %v1794_v2, %v1794_v2 }
 0xa11   : > { %2323 = vmatpush3.bf16.msra.mxu1 %v1802_v0  ;;  %2324 = vmatprep.mubr.msk.bf16.mxu1 %vm2429_vm0, %v2428_v1 }
 0xa12   : > { %2336 = vmatprep.subr.bf16.mxu1 %v2428_v1 }
 0xa18   : > { %2325 = vmatmul.mubr.msk.bf16.vlgmr.msra.gmra.mxu1 %vm686_vm2, %v1795_v3 }
 0xa19   : > { %2340 = vmatprep.mubr.msk.bf16.mxu1 %vm2429_vm0, %v2428_v1  ;;  %2337 = vmatpush3.bf16.msra.mxu1 %v2382_v43 }
 0xa1a   : > { %2338 = vmatprep.subr.bf16.mxu1 %v2428_v1  ;;  %v2144_v1 = vld [vmem:[%s2852_s16] ss:$0 sm:$0xff] }
 0xa4c   : > { %v1490_v6 = vpop.f32.mrf.mxu1 }
 0xa4d   : > { %1496 = vst.msk [vmem:[#allocation2] sm:$0xff] %vm686_vm2, %v1490_v6 }
 0xa4e   : > { %v2290_v7 = vpop.f32.mrf.mxu1 }
 0xa50   : > { %v1493_v8 = vpop.f32.mrf.mxu1 }
 0xa52   : > { %v2291_v25 = vpop.f32.mrf.mxu1 }
 0xac8   : > { %v1604_v9 = vpop.f32.mrf.mxu1 }
 0xac9   : > { %1611 = vrot.lane.b32.xlu0 %v1604_v9, %s2867_s28 }
 0xaca   : > { %v2302_v11 = vpop.f32.mrf.mxu1 }
 0xacc   : > { %v1607_v29 = vpop.f32.mrf.mxu1 }
 0xace   : > { %v2303_v13 = vpop.f32.mrf.mxu1 }
 0xad0   : > { %v1721_v15 = vpop.f32.mrf.mxu1 }
 0xad1   : > { %1728 = vrot.lane.b32.xlu1 %v1721_v15, %s2868_s25 }
 0xad2   : > { %v2314_v16 = vpop.f32.mrf.mxu1 }
 0xad4   : > { %v1724_v17 = vpop.f32.mrf.mxu1 }
 0xad6   : > { %v2315_v18 = vpop.f32.mrf.mxu1 }
 0xad8   : > { %v1838_v19 = vpop.f32.mrf.mxu1 }
 0xad9   : > { %1845 = vrot.lane.b32.xlu0 %v1838_v19, %s2869_s22 }
 0xada   : > { %v2326_v20 = vpop.f32.mrf.mxu1 }
 0xadc   : > { %v1841_v4 = vpop.f32.mrf.mxu1 }
 0xade   : > { %v2327_v21 = vpop.f32.mrf.mxu1 }
 0xb3b   : > { %v1612_v22 = vpop.permute.xlu0 %1611 }
 0xb3c   : > { %1614 = vst.msk [vmem:[#allocation2] sm:$0xff] %vm913_vm5, %v1612_v22 }
 0xb43   : > { %v1729_v23 = vpop.permute.xlu1 %1728 }
 0xb44   : > { %1731 = vst.msk [vmem:[#allocation2] sm:$0xff] %vm1031_vm6, %v1729_v23 }
 0xb4b   : > { %v1846_v24 = vpop.permute.xlu0 %1845 }
 0xb4c   : > { %1848 = vst.msk [vmem:[#allocation2] sm:$0xff] %vm1149_vm7, %v1846_v24 }
 0xb53   : > { %v1849_v26 = vld [vmem:[#allocation2] sm:$0xff] }
 0xb54   : > { %v1850_v5 = vpack.c.bf16 %v1849_v26, %v1849_v26 }
 0xb56   : > { %2333 = vmatmul.mubr.msk.bf16.vlgmr.msra.gmra.mxu0 %vm610_vm1, %v1850_v5 }
 0xc16   : > { %v1906_v28 = vpop.f32.mrf.mxu0 }
 0xc17   : > { %v1907_v30 = vadd.f32 %v2138_v27, %v1906_v28 }
 0xc18   : > { %v2334_v31 = vpop.f32.mrf.mxu0 }
 0xc19   : > { %v1912_v32 = vadd.f32 %v1907_v30, %v2723_v42  ;;  %v2383_v42 = vld [vmem:[%s2851_s15] sm:$0xff]  }
 0xc1a   : > { %v1909_v33 = vpop.f32.mrf.mxu0  ;;  %2339 = vmatpush3.bf16.msra.mxu1 %v2383_v42 }
 0xc1b   : > { %v1913_v34 = vsel %vm610_vm1, %v1912_v32, 0.0 }
 0xc1c   : > { %1914 = vadd.xlane.f32.xlu1 %v1913_v34  ;;  %v2335_v35 = vpop.f32.mrf.mxu0 }
 0xca5   : > { %v1915_v37 = vpop.xlane.xlu1 %1914 }
 0xca6   : > { %v1916_v38 = vmul.f32 0.03125, %v1915_v37 }
 0xca8   : > { %v1917_v39 = vsub.f32 %v1912_v32, %v1916_v38 }
 0xcaa   : > { %v1918_v40 = vmul.f32 %v1917_v39, %v1917_v39 }
 0xcac   : > { %v1919_v41 = vsel %vm610_vm1, %v1918_v40, 0.0 }
 0xcad   : > { %1920 = vadd.xlane.f32.xlu0 %v1919_v41 }
 0xd36   : > { %v1921_v44 = vpop.xlane.xlu0 %1920 }
 0xd37   : > { %v1922_v45 = vmul.f32 0.03125, %v1921_v44 }
 0xd39   : > { %v1923_v46 = vadd.f32 1e-06, %v1922_v45 }
 0xd3b   : > { %2418 = vrsqrt.f32 %v1923_v46 }
 0xd48   : > { %v2419_v47 = vpop.eup %2418 }
 0xd49   : > { %v1925_v49 = vmul.f32 %v2419_v47, %v1917_v39 }
 0xd4b   : > { %v1932_v51 = vmul.f32 %v2142_v48, %v1925_v49 }
 0xd4d   : > { %v1939_v52 = vadd.f32 %v2143_v50, %v1932_v51 }
 0xd4f   : > { %v1940_v53 = vpack.c.bf16 %v1939_v52, %v1939_v52 }
 0xd51   : > { %2341 = vmatmul.mubr.msk.bf16.vlgmr.msra.gmra.mxu1 %vm610_vm1, %v1940_v53 }
 0xe11   : > { %v2001_v10 = vpop.f32.mrf.mxu1 }
 0xe12   : > { %v2002_v54 = vadd.f32 %v2144_v1, %v2001_v10 }
 0xe13   : > { %v2342_v55 = vpop.f32.mrf.mxu1 }
 0xe14   : > { %v2007_v56 = vpack.c.bf16 %v2002_v54, %v2002_v54 }
 0xe15   : > { %v2004_v57 = vpop.f32.mrf.mxu1 }
 0xe16   : > { %2009 = vst.msk [vmem:[%s591_s26] sm:$0xf] %vm2008_vm8, %v2007_v56 }
 0xe17   : > { %v2343_v58 = vpop.f32.mrf.mxu1 }
 0xe18 PF: > { %s27_s24 = sadd.s32 1, %s2426_s24  }
 0xe19   : > { %p24_p4 = scmp.ge.s32.totalorder %s27_s24, 4  }
 0xe1b   :  { %26 = sbr.rel (!%p24_p4) target bundleno = 3 (0x3), region = 127 }

</bundles_post_ra>
